<compile_context>
chip_gen: v7x
topology: tpu7x:2x2x1
jax: 0.10.0
libtpu: 0.0.40
codegen_flags: <defaults>
</compile_context>

<pallas_src>
import functools

import jax
import jax.numpy as jnp
from jax.experimental import pallas as pl
from jax.experimental.pallas import tpu as pltpu


# --------------------------- VMEM budget helper ---------------------------- #

@functools.lru_cache(maxsize=None)
def _vmem_limit_bytes():
    """<=48 MiB on v7x (64 MiB physical VMEM), up to 96 MiB on v5e/v6e."""
    try:
        phys = pltpu.get_tpu_info().vmem_capacity_bytes
    except Exception:
        phys = 128 * 1024 * 1024
    return int(min(96 * 1024 * 1024, (phys * 3) // 4))


def _compiler_params():
    return pltpu.CompilerParams(
        dimension_semantics=("arbitrary",),
        vmem_limit_bytes=_vmem_limit_bytes(),
    )


# ------------------------------ Pallas kernels ----------------------------- #

def _stem_kernel(x_ref, w_ref, sh_ref, o_ref):
    """Stem conv7/s2 as a single dense-tap matmul + BN shift + ReLU.
    x: (B*L0, 21) bf16, w: (21, 128) bf16 (BN scale folded), sh: (1, 128) f32."""
    acc = jnp.dot(x_ref[...], w_ref[...], preferred_element_type=jnp.float32)
    o_ref[...] = jnp.maximum(acc + sh_ref[...], 0.0).astype(o_ref.dtype)


def _resblock_kernel(x_ref, w1_ref, w2_ref, sh_ref, *rest,
                     nb, lout, cout, head):
    """One full residual block fused in a single launch (optionally + head).

    x_ref : (nb*(lout+1), 2*Cin) bf16  stride-folded input (conv1 + ds share it)
    w1_ref: (2*Cin, 3*cout)      bf16  [conv1 tap0 | conv1 tap1 | 1x1 ds], BN folded
    w2_ref: (cout, 3*cout)       bf16  [conv2 tap0 | tap1 | tap2], BN folded
    sh_ref: (2, cout)            f32   [bn1 shift ; bn2 shift + ds-bn shift]
    h_ref : (nb*(lout+2), cout)  bf16  VMEM scratch: conv1 output with halo rows
    """
    if head:
        fcw_ref, fcb_ref, o_ref, h_ref = rest
    else:
        o_ref, h_ref = rest

    n_fold = lout + 1
    sh = sh_ref[...]
    shift1 = sh[0:1, :]
    shift2 = sh[1:2, :]

    # conv1 taps + 1x1 downsample: ONE MXU matmul (batch packed into M,
    # taps/ds concatenated along N).
    r1 = jnp.dot(x_ref[...], w1_ref[...], preferred_element_type=jnp.float32)
    z0 = r1[:, 0:cout]
    z1 = r1[:, cout:2 * cout]
    idn = r1[:, 2 * cout:3 * cout]

    # Scatter relu(bn1(conv1)) into the halo-padded scratch: one zero row on
    # each side of every sample, so conv2's pad=1 becomes pure row shifts.
    zrow = jnp.zeros((1, cout), h_ref.dtype)
    for b in range(nb):
        s = b * n_fold
        d = b * (lout + 2)
        hb = jnp.maximum(z0[s:s + lout] + z1[s + 1:s + 1 + lout] + shift1, 0.0)
        h_ref[pl.ds(d, 1), :] = zrow
        h_ref[pl.ds(d + 1, lout), :] = hb.astype(h_ref.dtype)
        h_ref[pl.ds(d + lout + 1, 1), :] = zrow

    # conv2: ONE matmul over its 3 taps (concatenated along N).
    r2 = jnp.dot(h_ref[...], w2_ref[...], preferred_element_type=jnp.float32)
    u0 = r2[:, 0:cout]
    u1 = r2[:, cout:2 * cout]
    u2 = r2[:, 2 * cout:3 * cout]

    pooled = []
    for b in range(nb):
        s = b * n_fold
        d = b * (lout + 2)
        ob = (u0[d:d + lout] + u1[d + 1:d + 1 + lout] + u2[d + 2:d + 2 + lout]
              + idn[s:s + lout] + shift2)
        ob = jnp.maximum(ob, 0.0)                       # residual add + ReLU
        if head:
            pooled.append(jnp.mean(ob, axis=0, keepdims=True))
        else:
            o_ref[pl.ds(b * lout, lout), :] = ob.astype(o_ref.dtype)

    if head:                                            # pool + fc + L2-normalize
        p = pooled[0] if nb == 1 else jnp.concatenate(pooled, axis=0)
        feat = jnp.dot(p, fcw_ref[...],
                       preferred_element_type=jnp.float32) + fcb_ref[...]
        sq = jnp.sum(feat * feat, axis=-1, keepdims=True)
        feat = feat * jax.lax.rsqrt(jnp.maximum(sq, 1e-24))
        o_ref[...] = feat.astype(o_ref.dtype)


# ----------------------------- pallas_call glue ---------------------------- #

def _stem_call(xcol, w, sh):
    m, k = xcol.shape
    cout = w.shape[1]
    return pl.pallas_call(
        _stem_kernel,
        out_shape=jax.ShapeDtypeStruct((m, cout), jnp.bfloat16),
        grid=(1,),
        in_specs=[pl.BlockSpec((m, k), lambda i: (0, 0)),
                  pl.BlockSpec(w.shape, lambda i: (0, 0)),
                  pl.BlockSpec(sh.shape, lambda i: (0, 0))],
        out_specs=pl.BlockSpec((m, cout), lambda i: (0, 0)),
        compiler_params=_compiler_params(),
    )(xcol, w, sh)


def _resblock_call(xf, w1, w2, sh, nb, lout, fc=None):
    cout = w2.shape[0]
    h_rows = nb * (lout + 2)
    kernel = functools.partial(_resblock_kernel, nb=nb, lout=lout, cout=cout,
                               head=fc is not None)
    args = [xf, w1, w2, sh]
    in_specs = [pl.BlockSpec(xf.shape, lambda i: (0, 0)),
                pl.BlockSpec(w1.shape, lambda i: (0, 0)),
                pl.BlockSpec(w2.shape, lambda i: (0, 0)),
                pl.BlockSpec(sh.shape, lambda i: (0, 0))]
    if fc is not None:
        fw, fb = fc
        args += [fw, fb]
        in_specs += [pl.BlockSpec(fw.shape, lambda i: (0, 0)),
                     pl.BlockSpec(fb.shape, lambda i: (0, 0))]
        out_shape = jax.ShapeDtypeStruct((nb, fb.shape[-1]), jnp.float32)
    else:
        out_shape = jax.ShapeDtypeStruct((nb * lout, cout), jnp.bfloat16)
    return pl.pallas_call(
        kernel,
        out_shape=out_shape,
        grid=(1,),
        in_specs=in_specs,
        out_specs=pl.BlockSpec(out_shape.shape, lambda i: (0, 0)),
        scratch_shapes=[pltpu.VMEM((h_rows, cout), jnp.bfloat16)],
        compiler_params=_compiler_params(),
    )(*args)


# ---------------------- one-time parameter preparation --------------------- #

def _bn_affine(bias, bn, eps=1e-5):
    scale = bn["gamma"] / jnp.sqrt(bn["var"] + eps)
    shift = (bias - bn["mean"]) * scale + bn["beta"]
    return scale, shift


def _prep_block(p, cin_pad):
    """Fold one ResidualBlock's torch-layout weights into two MXU-ready bf16
    matrices + one packed fp32 shift array (runs once at load time)."""
    w1 = p["conv1"]["w"]                                   # (Cout, Cin, 3)
    cout, cin, _ = w1.shape
    s1, sh1 = _bn_affine(p["conv1"]["b"], p["bn1"])
    s2, sh2 = _bn_affine(p["conv2"]["b"], p["bn2"])
    sd, shd = _bn_affine(p["ds_conv"]["b"], p["ds_bn"])

    if cin < cin_pad:
        w1 = jnp.pad(w1, ((0, 0), (0, cin_pad - cin), (0, 0)))
    # conv1 taps in stride-2 folded layout (BN scale baked in):
    #   y[i] = xf[i] @ tap0 + xf[i+1] @ tap1 ,  xf[i] = [xpad[2i], xpad[2i+1]]
    wt = [jnp.transpose(w1[:, :, k]) * s1[None, :] for k in range(3)]
    tap0 = jnp.concatenate([wt[0], wt[1]], axis=0)         # (2*Cin', Cout)
    tap1 = jnp.concatenate([wt[2], jnp.zeros_like(wt[2])], axis=0)
    # 1x1 stride-2 downsample reads xpad[2i+1] == second half of xf[i].
    wd = p["ds_conv"]["w"][:, :, 0]
    if cin < cin_pad:
        wd = jnp.pad(wd, ((0, 0), (0, cin_pad - cin)))
    dsw = jnp.concatenate([jnp.zeros((cin_pad, cout), w1.dtype),
                           jnp.transpose(wd) * sd[None, :]], axis=0)
    w1_big = jnp.concatenate([tap0, tap1, dsw], axis=1)    # (2*Cin', 3*Cout)

    w2 = p["conv2"]["w"]                                   # (Cout, Cout, 3)
    vt = [jnp.transpose(w2[:, :, k]) * s2[None, :] for k in range(3)]
    w2_big = jnp.concatenate(vt, axis=1)                   # (Cout, 3*Cout)

    shifts = jnp.stack([sh1, sh2 + shd], axis=0)           # (2, Cout)
    return {"w1": w1_big.astype(jnp.bfloat16),
            "w2": w2_big.astype(jnp.bfloat16),
            "sh": shifts.astype(jnp.float32)}


def prepare_params(params, stem_cpad=128):
    """One-time (load-time) folding of all weights into MXU-ready arrays."""
    w = params["stem_conv"]["w"]                           # (64, 3, 7)
    cout = w.shape[0]
    s, sh = _bn_affine(params["stem_conv"]["b"], params["stem_bn"])
    ws = jnp.transpose(w, (2, 1, 0)).reshape(-1, cout) * s[None, :]   # (21, 64)
    ws = jnp.pad(ws, ((0, 0), (0, stem_cpad - cout)))      # lane-dense 64 -> 128
    shp = jnp.pad(sh, (0, stem_cpad - cout)).reshape(1, -1)
    prep = {"stem": {"w": ws.astype(jnp.bfloat16), "sh": shp.astype(jnp.float32)}}
    # TODO(synk): blocks without a downsample (stride 1, equal channels) never
    #             occur in this architecture and are not handled here.
    prep["layer1"] = _prep_block(params["layer1"], stem_cpad)
    prep["layer2"] = _prep_block(params["layer2"],
                                 params["layer2"]["conv1"]["w"].shape[1])
    prep["layer3"] = _prep_block(params["layer3"],
                                 params["layer3"]["conv1"]["w"].shape[1])
    prep["layer4"] = _prep_block(params["layer4"],
                                 params["layer4"]["conv1"]["w"].shape[1])
    prep["fc"] = {"w": jnp.transpose(params["fc"]["w"]).astype(jnp.float32),
                  "b": params["fc"]["b"].reshape(1, -1).astype(jnp.float32)}
    return prep


# ------------------------------ model forward ------------------------------ #

def _fold_act(h):
    """(B, Lin, C) -> stride-2 folded LHS (B*(L1+1), 2C) bf16 (pad+reshape only)."""
    b, lin, c = h.shape
    lout = (lin - 1) // 2 + 1                # conv k=3, s=2, p=1
    n_fold = lout + 1
    hp = jnp.pad(h, ((0, 0), (1, 2 * n_fold - lin - 1), (0, 0)))
    return hp.reshape(b * n_fold, 2 * c).astype(jnp.bfloat16), lout


def feature_extractor(x, prep):
    """x: (B, L, 3) channels-last (PyTorch takes (B, L, 3) and transposes)."""
    b, l, _ = x.shape
    l0 = (l - 1) // 2 + 1                    # stem: k=7, s=2, p=3
    # stem im2col (single dense tap, K = 7*3 = 21): pad + 7 strided slices.
    xp = jnp.pad(x, ((0, 0), (3, 2 * l0 + 2 - l), (0, 0)))
    xcol = jnp.concatenate([xp[:, k:k + 2 * l0:2, :] for k in range(7)], axis=-1)
    xcol = xcol.reshape(b * l0, 21).astype(jnp.bfloat16)
    h = _stem_call(xcol, prep["stem"]["w"], prep["stem"]["sh"]).reshape(b, l0, -1)

    for name in ("layer1", "layer2", "layer3"):
        blk = prep[name]
        xf, lout = _fold_act(h)
        h = _resblock_call(xf, blk["w1"], blk["w2"], blk["sh"], b, lout)
        h = h.reshape(b, lout, -1)

    blk = prep["layer4"]                     # layer4 launch also runs the head
    xf, lout = _fold_act(h)
    return _resblock_call(xf, blk["w1"], blk["w2"], blk["sh"], b, lout,
                          fc=(prep["fc"]["w"], prep["fc"]["b"]))


# ----------------------------- parameter init ------------------------------ #

def _init_conv(key, cout, cin, k):
    k1, k2 = jax.random.split(key)
    return {"w": jax.random.normal(k1, (cout, cin, k), jnp.float32) * 0.05,
            "b": jax.random.normal(k2, (cout,), jnp.float32) * 0.01}


def _init_bn(key, c):
    k1, k2, k3, k4 = jax.random.split(key, 4)
    return {"gamma": 1.0 + 0.1 * jax.random.normal(k1, (c,), jnp.float32),
            "beta": 0.1 * jax.random.normal(k2, (c,), jnp.float32),
            "mean": 0.1 * jax.random.normal(k3, (c,), jnp.float32),
            "var": 1.0 + 0.1 * jax.random.uniform(k4, (c,), jnp.float32)}


def _init_block(key, cin, cout, stride):
    keys = jax.random.split(key, 6)
    p = {"conv1": _init_conv(keys[0], cout, cin, 3), "bn1": _init_bn(keys[1], cout),
         "conv2": _init_conv(keys[2], cout, cout, 3), "bn2": _init_bn(keys[3], cout)}
    if stride != 1 or cin != cout:
        p["ds_conv"] = _init_conv(keys[4], cout, cin, 1)
        p["ds_bn"] = _init_bn(keys[5], cout)
    return p


def init_params(key, feature_dim=128):
    keys = jax.random.split(key, 8)
    return {"stem_conv": _init_conv(keys[0], 64, 3, 7),
            "stem_bn": _init_bn(keys[1], 64),
            "layer1": _init_block(keys[2], 64, 128, 2),
            "layer2": _init_block(keys[3], 128, 128, 2),
            "layer3": _init_block(keys[4], 128, 256, 2),
            "layer4": _init_block(keys[5], 256, 256, 2),
            "fc": {"w": jax.random.normal(keys[6], (feature_dim, 256), jnp.float32) * 0.05,
                   "b": jax.random.normal(keys[7], (feature_dim,), jnp.float32) * 0.01}}


# ---------------------------------- main ----------------------------------- #

if __name__ == "__main__":
    key = jax.random.PRNGKey(0)
    kx, kp = jax.random.split(key)

    B, L = 2, 16                      # input (B, L, 3), like PyTorch (B, seq, 3)
    x = jax.random.normal(kx, (B, L, 3), jnp.float32)
    params = init_params(kp, feature_dim=128)
    prep = prepare_params(params)     # one-time, load-time weight folding

    feat = jax.block_until_ready(jax.jit(feature_extractor)(x, prep))

    assert feat.shape == (B, 128), feat.shape
    # sanity: rows are unit-norm after F.normalize
    norms = jnp.linalg.norm(feat, axis=-1)
    assert bool(jnp.all(jnp.abs(norms - 1.0) < 1e-3)), norms
    print("KERNEL_OK")
</pallas_src>

<mosaic_0001>
module attributes {stable_mosaic.version = 11 : i64} {
  func.func @_stem_kernel(%arg0: i32, %arg1: memref<16x21xbf16, #tpu.memory_space<vmem>>, %arg2: memref<21x128xbf16, #tpu.memory_space<vmem>>, %arg3: memref<1x128xf32, #tpu.memory_space<vmem>>, %arg4: memref<16x128xbf16, #tpu.memory_space<vmem>>) attributes {dimension_semantics = [#tpu.dimension_semantics<arbitrary>], iteration_bounds = array<i64: 1>, scalar_prefetch = 0 : i64, scratch_operands = 0 : i64, tpu.core_type = #tpu.core_type<tc>, window_params = [{pipeline_mode = #tpu.pipeline_mode<synchronous>, transform_indices = @transform_0, window_bounds = array<i64: 16, 21>}, {pipeline_mode = #tpu.pipeline_mode<synchronous>, transform_indices = @transform_1, window_bounds = array<i64: 21, 128>}, {pipeline_mode = #tpu.pipeline_mode<synchronous>, transform_indices = @transform_2, window_bounds = array<i64: 1, 128>}, {pipeline_mode = #tpu.pipeline_mode<synchronous>, transform_indices = @transform_3, window_bounds = array<i64: 16, 128>}]} {
    %c0 = arith.constant 0 : index
    %c0_0 = arith.constant 0 : index
    %0 = vector.load %arg1[%c0, %c0_0] : memref<16x21xbf16, #tpu.memory_space<vmem>>, vector<16x21xbf16>
    %c0_1 = arith.constant 0 : index
    %c0_2 = arith.constant 0 : index
    %1 = vector.load %arg2[%c0_1, %c0_2] : memref<21x128xbf16, #tpu.memory_space<vmem>>, vector<21x128xbf16>
    %cst = arith.constant dense<0.000000e+00> : vector<16x128xf32>
    %2 = tpu.matmul %0, %1, %cst {dimension_numbers = #tpu.dot_dimension_numbers<[1], [0], [0], [1], [0, 0, 1, 1], [], []>} : vector<16x21xbf16>, vector<21x128xbf16>, vector<16x128xf32> -> vector<16x128xf32>
    %c0_3 = arith.constant 0 : index
    %c0_4 = arith.constant 0 : index
    %3 = vector.load %arg3[%c0_3, %c0_4] : memref<1x128xf32, #tpu.memory_space<vmem>>, vector<1x128xf32>
    %4 = vector.broadcast %3 : vector<1x128xf32> to vector<16x128xf32>
    %5 = arith.addf %2, %4 : vector<16x128xf32>
    %cst_5 = arith.constant 0.000000e+00 : f32
    %6 = vector.broadcast %cst_5 : f32 to vector<16x128xf32>
    %7 = arith.maximumf %5, %6 : vector<16x128xf32>
    %8 = arith.truncf %7 : vector<16x128xf32> to vector<16x128xbf16>
    %c0_6 = arith.constant 0 : index
    %c0_7 = arith.constant 0 : index
    %9 = vector.load %arg4[%c0_6, %c0_7] : memref<16x128xbf16, #tpu.memory_space<vmem>>, vector<16x128xbf16>
    tpu.vector_store %arg4[%c0_6, %c0_7], %8 {strides = array<i32>} : memref<16x128xbf16, #tpu.memory_space<vmem>>, vector<16x128xbf16>,
    return
  }
  func.func @transform_0(%arg0: i32) -> (i32, i32) {
    %c0_i32 = arith.constant 0 : i32
    %c0_i32_0 = arith.constant 0 : i32
    %c0_i32_1 = arith.constant 0 : i32
    return %c0_i32, %c0_i32_0 : i32, i32
  }
  func.func @transform_1(%arg0: i32) -> (i32, i32) {
    %c0_i32 = arith.constant 0 : i32
    %c0_i32_0 = arith.constant 0 : i32
    %c0_i32_1 = arith.constant 0 : i32
    return %c0_i32, %c0_i32_0 : i32, i32
  }
  func.func @transform_2(%arg0: i32) -> (i32, i32) {
    %c0_i32 = arith.constant 0 : i32
    %c0_i32_0 = arith.constant 0 : i32
    %c0_i32_1 = arith.constant 0 : i32
    return %c0_i32, %c0_i32_0 : i32, i32
  }
  func.func @transform_3(%arg0: i32) -> (i32, i32) {
    %c0_i32 = arith.constant 0 : i32
    %c0_i32_0 = arith.constant 0 : i32
    %c0_i32_1 = arith.constant 0 : i32
    return %c0_i32, %c0_i32_0 : i32, i32
  }
}

module attributes {stable_mosaic.version = 11 : i64} {
  func.func @_resblock_kernel(%arg0: i32, %arg1: memref<10x256xbf16, #tpu.memory_space<vmem>>, %arg2: memref<256x384xbf16, #tpu.memory_space<vmem>>, %arg3: memref<128x384xbf16, #tpu.memory_space<vmem>>, %arg4: memref<2x128xf32, #tpu.memory_space<vmem>>, %arg5: memref<8x128xbf16, #tpu.memory_space<vmem>>, %arg6: memref<12x128xbf16, #tpu.memory_space<vmem>>) attributes {dimension_semantics = [#tpu.dimension_semantics<arbitrary>], iteration_bounds = array<i64: 1>, scalar_prefetch = 0 : i64, scratch_operands = 1 : i64, tpu.core_type = #tpu.core_type<tc>, window_params = [{pipeline_mode = #tpu.pipeline_mode<synchronous>, transform_indices = @transform_0, window_bounds = array<i64: 10, 256>}, {pipeline_mode = #tpu.pipeline_mode<synchronous>, transform_indices = @transform_1, window_bounds = array<i64: 256, 384>}, {pipeline_mode = #tpu.pipeline_mode<synchronous>, transform_indices = @transform_2, window_bounds = array<i64: 128, 384>}, {pipeline_mode = #tpu.pipeline_mode<synchronous>, transform_indices = @transform_3, window_bounds = array<i64: 2, 128>}, {pipeline_mode = #tpu.pipeline_mode<synchronous>, transform_indices = @transform_4, window_bounds = array<i64: 8, 128>}]} {
    %c0 = arith.constant 0 : index
    %c0_0 = arith.constant 0 : index
    %0 = vector.load %arg4[%c0, %c0_0] : memref<2x128xf32, #tpu.memory_space<vmem>>, vector<2x128xf32>
    %1 = vector.extract_strided_slice %0 {offsets = [0, 0], sizes = [1, 128], strides = [1, 1]} : vector<2x128xf32> to vector<1x128xf32>
    %2 = vector.extract_strided_slice %0 {offsets = [1, 0], sizes = [1, 128], strides = [1, 1]} : vector<2x128xf32> to vector<1x128xf32>
    %c0_1 = arith.constant 0 : index
    %c0_2 = arith.constant 0 : index
    %3 = vector.load %arg1[%c0_1, %c0_2] : memref<10x256xbf16, #tpu.memory_space<vmem>>, vector<10x256xbf16>
    %c0_3 = arith.constant 0 : index
    %c0_4 = arith.constant 0 : index
    %4 = vector.load %arg2[%c0_3, %c0_4] : memref<256x384xbf16, #tpu.memory_space<vmem>>, vector<256x384xbf16>
    %cst = arith.constant dense<0.000000e+00> : vector<10x384xf32>
    %5 = tpu.matmul %3, %4, %cst {dimension_numbers = #tpu.dot_dimension_numbers<[1], [0], [0], [1], [0, 0, 1, 1], [], []>} : vector<10x256xbf16>, vector<256x384xbf16>, vector<10x384xf32> -> vector<10x384xf32>
    %6 = vector.extract_strided_slice %5 {offsets = [0, 0], sizes = [10, 128], strides = [1, 1]} : vector<10x384xf32> to vector<10x128xf32>
    %7 = vector.extract_strided_slice %5 {offsets = [0, 128], sizes = [10, 128], strides = [1, 1]} : vector<10x384xf32> to vector<10x128xf32>
    %8 = vector.extract_strided_slice %5 {offsets = [0, 256], sizes = [10, 128], strides = [1, 1]} : vector<10x384xf32> to vector<10x128xf32>
    %cst_5 = arith.constant 0.000000e+00 : bf16
    %9 = vector.broadcast %cst_5 : bf16 to vector<1x128xbf16>
    %10 = vector.extract_strided_slice %6 {offsets = [0, 0], sizes = [4, 128], strides = [1, 1]} : vector<10x128xf32> to vector<4x128xf32>
    %11 = vector.extract_strided_slice %7 {offsets = [1, 0], sizes = [4, 128], strides = [1, 1]} : vector<10x128xf32> to vector<4x128xf32>
    %12 = arith.addf %10, %11 : vector<4x128xf32>
    %13 = vector.broadcast %1 : vector<1x128xf32> to vector<4x128xf32>
    %14 = arith.addf %12, %13 : vector<4x128xf32>
    %cst_6 = arith.constant 0.000000e+00 : f32
    %15 = vector.broadcast %cst_6 : f32 to vector<4x128xf32>
    %16 = arith.maximumf %14, %15 : vector<4x128xf32>
    %c0_7 = arith.constant 0 : index
    %c0_8 = arith.constant 0 : index
    %17 = vector.load %arg6[%c0_7, %c0_8] : memref<12x128xbf16, #tpu.memory_space<vmem>>, vector<1x128xbf16>
    tpu.vector_store %arg6[%c0_7, %c0_8], %9 {strides = array<i32>} : memref<12x128xbf16, #tpu.memory_space<vmem>>, vector<1x128xbf16>,
    %18 = arith.truncf %16 : vector<4x128xf32> to vector<4x128xbf16>
    %c1 = arith.constant 1 : index
    %c0_9 = arith.constant 0 : index
    %19 = vector.load %arg6[%c1, %c0_9] : memref<12x128xbf16, #tpu.memory_space<vmem>>, vector<4x128xbf16>
    tpu.vector_store %arg6[%c1, %c0_9], %18 {strides = array<i32>} : memref<12x128xbf16, #tpu.memory_space<vmem>>, vector<4x128xbf16>,
    %c5 = arith.constant 5 : index
    %c0_10 = arith.constant 0 : index
    %20 = vector.load %arg6[%c5, %c0_10] : memref<12x128xbf16, #tpu.memory_space<vmem>>, vector<1x128xbf16>
    tpu.vector_store %arg6[%c5, %c0_10], %9 {strides = array<i32>} : memref<12x128xbf16, #tpu.memory_space<vmem>>, vector<1x128xbf16>,
    %21 = vector.extract_strided_slice %6 {offsets = [5, 0], sizes = [4, 128], strides = [1, 1]} : vector<10x128xf32> to vector<4x128xf32>
    %22 = vector.extract_strided_slice %7 {offsets = [6, 0], sizes = [4, 128], strides = [1, 1]} : vector<10x128xf32> to vector<4x128xf32>
    %23 = arith.addf %21, %22 : vector<4x128xf32>
    %24 = vector.broadcast %1 : vector<1x128xf32> to vector<4x128xf32>
    %25 = arith.addf %23, %24 : vector<4x128xf32>
    %cst_11 = arith.constant 0.000000e+00 : f32
    %26 = vector.broadcast %cst_11 : f32 to vector<4x128xf32>
    %27 = arith.maximumf %25, %26 : vector<4x128xf32>
    %c6 = arith.constant 6 : index
    %c0_12 = arith.constant 0 : index
    %28 = vector.load %arg6[%c6, %c0_12] : memref<12x128xbf16, #tpu.memory_space<vmem>>, vector<1x128xbf16>
    tpu.vector_store %arg6[%c6, %c0_12], %9 {strides = array<i32>} : memref<12x128xbf16, #tpu.memory_space<vmem>>, vector<1x128xbf16>,
    %29 = arith.truncf %27 : vector<4x128xf32> to vector<4x128xbf16>
    %c7 = arith.constant 7 : index
    %c0_13 = arith.constant 0 : index
    %30 = vector.load %arg6[%c7, %c0_13] : memref<12x128xbf16, #tpu.memory_space<vmem>>, vector<4x128xbf16>
    tpu.vector_store %arg6[%c7, %c0_13], %29 {strides = array<i32>} : memref<12x128xbf16, #tpu.memory_space<vmem>>, vector<4x128xbf16>,
    %c11 = arith.constant 11 : index
    %c0_14 = arith.constant 0 : index
    %31 = vector.load %arg6[%c11, %c0_14] : memref<12x128xbf16, #tpu.memory_space<vmem>>, vector<1x128xbf16>
    tpu.vector_store %arg6[%c11, %c0_14], %9 {strides = array<i32>} : memref<12x128xbf16, #tpu.memory_space<vmem>>, vector<1x128xbf16>,
    %c0_15 = arith.constant 0 : index
    %c0_16 = arith.constant 0 : index
    %32 = vector.load %arg6[%c0_15, %c0_16] : memref<12x128xbf16, #tpu.memory_space<vmem>>, vector<12x128xbf16>
    %c0_17 = arith.constant 0 : index
    %c0_18 = arith.constant 0 : index
    %33 = vector.load %arg3[%c0_17, %c0_18] : memref<128x384xbf16, #tpu.memory_space<vmem>>, vector<128x384xbf16>
    %cst_19 = arith.constant dense<0.000000e+00> : vector<12x384xf32>
    %34 = tpu.matmul %32, %33, %cst_19 {dimension_numbers = #tpu.dot_dimension_numbers<[1], [0], [0], [1], [0, 0, 1, 1], [], []>} : vector<12x128xbf16>, vector<128x384xbf16>, vector<12x384xf32> -> vector<12x384xf32>
    %35 = vector.extract_strided_slice %34 {offsets = [0, 0], sizes = [12, 128], strides = [1, 1]} : vector<12x384xf32> to vector<12x128xf32>
    %36 = vector.extract_strided_slice %34 {offsets = [0, 128], sizes = [12, 128], strides = [1, 1]} : vector<12x384xf32> to vector<12x128xf32>
    %37 = vector.extract_strided_slice %34 {offsets = [0, 256], sizes = [12, 128], strides = [1, 1]} : vector<12x384xf32> to vector<12x128xf32>
    %38 = vector.extract_strided_slice %35 {offsets = [0, 0], sizes = [4, 128], strides = [1, 1]} : vector<12x128xf32> to vector<4x128xf32>
    %39 = vector.extract_strided_slice %36 {offsets = [1, 0], sizes = [4, 128], strides = [1, 1]} : vector<12x128xf32> to vector<4x128xf32>
    %40 = arith.addf %38, %39 : vector<4x128xf32>
    %41 = vector.extract_strided_slice %37 {offsets = [2, 0], sizes = [4, 128], strides = [1, 1]} : vector<12x128xf32> to vector<4x128xf32>
    %42 = arith.addf %40, %41 : vector<4x128xf32>
    %43 = vector.extract_strided_slice %8 {offsets = [0, 0], sizes = [4, 128], strides = [1, 1]} : vector<10x128xf32> to vector<4x128xf32>
    %44 = arith.addf %42, %43 : vector<4x128xf32>
    %45 = vector.broadcast %2 : vector<1x128xf32> to vector<4x128xf32>
    %46 = arith.addf %44, %45 : vector<4x128xf32>
    %cst_20 = arith.constant 0.000000e+00 : f32
    %47 = vector.broadcast %cst_20 : f32 to vector<4x128xf32>
    %48 = arith.maximumf %46, %47 : vector<4x128xf32>
    %49 = arith.truncf %48 : vector<4x128xf32> to vector<4x128xbf16>
    %c0_21 = arith.constant 0 : index
    %c0_22 = arith.constant 0 : index
    %50 = vector.load %arg5[%c0_21, %c0_22] : memref<8x128xbf16, #tpu.memory_space<vmem>>, vector<4x128xbf16>
    tpu.vector_store %arg5[%c0_21, %c0_22], %49 {strides = array<i32>} : memref<8x128xbf16, #tpu.memory_space<vmem>>, vector<4x128xbf16>,
    %51 = vector.extract_strided_slice %35 {offsets = [6, 0], sizes = [4, 128], strides = [1, 1]} : vector<12x128xf32> to vector<4x128xf32>
    %52 = vector.extract_strided_slice %36 {offsets = [7, 0], sizes = [4, 128], strides = [1, 1]} : vector<12x128xf32> to vector<4x128xf32>
    %53 = arith.addf %51, %52 : vector<4x128xf32>
    %54 = vector.extract_strided_slice %37 {offsets = [8, 0], sizes = [4, 128], strides = [1, 1]} : vector<12x128xf32> to vector<4x128xf32>
    %55 = arith.addf %53, %54 : vector<4x128xf32>
    %56 = vector.extract_strided_slice %8 {offsets = [5, 0], sizes = [4, 128], strides = [1, 1]} : vector<10x128xf32> to vector<4x128xf32>
    %57 = arith.addf %55, %56 : vector<4x128xf32>
    %58 = vector.broadcast %2 : vector<1x128xf32> to vector<4x128xf32>
    %59 = arith.addf %57, %58 : vector<4x128xf32>
    %cst_23 = arith.constant 0.000000e+00 : f32
    %60 = vector.broadcast %cst_23 : f32 to vector<4x128xf32>
    %61 = arith.maximumf %59, %60 : vector<4x128xf32>
    %62 = arith.truncf %61 : vector<4x128xf32> to vector<4x128xbf16>
    %c4 = arith.constant 4 : index
    %c0_24 = arith.constant 0 : index
    %63 = vector.load %arg5[%c4, %c0_24] : memref<8x128xbf16, #tpu.memory_space<vmem>>, vector<4x128xbf16>
    tpu.vector_store %arg5[%c4, %c0_24], %62 {strides = array<i32>} : memref<8x128xbf16, #tpu.memory_space<vmem>>, vector<4x128xbf16>,
    return
  }
  func.func @transform_0(%arg0: i32) -> (i32, i32) {
    %c0_i32 = arith.constant 0 : i32
    %c0_i32_0 = arith.constant 0 : i32
    %c0_i32_1 = arith.constant 0 : i32
    return %c0_i32, %c0_i32_0 : i32, i32
  }
  func.func @transform_1(%arg0: i32) -> (i32, i32) {
    %c0_i32 = arith.constant 0 : i32
    %c0_i32_0 = arith.constant 0 : i32
    %c0_i32_1 = arith.constant 0 : i32
    return %c0_i32, %c0_i32_0 : i32, i32
  }
  func.func @transform_2(%arg0: i32) -> (i32, i32) {
    %c0_i32 = arith.constant 0 : i32
    %c0_i32_0 = arith.constant 0 : i32
    %c0_i32_1 = arith.constant 0 : i32
    return %c0_i32, %c0_i32_0 : i32, i32
  }
  func.func @transform_3(%arg0: i32) -> (i32, i32) {
    %c0_i32 = arith.constant 0 : i32
    %c0_i32_0 = arith.constant 0 : i32
    %c0_i32_1 = arith.constant 0 : i32
    return %c0_i32, %c0_i32_0 : i32, i32
  }
  func.func @transform_4(%arg0: i32) -> (i32, i32) {
    %c0_i32 = arith.constant 0 : i32
    %c0_i32_0 = arith.constant 0 : i32
    %c0_i32_1 = arith.constant 0 : i32
    return %c0_i32, %c0_i32_0 : i32, i32
  }
}

module attributes {stable_mosaic.version = 11 : i64} {
  func.func @_resblock_kernel(%arg0: i32, %arg1: memref<6x256xbf16, #tpu.memory_space<vmem>>, %arg2: memref<256x384xbf16, #tpu.memory_space<vmem>>, %arg3: memref<128x384xbf16, #tpu.memory_space<vmem>>, %arg4: memref<2x128xf32, #tpu.memory_space<vmem>>, %arg5: memref<4x128xbf16, #tpu.memory_space<vmem>>, %arg6: memref<8x128xbf16, #tpu.memory_space<vmem>>) attributes {dimension_semantics = [#tpu.dimension_semantics<arbitrary>], iteration_bounds = array<i64: 1>, scalar_prefetch = 0 : i64, scratch_operands = 1 : i64, tpu.core_type = #tpu.core_type<tc>, window_params = [{pipeline_mode = #tpu.pipeline_mode<synchronous>, transform_indices = @transform_0, window_bounds = array<i64: 6, 256>}, {pipeline_mode = #tpu.pipeline_mode<synchronous>, transform_indices = @transform_1, window_bounds = array<i64: 256, 384>}, {pipeline_mode = #tpu.pipeline_mode<synchronous>, transform_indices = @transform_2, window_bounds = array<i64: 128, 384>}, {pipeline_mode = #tpu.pipeline_mode<synchronous>, transform_indices = @transform_3, window_bounds = array<i64: 2, 128>}, {pipeline_mode = #tpu.pipeline_mode<synchronous>, transform_indices = @transform_4, window_bounds = array<i64: 4, 128>}]} {
    %c0 = arith.constant 0 : index
    %c0_0 = arith.constant 0 : index
    %0 = vector.load %arg4[%c0, %c0_0] : memref<2x128xf32, #tpu.memory_space<vmem>>, vector<2x128xf32>
    %1 = vector.extract_strided_slice %0 {offsets = [0, 0], sizes = [1, 128], strides = [1, 1]} : vector<2x128xf32> to vector<1x128xf32>
    %2 = vector.extract_strided_slice %0 {offsets = [1, 0], sizes = [1, 128], strides = [1, 1]} : vector<2x128xf32> to vector<1x128xf32>
    %c0_1 = arith.constant 0 : index
    %c0_2 = arith.constant 0 : index
    %3 = vector.load %arg1[%c0_1, %c0_2] : memref<6x256xbf16, #tpu.memory_space<vmem>>, vector<6x256xbf16>
    %c0_3 = arith.constant 0 : index
    %c0_4 = arith.constant 0 : index
    %4 = vector.load %arg2[%c0_3, %c0_4] : memref<256x384xbf16, #tpu.memory_space<vmem>>, vector<256x384xbf16>
    %cst = arith.constant dense<0.000000e+00> : vector<6x384xf32>
    %5 = tpu.matmul %3, %4, %cst {dimension_numbers = #tpu.dot_dimension_numbers<[1], [0], [0], [1], [0, 0, 1, 1], [], []>} : vector<6x256xbf16>, vector<256x384xbf16>, vector<6x384xf32> -> vector<6x384xf32>
    %6 = vector.extract_strided_slice %5 {offsets = [0, 0], sizes = [6, 128], strides = [1, 1]} : vector<6x384xf32> to vector<6x128xf32>
    %7 = vector.extract_strided_slice %5 {offsets = [0, 128], sizes = [6, 128], strides = [1, 1]} : vector<6x384xf32> to vector<6x128xf32>
    %8 = vector.extract_strided_slice %5 {offsets = [0, 256], sizes = [6, 128], strides = [1, 1]} : vector<6x384xf32> to vector<6x128xf32>
    %cst_5 = arith.constant 0.000000e+00 : bf16
    %9 = vector.broadcast %cst_5 : bf16 to vector<1x128xbf16>
    %10 = vector.extract_strided_slice %6 {offsets = [0, 0], sizes = [2, 128], strides = [1, 1]} : vector<6x128xf32> to vector<2x128xf32>
    %11 = vector.extract_strided_slice %7 {offsets = [1, 0], sizes = [2, 128], strides = [1, 1]} : vector<6x128xf32> to vector<2x128xf32>
    %12 = arith.addf %10, %11 : vector<2x128xf32>
    %13 = vector.broadcast %1 : vector<1x128xf32> to vector<2x128xf32>
    %14 = arith.addf %12, %13 : vector<2x128xf32>
    %cst_6 = arith.constant 0.000000e+00 : f32
    %15 = vector.broadcast %cst_6 : f32 to vector<2x128xf32>
    %16 = arith.maximumf %14, %15 : vector<2x128xf32>
    %c0_7 = arith.constant 0 : index
    %c0_8 = arith.constant 0 : index
    %17 = vector.load %arg6[%c0_7, %c0_8] : memref<8x128xbf16, #tpu.memory_space<vmem>>, vector<1x128xbf16>
    tpu.vector_store %arg6[%c0_7, %c0_8], %9 {strides = array<i32>} : memref<8x128xbf16, #tpu.memory_space<vmem>>, vector<1x128xbf16>,
    %18 = arith.truncf %16 : vector<2x128xf32> to vector<2x128xbf16>
    %c1 = arith.constant 1 : index
    %c0_9 = arith.constant 0 : index
    %19 = vector.load %arg6[%c1, %c0_9] : memref<8x128xbf16, #tpu.memory_space<vmem>>, vector<2x128xbf16>
    tpu.vector_store %arg6[%c1, %c0_9], %18 {strides = array<i32>} : memref<8x128xbf16, #tpu.memory_space<vmem>>, vector<2x128xbf16>,
    %c3 = arith.constant 3 : index
    %c0_10 = arith.constant 0 : index
    %20 = vector.load %arg6[%c3, %c0_10] : memref<8x128xbf16, #tpu.memory_space<vmem>>, vector<1x128xbf16>
    tpu.vector_store %arg6[%c3, %c0_10], %9 {strides = array<i32>} : memref<8x128xbf16, #tpu.memory_space<vmem>>, vector<1x128xbf16>,
    %21 = vector.extract_strided_slice %6 {offsets = [3, 0], sizes = [2, 128], strides = [1, 1]} : vector<6x128xf32> to vector<2x128xf32>
    %22 = vector.extract_strided_slice %7 {offsets = [4, 0], sizes = [2, 128], strides = [1, 1]} : vector<6x128xf32> to vector<2x128xf32>
    %23 = arith.addf %21, %22 : vector<2x128xf32>
    %24 = vector.broadcast %1 : vector<1x128xf32> to vector<2x128xf32>
    %25 = arith.addf %23, %24 : vector<2x128xf32>
    %cst_11 = arith.constant 0.000000e+00 : f32
    %26 = vector.broadcast %cst_11 : f32 to vector<2x128xf32>
    %27 = arith.maximumf %25, %26 : vector<2x128xf32>
    %c4 = arith.constant 4 : index
    %c0_12 = arith.constant 0 : index
    %28 = vector.load %arg6[%c4, %c0_12] : memref<8x128xbf16, #tpu.memory_space<vmem>>, vector<1x128xbf16>
    tpu.vector_store %arg6[%c4, %c0_12], %9 {strides = array<i32>} : memref<8x128xbf16, #tpu.memory_space<vmem>>, vector<1x128xbf16>,
    %29 = arith.truncf %27 : vector<2x128xf32> to vector<2x128xbf16>
    %c5 = arith.constant 5 : index
    %c0_13 = arith.constant 0 : index
    %30 = vector.load %arg6[%c5, %c0_13] : memref<8x128xbf16, #tpu.memory_space<vmem>>, vector<2x128xbf16>
    tpu.vector_store %arg6[%c5, %c0_13], %29 {strides = array<i32>} : memref<8x128xbf16, #tpu.memory_space<vmem>>, vector<2x128xbf16>,
    %c7 = arith.constant 7 : index
    %c0_14 = arith.constant 0 : index
    %31 = vector.load %arg6[%c7, %c0_14] : memref<8x128xbf16, #tpu.memory_space<vmem>>, vector<1x128xbf16>
    tpu.vector_store %arg6[%c7, %c0_14], %9 {strides = array<i32>} : memref<8x128xbf16, #tpu.memory_space<vmem>>, vector<1x128xbf16>,
    %c0_15 = arith.constant 0 : index
    %c0_16 = arith.constant 0 : index
    %32 = vector.load %arg6[%c0_15, %c0_16] : memref<8x128xbf16, #tpu.memory_space<vmem>>, vector<8x128xbf16>
    %c0_17 = arith.constant 0 : index
    %c0_18 = arith.constant 0 : index
    %33 = vector.load %arg3[%c0_17, %c0_18] : memref<128x384xbf16, #tpu.memory_space<vmem>>, vector<128x384xbf16>
    %cst_19 = arith.constant dense<0.000000e+00> : vector<8x384xf32>
    %34 = tpu.matmul %32, %33, %cst_19 {dimension_numbers = #tpu.dot_dimension_numbers<[1], [0], [0], [1], [0, 0, 1, 1], [], []>} : vector<8x128xbf16>, vector<128x384xbf16>, vector<8x384xf32> -> vector<8x384xf32>
    %35 = vector.extract_strided_slice %34 {offsets = [0, 0], sizes = [8, 128], strides = [1, 1]} : vector<8x384xf32> to vector<8x128xf32>
    %36 = vector.extract_strided_slice %34 {offsets = [0, 128], sizes = [8, 128], strides = [1, 1]} : vector<8x384xf32> to vector<8x128xf32>
    %37 = vector.extract_strided_slice %34 {offsets = [0, 256], sizes = [8, 128], strides = [1, 1]} : vector<8x384xf32> to vector<8x128xf32>
    %38 = vector.extract_strided_slice %35 {offsets = [0, 0], sizes = [2, 128], strides = [1, 1]} : vector<8x128xf32> to vector<2x128xf32>
    %39 = vector.extract_strided_slice %36 {offsets = [1, 0], sizes = [2, 128], strides = [1, 1]} : vector<8x128xf32> to vector<2x128xf32>
    %40 = arith.addf %38, %39 : vector<2x128xf32>
    %41 = vector.extract_strided_slice %37 {offsets = [2, 0], sizes = [2, 128], strides = [1, 1]} : vector<8x128xf32> to vector<2x128xf32>
    %42 = arith.addf %40, %41 : vector<2x128xf32>
    %43 = vector.extract_strided_slice %8 {offsets = [0, 0], sizes = [2, 128], strides = [1, 1]} : vector<6x128xf32> to vector<2x128xf32>
    %44 = arith.addf %42, %43 : vector<2x128xf32>
    %45 = vector.broadcast %2 : vector<1x128xf32> to vector<2x128xf32>
    %46 = arith.addf %44, %45 : vector<2x128xf32>
    %cst_20 = arith.constant 0.000000e+00 : f32
    %47 = vector.broadcast %cst_20 : f32 to vector<2x128xf32>
    %48 = arith.maximumf %46, %47 : vector<2x128xf32>
    %49 = arith.truncf %48 : vector<2x128xf32> to vector<2x128xbf16>
    %c0_21 = arith.constant 0 : index
    %c0_22 = arith.constant 0 : index
    %50 = vector.load %arg5[%c0_21, %c0_22] : memref<4x128xbf16, #tpu.memory_space<vmem>>, vector<2x128xbf16>
    tpu.vector_store %arg5[%c0_21, %c0_22], %49 {strides = array<i32>} : memref<4x128xbf16, #tpu.memory_space<vmem>>, vector<2x128xbf16>,
    %51 = vector.extract_strided_slice %35 {offsets = [4, 0], sizes = [2, 128], strides = [1, 1]} : vector<8x128xf32> to vector<2x128xf32>
    %52 = vector.extract_strided_slice %36 {offsets = [5, 0], sizes = [2, 128], strides = [1, 1]} : vector<8x128xf32> to vector<2x128xf32>
    %53 = arith.addf %51, %52 : vector<2x128xf32>
    %54 = vector.extract_strided_slice %37 {offsets = [6, 0], sizes = [2, 128], strides = [1, 1]} : vector<8x128xf32> to vector<2x128xf32>
    %55 = arith.addf %53, %54 : vector<2x128xf32>
    %56 = vector.extract_strided_slice %8 {offsets = [3, 0], sizes = [2, 128], strides = [1, 1]} : vector<6x128xf32> to vector<2x128xf32>
    %57 = arith.addf %55, %56 : vector<2x128xf32>
    %58 = vector.broadcast %2 : vector<1x128xf32> to vector<2x128xf32>
    %59 = arith.addf %57, %58 : vector<2x128xf32>
    %cst_23 = arith.constant 0.000000e+00 : f32
    %60 = vector.broadcast %cst_23 : f32 to vector<2x128xf32>
    %61 = arith.maximumf %59, %60 : vector<2x128xf32>
    %62 = arith.truncf %61 : vector<2x128xf32> to vector<2x128xbf16>
    %c2 = arith.constant 2 : index
    %c0_24 = arith.constant 0 : index
    %63 = vector.load %arg5[%c2, %c0_24] : memref<4x128xbf16, #tpu.memory_space<vmem>>, vector<2x128xbf16>
    tpu.vector_store %arg5[%c2, %c0_24], %62 {strides = array<i32>} : memref<4x128xbf16, #tpu.memory_space<vmem>>, vector<2x128xbf16>,
    return
  }
  func.func @transform_0(%arg0: i32) -> (i32, i32) {
    %c0_i32 = arith.constant 0 : i32
    %c0_i32_0 = arith.constant 0 : i32
    %c0_i32_1 = arith.constant 0 : i32
    return %c0_i32, %c0_i32_0 : i32, i32
  }
  func.func @transform_1(%arg0: i32) -> (i32, i32) {
    %c0_i32 = arith.constant 0 : i32
    %c0_i32_0 = arith.constant 0 : i32
    %c0_i32_1 = arith.constant 0 : i32
    return %c0_i32, %c0_i32_0 : i32, i32
  }
  func.func @transform_2(%arg0: i32) -> (i32, i32) {
    %c0_i32 = arith.constant 0 : i32
    %c0_i32_0 = arith.constant 0 : i32
    %c0_i32_1 = arith.constant 0 : i32
    return %c0_i32, %c0_i32_0 : i32, i32
  }
  func.func @transform_3(%arg0: i32) -> (i32, i32) {
    %c0_i32 = arith.constant 0 : i32
    %c0_i32_0 = arith.constant 0 : i32
    %c0_i32_1 = arith.constant 0 : i32
    return %c0_i32, %c0_i32_0 : i32, i32
  }
  func.func @transform_4(%arg0: i32) -> (i32, i32) {
    %c0_i32 = arith.constant 0 : i32
    %c0_i32_0 = arith.constant 0 : i32
    %c0_i32_1 = arith.constant 0 : i32
    return %c0_i32, %c0_i32_0 : i32, i32
  }
}

module attributes {stable_mosaic.version = 11 : i64} {
  func.func @_resblock_kernel(%arg0: i32, %arg1: memref<4x256xbf16, #tpu.memory_space<vmem>>, %arg2: memref<256x768xbf16, #tpu.memory_space<vmem>>, %arg3: memref<256x768xbf16, #tpu.memory_space<vmem>>, %arg4: memref<2x256xf32, #tpu.memory_space<vmem>>, %arg5: memref<2x256xbf16, #tpu.memory_space<vmem>>, %arg6: memref<6x256xbf16, #tpu.memory_space<vmem>>) attributes {dimension_semantics = [#tpu.dimension_semantics<arbitrary>], iteration_bounds = array<i64: 1>, scalar_prefetch = 0 : i64, scratch_operands = 1 : i64, tpu.core_type = #tpu.core_type<tc>, window_params = [{pipeline_mode = #tpu.pipeline_mode<synchronous>, transform_indices = @transform_0, window_bounds = array<i64: 4, 256>}, {pipeline_mode = #tpu.pipeline_mode<synchronous>, transform_indices = @transform_1, window_bounds = array<i64: 256, 768>}, {pipeline_mode = #tpu.pipeline_mode<synchronous>, transform_indices = @transform_2, window_bounds = array<i64: 256, 768>}, {pipeline_mode = #tpu.pipeline_mode<synchronous>, transform_indices = @transform_3, window_bounds = array<i64: 2, 256>}, {pipeline_mode = #tpu.pipeline_mode<synchronous>, transform_indices = @transform_4, window_bounds = array<i64: 2, 256>}]} {
    %c0 = arith.constant 0 : index
    %c0_0 = arith.constant 0 : index
    %0 = vector.load %arg4[%c0, %c0_0] : memref<2x256xf32, #tpu.memory_space<vmem>>, vector<2x256xf32>
    %1 = vector.extract_strided_slice %0 {offsets = [0, 0], sizes = [1, 256], strides = [1, 1]} : vector<2x256xf32> to vector<1x256xf32>
    %2 = vector.extract_strided_slice %0 {offsets = [1, 0], sizes = [1, 256], strides = [1, 1]} : vector<2x256xf32> to vector<1x256xf32>
    %c0_1 = arith.constant 0 : index
    %c0_2 = arith.constant 0 : index
    %3 = vector.load %arg1[%c0_1, %c0_2] : memref<4x256xbf16, #tpu.memory_space<vmem>>, vector<4x256xbf16>
    %c0_3 = arith.constant 0 : index
    %c0_4 = arith.constant 0 : index
    %4 = vector.load %arg2[%c0_3, %c0_4] : memref<256x768xbf16, #tpu.memory_space<vmem>>, vector<256x768xbf16>
    %cst = arith.constant dense<0.000000e+00> : vector<4x768xf32>
    %5 = tpu.matmul %3, %4, %cst {dimension_numbers = #tpu.dot_dimension_numbers<[1], [0], [0], [1], [0, 0, 1, 1], [], []>} : vector<4x256xbf16>, vector<256x768xbf16>, vector<4x768xf32> -> vector<4x768xf32>
    %6 = vector.extract_strided_slice %5 {offsets = [0, 0], sizes = [4, 256], strides = [1, 1]} : vector<4x768xf32> to vector<4x256xf32>
    %7 = vector.extract_strided_slice %5 {offsets = [0, 256], sizes = [4, 256], strides = [1, 1]} : vector<4x768xf32> to vector<4x256xf32>
    %8 = vector.extract_strided_slice %5 {offsets = [0, 512], sizes = [4, 256], strides = [1, 1]} : vector<4x768xf32> to vector<4x256xf32>
    %cst_5 = arith.constant 0.000000e+00 : bf16
    %9 = vector.broadcast %cst_5 : bf16 to vector<1x256xbf16>
    %10 = vector.extract_strided_slice %6 {offsets = [0, 0], sizes = [1, 256], strides = [1, 1]} : vector<4x256xf32> to vector<1x256xf32>
    %11 = vector.extract_strided_slice %7 {offsets = [1, 0], sizes = [1, 256], strides = [1, 1]} : vector<4x256xf32> to vector<1x256xf32>
    %12 = arith.addf %10, %11 : vector<1x256xf32>
    %13 = arith.addf %12, %1 : vector<1x256xf32>
    %cst_6 = arith.constant 0.000000e+00 : f32
    %14 = vector.broadcast %cst_6 : f32 to vector<1x256xf32>
    %15 = arith.maximumf %13, %14 : vector<1x256xf32>
    %c0_7 = arith.constant 0 : index
    %c0_8 = arith.constant 0 : index
    %16 = vector.load %arg6[%c0_7, %c0_8] : memref<6x256xbf16, #tpu.memory_space<vmem>>, vector<1x256xbf16>
    tpu.vector_store %arg6[%c0_7, %c0_8], %9 {strides = array<i32>} : memref<6x256xbf16, #tpu.memory_space<vmem>>, vector<1x256xbf16>,
    %17 = arith.truncf %15 : vector<1x256xf32> to vector<1x256xbf16>
    %c1 = arith.constant 1 : index
    %c0_9 = arith.constant 0 : index
    %18 = vector.load %arg6[%c1, %c0_9] : memref<6x256xbf16, #tpu.memory_space<vmem>>, vector<1x256xbf16>
    tpu.vector_store %arg6[%c1, %c0_9], %17 {strides = array<i32>} : memref<6x256xbf16, #tpu.memory_space<vmem>>, vector<1x256xbf16>,
    %c2 = arith.constant 2 : index
    %c0_10 = arith.constant 0 : index
    %19 = vector.load %arg6[%c2, %c0_10] : memref<6x256xbf16, #tpu.memory_space<vmem>>, vector<1x256xbf16>
    tpu.vector_store %arg6[%c2, %c0_10], %9 {strides = array<i32>} : memref<6x256xbf16, #tpu.memory_space<vmem>>, vector<1x256xbf16>,
    %20 = vector.extract_strided_slice %6 {offsets = [2, 0], sizes = [1, 256], strides = [1, 1]} : vector<4x256xf32> to vector<1x256xf32>
    %21 = vector.extract_strided_slice %7 {offsets = [3, 0], sizes = [1, 256], strides = [1, 1]} : vector<4x256xf32> to vector<1x256xf32>
    %22 = arith.addf %20, %21 : vector<1x256xf32>
    %23 = arith.addf %22, %1 : vector<1x256xf32>
    %cst_11 = arith.constant 0.000000e+00 : f32
    %24 = vector.broadcast %cst_11 : f32 to vector<1x256xf32>
    %25 = arith.maximumf %23, %24 : vector<1x256xf32>
    %c3 = arith.constant 3 : index
    %c0_12 = arith.constant 0 : index
    %26 = vector.load %arg6[%c3, %c0_12] : memref<6x256xbf16, #tpu.memory_space<vmem>>, vector<1x256xbf16>
    tpu.vector_store %arg6[%c3, %c0_12], %9 {strides = array<i32>} : memref<6x256xbf16, #tpu.memory_space<vmem>>, vector<1x256xbf16>,
    %27 = arith.truncf %25 : vector<1x256xf32> to vector<1x256xbf16>
    %c4 = arith.constant 4 : index
    %c0_13 = arith.constant 0 : index
    %28 = vector.load %arg6[%c4, %c0_13] : memref<6x256xbf16, #tpu.memory_space<vmem>>, vector<1x256xbf16>
    tpu.vector_store %arg6[%c4, %c0_13], %27 {strides = array<i32>} : memref<6x256xbf16, #tpu.memory_space<vmem>>, vector<1x256xbf16>,
    %c5 = arith.constant 5 : index
    %c0_14 = arith.constant 0 : index
    %29 = vector.load %arg6[%c5, %c0_14] : memref<6x256xbf16, #tpu.memory_space<vmem>>, vector<1x256xbf16>
    tpu.vector_store %arg6[%c5, %c0_14], %9 {strides = array<i32>} : memref<6x256xbf16, #tpu.memory_space<vmem>>, vector<1x256xbf16>,
    %c0_15 = arith.constant 0 : index
    %c0_16 = arith.constant 0 : index
    %30 = vector.load %arg6[%c0_15, %c0_16] : memref<6x256xbf16, #tpu.memory_space<vmem>>, vector<6x256xbf16>
    %c0_17 = arith.constant 0 : index
    %c0_18 = arith.constant 0 : index
    %31 = vector.load %arg3[%c0_17, %c0_18] : memref<256x768xbf16, #tpu.memory_space<vmem>>, vector<256x768xbf16>
    %cst_19 = arith.constant dense<0.000000e+00> : vector<6x768xf32>
    %32 = tpu.matmul %30, %31, %cst_19 {dimension_numbers = #tpu.dot_dimension_numbers<[1], [0], [0], [1], [0, 0, 1, 1], [], []>} : vector<6x256xbf16>, vector<256x768xbf16>, vector<6x768xf32> -> vector<6x768xf32>
    %33 = vector.extract_strided_slice %32 {offsets = [0, 0], sizes = [6, 256], strides = [1, 1]} : vector<6x768xf32> to vector<6x256xf32>
    %34 = vector.extract_strided_slice %32 {offsets = [0, 256], sizes = [6, 256], strides = [1, 1]} : vector<6x768xf32> to vector<6x256xf32>
    %35 = vector.extract_strided_slice %32 {offsets = [0, 512], sizes = [6, 256], strides = [1, 1]} : vector<6x768xf32> to vector<6x256xf32>
    %36 = vector.extract_strided_slice %33 {offsets = [0, 0], sizes = [1, 256], strides = [1, 1]} : vector<6x256xf32> to vector<1x256xf32>
    %37 = vector.extract_strided_slice %34 {offsets = [1, 0], sizes = [1, 256], strides = [1, 1]} : vector<6x256xf32> to vector<1x256xf32>
    %38 = arith.addf %36, %37 : vector<1x256xf32>
    %39 = vector.extract_strided_slice %35 {offsets = [2, 0], sizes = [1, 256], strides = [1, 1]} : vector<6x256xf32> to vector<1x256xf32>
    %40 = arith.addf %38, %39 : vector<1x256xf32>
    %41 = vector.extract_strided_slice %8 {offsets = [0, 0], sizes = [1, 256], strides = [1, 1]} : vector<4x256xf32> to vector<1x256xf32>
    %42 = arith.addf %40, %41 : vector<1x256xf32>
    %43 = arith.addf %42, %2 : vector<1x256xf32>
    %cst_20 = arith.constant 0.000000e+00 : f32
    %44 = vector.broadcast %cst_20 : f32 to vector<1x256xf32>
    %45 = arith.maximumf %43, %44 : vector<1x256xf32>
    %46 = arith.truncf %45 : vector<1x256xf32> to vector<1x256xbf16>
    %c0_21 = arith.constant 0 : index
    %c0_22 = arith.constant 0 : index
    %47 = vector.load %arg5[%c0_21, %c0_22] : memref<2x256xbf16, #tpu.memory_space<vmem>>, vector<1x256xbf16>
    tpu.vector_store %arg5[%c0_21, %c0_22], %46 {strides = array<i32>} : memref<2x256xbf16, #tpu.memory_space<vmem>>, vector<1x256xbf16>,
    %48 = vector.extract_strided_slice %33 {offsets = [3, 0], sizes = [1, 256], strides = [1, 1]} : vector<6x256xf32> to vector<1x256xf32>
    %49 = vector.extract_strided_slice %34 {offsets = [4, 0], sizes = [1, 256], strides = [1, 1]} : vector<6x256xf32> to vector<1x256xf32>
    %50 = arith.addf %48, %49 : vector<1x256xf32>
    %51 = vector.extract_strided_slice %35 {offsets = [5, 0], sizes = [1, 256], strides = [1, 1]} : vector<6x256xf32> to vector<1x256xf32>
    %52 = arith.addf %50, %51 : vector<1x256xf32>
    %53 = vector.extract_strided_slice %8 {offsets = [2, 0], sizes = [1, 256], strides = [1, 1]} : vector<4x256xf32> to vector<1x256xf32>
    %54 = arith.addf %52, %53 : vector<1x256xf32>
    %55 = arith.addf %54, %2 : vector<1x256xf32>
    %cst_23 = arith.constant 0.000000e+00 : f32
    %56 = vector.broadcast %cst_23 : f32 to vector<1x256xf32>
    %57 = arith.maximumf %55, %56 : vector<1x256xf32>
    %58 = arith.truncf %57 : vector<1x256xf32> to vector<1x256xbf16>
    %c1_24 = arith.constant 1 : index
    %c0_25 = arith.constant 0 : index
    %59 = vector.load %arg5[%c1_24, %c0_25] : memref<2x256xbf16, #tpu.memory_space<vmem>>, vector<1x256xbf16>
    tpu.vector_store %arg5[%c1_24, %c0_25], %58 {strides = array<i32>} : memref<2x256xbf16, #tpu.memory_space<vmem>>, vector<1x256xbf16>,
    return
  }
  func.func @transform_0(%arg0: i32) -> (i32, i32) {
    %c0_i32 = arith.constant 0 : i32
    %c0_i32_0 = arith.constant 0 : i32
    %c0_i32_1 = arith.constant 0 : i32
    return %c0_i32, %c0_i32_0 : i32, i32
  }
  func.func @transform_1(%arg0: i32) -> (i32, i32) {
    %c0_i32 = arith.constant 0 : i32
    %c0_i32_0 = arith.constant 0 : i32
    %c0_i32_1 = arith.constant 0 : i32
    return %c0_i32, %c0_i32_0 : i32, i32
  }
  func.func @transform_2(%arg0: i32) -> (i32, i32) {
    %c0_i32 = arith.constant 0 : i32
    %c0_i32_0 = arith.constant 0 : i32
    %c0_i32_1 = arith.constant 0 : i32
    return %c0_i32, %c0_i32_0 : i32, i32
  }
  func.func @transform_3(%arg0: i32) -> (i32, i32) {
    %c0_i32 = arith.constant 0 : i32
    %c0_i32_0 = arith.constant 0 : i32
    %c0_i32_1 = arith.constant 0 : i32
    return %c0_i32, %c0_i32_0 : i32, i32
  }
  func.func @transform_4(%arg0: i32) -> (i32, i32) {
    %c0_i32 = arith.constant 0 : i32
    %c0_i32_0 = arith.constant 0 : i32
    %c0_i32_1 = arith.constant 0 : i32
    return %c0_i32, %c0_i32_0 : i32, i32
  }
}

module attributes {stable_mosaic.version = 11 : i64} {
  func.func @_resblock_kernel(%arg0: i32, %arg1: memref<4x512xbf16, #tpu.memory_space<vmem>>, %arg2: memref<512x768xbf16, #tpu.memory_space<vmem>>, %arg3: memref<256x768xbf16, #tpu.memory_space<vmem>>, %arg4: memref<2x256xf32, #tpu.memory_space<vmem>>, %arg5: memref<256x128xf32, #tpu.memory_space<vmem>>, %arg6: memref<1x128xf32, #tpu.memory_space<vmem>>, %arg7: memref<2x128xf32, #tpu.memory_space<vmem>>, %arg8: memref<6x256xbf16, #tpu.memory_space<vmem>>) attributes {dimension_semantics = [#tpu.dimension_semantics<arbitrary>], iteration_bounds = array<i64: 1>, scalar_prefetch = 0 : i64, scratch_operands = 1 : i64, tpu.core_type = #tpu.core_type<tc>, window_params = [{pipeline_mode = #tpu.pipeline_mode<synchronous>, transform_indices = @transform_0, window_bounds = array<i64: 4, 512>}, {pipeline_mode = #tpu.pipeline_mode<synchronous>, transform_indices = @transform_1, window_bounds = array<i64: 512, 768>}, {pipeline_mode = #tpu.pipeline_mode<synchronous>, transform_indices = @transform_2, window_bounds = array<i64: 256, 768>}, {pipeline_mode = #tpu.pipeline_mode<synchronous>, transform_indices = @transform_3, window_bounds = array<i64: 2, 256>}, {pipeline_mode = #tpu.pipeline_mode<synchronous>, transform_indices = @transform_4, window_bounds = array<i64: 256, 128>}, {pipeline_mode = #tpu.pipeline_mode<synchronous>, transform_indices = @transform_5, window_bounds = array<i64: 1, 128>}, {pipeline_mode = #tpu.pipeline_mode<synchronous>, transform_indices = @transform_6, window_bounds = array<i64: 2, 128>}]} {
    %c0 = arith.constant 0 : index
    %c0_0 = arith.constant 0 : index
    %0 = vector.load %arg4[%c0, %c0_0] : memref<2x256xf32, #tpu.memory_space<vmem>>, vector<2x256xf32>
    %1 = vector.extract_strided_slice %0 {offsets = [0, 0], sizes = [1, 256], strides = [1, 1]} : vector<2x256xf32> to vector<1x256xf32>
    %2 = vector.extract_strided_slice %0 {offsets = [1, 0], sizes = [1, 256], strides = [1, 1]} : vector<2x256xf32> to vector<1x256xf32>
    %c0_1 = arith.constant 0 : index
    %c0_2 = arith.constant 0 : index
    %3 = vector.load %arg1[%c0_1, %c0_2] : memref<4x512xbf16, #tpu.memory_space<vmem>>, vector<4x512xbf16>
    %c0_3 = arith.constant 0 : index
    %c0_4 = arith.constant 0 : index
    %4 = vector.load %arg2[%c0_3, %c0_4] : memref<512x768xbf16, #tpu.memory_space<vmem>>, vector<512x768xbf16>
    %cst = arith.constant dense<0.000000e+00> : vector<4x768xf32>
    %5 = tpu.matmul %3, %4, %cst {dimension_numbers = #tpu.dot_dimension_numbers<[1], [0], [0], [1], [0, 0, 1, 1], [], []>} : vector<4x512xbf16>, vector<512x768xbf16>, vector<4x768xf32> -> vector<4x768xf32>
    %6 = vector.extract_strided_slice %5 {offsets = [0, 0], sizes = [4, 256], strides = [1, 1]} : vector<4x768xf32> to vector<4x256xf32>
    %7 = vector.extract_strided_slice %5 {offsets = [0, 256], sizes = [4, 256], strides = [1, 1]} : vector<4x768xf32> to vector<4x256xf32>
    %8 = vector.extract_strided_slice %5 {offsets = [0, 512], sizes = [4, 256], strides = [1, 1]} : vector<4x768xf32> to vector<4x256xf32>
    %cst_5 = arith.constant 0.000000e+00 : bf16
    %9 = vector.broadcast %cst_5 : bf16 to vector<1x256xbf16>
    %10 = vector.extract_strided_slice %6 {offsets = [0, 0], sizes = [1, 256], strides = [1, 1]} : vector<4x256xf32> to vector<1x256xf32>
    %11 = vector.extract_strided_slice %7 {offsets = [1, 0], sizes = [1, 256], strides = [1, 1]} : vector<4x256xf32> to vector<1x256xf32>
    %12 = arith.addf %10, %11 : vector<1x256xf32>
    %13 = arith.addf %12, %1 : vector<1x256xf32>
    %cst_6 = arith.constant 0.000000e+00 : f32
    %14 = vector.broadcast %cst_6 : f32 to vector<1x256xf32>
    %15 = arith.maximumf %13, %14 : vector<1x256xf32>
    %c0_7 = arith.constant 0 : index
    %c0_8 = arith.constant 0 : index
    %16 = vector.load %arg8[%c0_7, %c0_8] : memref<6x256xbf16, #tpu.memory_space<vmem>>, vector<1x256xbf16>
    tpu.vector_store %arg8[%c0_7, %c0_8], %9 {strides = array<i32>} : memref<6x256xbf16, #tpu.memory_space<vmem>>, vector<1x256xbf16>,
    %17 = arith.truncf %15 : vector<1x256xf32> to vector<1x256xbf16>
    %c1 = arith.constant 1 : index
    %c0_9 = arith.constant 0 : index
    %18 = vector.load %arg8[%c1, %c0_9] : memref<6x256xbf16, #tpu.memory_space<vmem>>, vector<1x256xbf16>
    tpu.vector_store %arg8[%c1, %c0_9], %17 {strides = array<i32>} : memref<6x256xbf16, #tpu.memory_space<vmem>>, vector<1x256xbf16>,
    %c2 = arith.constant 2 : index
    %c0_10 = arith.constant 0 : index
    %19 = vector.load %arg8[%c2, %c0_10] : memref<6x256xbf16, #tpu.memory_space<vmem>>, vector<1x256xbf16>
    tpu.vector_store %arg8[%c2, %c0_10], %9 {strides = array<i32>} : memref<6x256xbf16, #tpu.memory_space<vmem>>, vector<1x256xbf16>,
    %20 = vector.extract_strided_slice %6 {offsets = [2, 0], sizes = [1, 256], strides = [1, 1]} : vector<4x256xf32> to vector<1x256xf32>
    %21 = vector.extract_strided_slice %7 {offsets = [3, 0], sizes = [1, 256], strides = [1, 1]} : vector<4x256xf32> to vector<1x256xf32>
    %22 = arith.addf %20, %21 : vector<1x256xf32>
    %23 = arith.addf %22, %1 : vector<1x256xf32>
    %cst_11 = arith.constant 0.000000e+00 : f32
    %24 = vector.broadcast %cst_11 : f32 to vector<1x256xf32>
    %25 = arith.maximumf %23, %24 : vector<1x256xf32>
    %c3 = arith.constant 3 : index
    %c0_12 = arith.constant 0 : index
    %26 = vector.load %arg8[%c3, %c0_12] : memref<6x256xbf16, #tpu.memory_space<vmem>>, vector<1x256xbf16>
    tpu.vector_store %arg8[%c3, %c0_12], %9 {strides = array<i32>} : memref<6x256xbf16, #tpu.memory_space<vmem>>, vector<1x256xbf16>,
    %27 = arith.truncf %25 : vector<1x256xf32> to vector<1x256xbf16>
    %c4 = arith.constant 4 : index
    %c0_13 = arith.constant 0 : index
    %28 = vector.load %arg8[%c4, %c0_13] : memref<6x256xbf16, #tpu.memory_space<vmem>>, vector<1x256xbf16>
    tpu.vector_store %arg8[%c4, %c0_13], %27 {strides = array<i32>} : memref<6x256xbf16, #tpu.memory_space<vmem>>, vector<1x256xbf16>,
    %c5 = arith.constant 5 : index
    %c0_14 = arith.constant 0 : index
    %29 = vector.load %arg8[%c5, %c0_14] : memref<6x256xbf16, #tpu.memory_space<vmem>>, vector<1x256xbf16>
    tpu.vector_store %arg8[%c5, %c0_14], %9 {strides = array<i32>} : memref<6x256xbf16, #tpu.memory_space<vmem>>, vector<1x256xbf16>,
    %c0_15 = arith.constant 0 : index
    %c0_16 = arith.constant 0 : index
    %30 = vector.load %arg8[%c0_15, %c0_16] : memref<6x256xbf16, #tpu.memory_space<vmem>>, vector<6x256xbf16>
    %c0_17 = arith.constant 0 : index
    %c0_18 = arith.constant 0 : index
    %31 = vector.load %arg3[%c0_17, %c0_18] : memref<256x768xbf16, #tpu.memory_space<vmem>>, vector<256x768xbf16>
    %cst_19 = arith.constant dense<0.000000e+00> : vector<6x768xf32>
    %32 = tpu.matmul %30, %31, %cst_19 {dimension_numbers = #tpu.dot_dimension_numbers<[1], [0], [0], [1], [0, 0, 1, 1], [], []>} : vector<6x256xbf16>, vector<256x768xbf16>, vector<6x768xf32> -> vector<6x768xf32>
    %33 = vector.extract_strided_slice %32 {offsets = [0, 0], sizes = [6, 256], strides = [1, 1]} : vector<6x768xf32> to vector<6x256xf32>
    %34 = vector.extract_strided_slice %32 {offsets = [0, 256], sizes = [6, 256], strides = [1, 1]} : vector<6x768xf32> to vector<6x256xf32>
    %35 = vector.extract_strided_slice %32 {offsets = [0, 512], sizes = [6, 256], strides = [1, 1]} : vector<6x768xf32> to vector<6x256xf32>
    %36 = vector.extract_strided_slice %33 {offsets = [0, 0], sizes = [1, 256], strides = [1, 1]} : vector<6x256xf32> to vector<1x256xf32>
    %37 = vector.extract_strided_slice %34 {offsets = [1, 0], sizes = [1, 256], strides = [1, 1]} : vector<6x256xf32> to vector<1x256xf32>
    %38 = arith.addf %36, %37 : vector<1x256xf32>
    %39 = vector.extract_strided_slice %35 {offsets = [2, 0], sizes = [1, 256], strides = [1, 1]} : vector<6x256xf32> to vector<1x256xf32>
    %40 = arith.addf %38, %39 : vector<1x256xf32>
    %41 = vector.extract_strided_slice %8 {offsets = [0, 0], sizes = [1, 256], strides = [1, 1]} : vector<4x256xf32> to vector<1x256xf32>
    %42 = arith.addf %40, %41 : vector<1x256xf32>
    %43 = arith.addf %42, %2 : vector<1x256xf32>
    %cst_20 = arith.constant 0.000000e+00 : f32
    %44 = vector.broadcast %cst_20 : f32 to vector<1x256xf32>
    %45 = arith.maximumf %43, %44 : vector<1x256xf32>
    %cst_21 = arith.constant dense<0.000000e+00> : vector<256xf32>
    %46 = vector.multi_reduction <add>, %45, %cst_21 [0] : vector<1x256xf32> to vector<256xf32>
    %47 = vector.shape_cast %46 : vector<256xf32> to vector<1x256xf32>
    %cst_22 = arith.constant 1.000000e+00 : f32
    %48 = vector.broadcast %cst_22 : f32 to vector<1x256xf32>
    %49 = arith.divf %47, %48 : vector<1x256xf32>
    %50 = vector.extract_strided_slice %33 {offsets = [3, 0], sizes = [1, 256], strides = [1, 1]} : vector<6x256xf32> to vector<1x256xf32>
    %51 = vector.extract_strided_slice %34 {offsets = [4, 0], sizes = [1, 256], strides = [1, 1]} : vector<6x256xf32> to vector<1x256xf32>
    %52 = arith.addf %50, %51 : vector<1x256xf32>
    %53 = vector.extract_strided_slice %35 {offsets = [5, 0], sizes = [1, 256], strides = [1, 1]} : vector<6x256xf32> to vector<1x256xf32>
    %54 = arith.addf %52, %53 : vector<1x256xf32>
    %55 = vector.extract_strided_slice %8 {offsets = [2, 0], sizes = [1, 256], strides = [1, 1]} : vector<4x256xf32> to vector<1x256xf32>
    %56 = arith.addf %54, %55 : vector<1x256xf32>
    %57 = arith.addf %56, %2 : vector<1x256xf32>
    %cst_23 = arith.constant 0.000000e+00 : f32
    %58 = vector.broadcast %cst_23 : f32 to vector<1x256xf32>
    %59 = arith.maximumf %57, %58 : vector<1x256xf32>
    %cst_24 = arith.constant dense<0.000000e+00> : vector<256xf32>
    %60 = vector.multi_reduction <add>, %59, %cst_24 [0] : vector<1x256xf32> to vector<256xf32>
    %61 = vector.shape_cast %60 : vector<256xf32> to vector<1x256xf32>
    %cst_25 = arith.constant 1.000000e+00 : f32
    %62 = vector.broadcast %cst_25 : f32 to vector<1x256xf32>
    %63 = arith.divf %61, %62 : vector<1x256xf32>
    %64 = tpu.concatenate %49, %63 in 0 : vector<1x256xf32>, vector<1x256xf32> -> vector<2x256xf32>
    %c0_26 = arith.constant 0 : index
    %c0_27 = arith.constant 0 : index
    %65 = vector.load %arg5[%c0_26, %c0_27] : memref<256x128xf32, #tpu.memory_space<vmem>>, vector<256x128xf32>
    %cst_28 = arith.constant dense<0.000000e+00> : vector<2x128xf32>
    %66 = tpu.matmul %64, %65, %cst_28 {dimension_numbers = #tpu.dot_dimension_numbers<[1], [0], [0], [1], [0, 0, 1, 1], [], []>} : vector<2x256xf32>, vector<256x128xf32>, vector<2x128xf32> -> vector<2x128xf32>
    %c0_29 = arith.constant 0 : index
    %c0_30 = arith.constant 0 : index
    %67 = vector.load %arg6[%c0_29, %c0_30] : memref<1x128xf32, #tpu.memory_space<vmem>>, vector<1x128xf32>
    %68 = vector.broadcast %67 : vector<1x128xf32> to vector<2x128xf32>
    %69 = arith.addf %66, %68 : vector<2x128xf32>
    %70 = arith.mulf %69, %69 : vector<2x128xf32>
    %cst_31 = arith.constant dense<0.000000e+00> : vector<2xf32>
    %71 = vector.multi_reduction <add>, %70, %cst_31 [1] : vector<2x128xf32> to vector<2xf32>
    %72 = vector.shape_cast %71 : vector<2xf32> to vector<2x1xf32>
    %cst_32 = arith.constant 1.000000e-24 : f32
    %73 = vector.broadcast %cst_32 : f32 to vector<2x1xf32>
    %74 = arith.maximumf %72, %73 : vector<2x1xf32>
    %75 = math.rsqrt %74 : vector<2x1xf32>
    %76 = vector.broadcast %75 : vector<2x1xf32> to vector<2x128xf32>
    %77 = arith.mulf %69, %76 : vector<2x128xf32>
    %c0_33 = arith.constant 0 : index
    %c0_34 = arith.constant 0 : index
    %78 = vector.load %arg7[%c0_33, %c0_34] : memref<2x128xf32, #tpu.memory_space<vmem>>, vector<2x128xf32>
    tpu.vector_store %arg7[%c0_33, %c0_34], %77 {strides = array<i32>} : memref<2x128xf32, #tpu.memory_space<vmem>>, vector<2x128xf32>,
    return
  }
  func.func @transform_0(%arg0: i32) -> (i32, i32) {
    %c0_i32 = arith.constant 0 : i32
    %c0_i32_0 = arith.constant 0 : i32
    %c0_i32_1 = arith.constant 0 : i32
    return %c0_i32, %c0_i32_0 : i32, i32
  }
  func.func @transform_1(%arg0: i32) -> (i32, i32) {
    %c0_i32 = arith.constant 0 : i32
    %c0_i32_0 = arith.constant 0 : i32
    %c0_i32_1 = arith.constant 0 : i32
    return %c0_i32, %c0_i32_0 : i32, i32
  }
  func.func @transform_2(%arg0: i32) -> (i32, i32) {
    %c0_i32 = arith.constant 0 : i32
    %c0_i32_0 = arith.constant 0 : i32
    %c0_i32_1 = arith.constant 0 : i32
    return %c0_i32, %c0_i32_0 : i32, i32
  }
  func.func @transform_3(%arg0: i32) -> (i32, i32) {
    %c0_i32 = arith.constant 0 : i32
    %c0_i32_0 = arith.constant 0 : i32
    %c0_i32_1 = arith.constant 0 : i32
    return %c0_i32, %c0_i32_0 : i32, i32
  }
  func.func @transform_4(%arg0: i32) -> (i32, i32) {
    %c0_i32 = arith.constant 0 : i32
    %c0_i32_0 = arith.constant 0 : i32
    %c0_i32_1 = arith.constant 0 : i32
    return %c0_i32, %c0_i32_0 : i32, i32
  }
  func.func @transform_5(%arg0: i32) -> (i32, i32) {
    %c0_i32 = arith.constant 0 : i32
    %c0_i32_0 = arith.constant 0 : i32
    %c0_i32_1 = arith.constant 0 : i32
    return %c0_i32, %c0_i32_0 : i32, i32
  }
  func.func @transform_6(%arg0: i32) -> (i32, i32) {
    %c0_i32 = arith.constant 0 : i32
    %c0_i32_0 = arith.constant 0 : i32
    %c0_i32_1 = arith.constant 0 : i32
    return %c0_i32, %c0_i32_0 : i32, i32
  }
}

</mosaic_0001>

<bundles_post_ra>
// kernel: feature_extractor.5
= control target key start
LH: loop header
LB: loop body
LE: loop exit
PB: predicated region body
PF: predicated region fallthrough
CT: control target
= control target key end

     0   :  { %8 = vsyncpa [#allocation3], 0  ;;  %s387_s0 = inlined_call_operand.hbm [shape: bf16[16,21], index: 0, kind: input, shape index: {}]   ;;  %s388_s1 = inlined_call_operand.hbm [shape: bf16[21,128], index: 1, kind: input, shape index: {}]   ;;  %s389_s2 = inlined_call_operand.hbm [shape: f32[1,128], index: 2, kind: input, shape index: {}]   ;;  %s390_s3 = inlined_call_operand.hbm [shape: bf16[16,128], index: 3, kind: output, shape index: {}]  }
   0x1   :  { %9 = vsyncpa [#allocation6], 0 }
   0x2   :  { %10 = vsyncpa [#allocation4], 0  ;;  %s294_s12 = smov [#allocation5]   ;;  %s295_s14 = smov [#allocation2]  }
   0x3   :  { %s28_s13 = sshll.u32 %s294_s12, 4  ;;  %s16_s15 = sshll.u32 %s295_s14, 4  ;;  %s29_s13 = int_to_ptr.vmem [resolvable:$true] %s28_s13  ;;  %s323_s15 = int_to_ptr.vmem [resolvable:$true] %s16_s15 }
   0x4   :  { %s200_s18 = scalar_lea.hbm %s388_s1, 192 }
   0x5   :  { %p201_p0 = scmp.ne.s32.totalorder %s388_s1, %s200_s18  ;;  %p204_p1 = scmp.lt.u32.totalorder %s200_s18, %s388_s1 }
   0x7   :  { %p206_p2 = pnand %p204_p1, %p201_p0 }
   0x9   :  { %209 = shalt.err (!%p206_p2)
}
   0xa   :  { %s210_s23 = scalar_lea.vmem %s29_s13, 192  ;;  %p215_p4 = scmp.lt.s32.totalorder %s29_s13, %s29_s13 }
   0xb   :  { %p211_p3 = scmp.ne.s32.totalorder %s29_s13, %s210_s23  ;;  %p216_p5 = scmp.lt.s32.totalorder %s210_s23, %s210_s23 }
   0xd   :  { %p217_p6 = por %p216_p5, %p215_p4 }
   0xf   :  { %p218_p7 = pnand %p217_p6, %p211_p3 }
  0x11   :  { %221 = shalt.err (!%p218_p7)
}
  0x12   :  { %s296_s24 = smov 64   ;;  %s297_s25 = smov 4  }
  0x13   :  { %34 = dma.hbm_to_vmem [thread:$0]  %s388_s1, 192, %s29_s13, [#allocation6], %s296_s24, %s296_s24, %s297_s25  }
  0x14   :  { %s222_s30 = scalar_lea.hbm %s387_s0, 128 }
  0x15   :  { %p223_p8 = scmp.ne.s32.totalorder %s387_s0, %s222_s30  ;;  %p226_p9 = scmp.lt.u32.totalorder %s222_s30, %s387_s0 }
  0x17   :  { %p228_p10 = pnand %p226_p9, %p223_p8 }
  0x19   :  { %231 = shalt.err (!%p228_p10)
}
  0x1a   :  { %s232_s8 = scalar_lea.vmem %s323_s15, 128  ;;  %p237_p12 = scmp.lt.s32.totalorder %s323_s15, %s323_s15 }
  0x1b   :  { %p233_p11 = scmp.ne.s32.totalorder %s323_s15, %s232_s8  ;;  %p238_p13 = scmp.lt.s32.totalorder %s232_s8, %s232_s8 }
  0x1d   :  { %p239_p0 = por %p238_p13, %p237_p12 }
  0x1f   :  { %p240_p1 = pnand %p239_p0, %p233_p11 }
  0x21   :  { %243 = shalt.err (!%p240_p1)
}
  0x22   :  { %22 = dma.hbm_to_vmem [thread:$0]  %s387_s0, 128, %s323_s15, [#allocation3], %s296_s24, %s296_s24, %s297_s25  }
  0x23   :  { %s298_s10 = smov [#allocation7]   ;;  %s244_s14 = scalar_lea.hbm %s389_s2, 16 }
  0x24   :  { %s41_s11 = sshll.u32 %s298_s10, 4  ;;  %p245_p2 = scmp.ne.s32.totalorder %s389_s2, %s244_s14  ;;  %s42_s11 = int_to_ptr.vmem [resolvable:$true] %s41_s11 }
  0x25   :  { %p248_p3 = scmp.lt.u32.totalorder %s244_s14, %s389_s2 }
  0x27   :  { %p250_p4 = pnand %p248_p3, %p245_p2 }
  0x29   :  { %253 = shalt.err (!%p250_p4)
}
  0x2a   :  { %s254_s20 = scalar_lea.vmem %s42_s11, 16  ;;  %s258_s0 = scalar_lea.vmem %s42_s11, 32 }
  0x2b   :  { %p255_p5 = scmp.ne.s32.totalorder %s42_s11, %s254_s20  ;;  %p259_p6 = scmp.lt.s32.totalorder %s42_s11, %s42_s11 }
  0x2c   :  { %p260_p7 = scmp.lt.s32.totalorder %s258_s0, %s254_s20 }
  0x2e   :  { %p261_p8 = por %p260_p7, %p259_p6 }
  0x30   :  { %p262_p9 = pnand %p261_p8, %p255_p5 }
  0x32   :  { %265 = shalt.err (!%p262_p9)
}
  0x33   :  { %44 = dma.hbm_to_vmem [thread:$0]  %s389_s2, 16, %s42_s11, [#allocation6]  }
  0x34   :  { %288 = dma.done.wait [#allocation3], 128  }
  0x35   :  { %289 = vsyncadd [#allocation3], 4294967168 }
  0x36   :  { %290 = dma.done.wait [#allocation6], 208  }
  0x37   :  { %291 = vsyncadd [#allocation6], 4294967088  ;;  %v299_v0 = vmov 0.0   ;;  %vm85_vm0 = vcmask 1041408   ;;  %vm300_vm1 = vmmov 0   ;;  %vm86_vm2 = vcmask 1042432  }
  0x38   :  { %180 = vmatprep.subr.bf16.mxu0 %v299_v0  ;;  %184 = vmatprep.mubr.msk.bf16.mxu0 %vm300_vm1, %v299_v0  ;;  %v301_v1 = vmov 65535   ;;  %v197_v3 = vld [vmem:[#allocation5] sm:$0xff]   ;;  %v198_v5 = vld [vmem:[#allocation5 + $0x8] ss:$0 sps:$4 sm:$0x77]   ;;  %v199_v7 = vld [vmem:[#allocation2] sm:$0xff]  }
  0x39   :  { %v87_v2 = vsel %vm85_vm0, 4294967295, %v301_v1  ;;  %181 = vmatpush3.bf16.msra.mxu0 %v197_v3  ;;  %vm81_vm3 = vcmask 171008   ;;  %v163_v8 = vld [vmem:[#allocation7] ss:$0 sm:$0xff]  ;;  %s302_s2 = smov [#allocation8]  }
  0x3a   :  { %v88_v4 = vsel %vm86_vm2, %v87_v2, 0  ;;  %182 = vmatprep.subr.bf16.mxu0 %v299_v0  ;;  %s150_s22 = sshll.u32 %s302_s2, 4  ;;  %s151_s22 = int_to_ptr.vmem [resolvable:$true] %s150_s22 }
  0x3b   :  { %v90_v6 = vand.u32 %v198_v5, %v88_v4  ;;  %s266_s23 = scalar_lea.vmem %s151_s22, 128  ;;  %p271_p11 = scmp.lt.s32.totalorder %s151_s22, %s151_s22 }
  0x3c   :  { %p267_p10 = scmp.ne.s32.totalorder %s151_s22, %s266_s23  ;;  %p272_p12 = scmp.lt.s32.totalorder %s266_s23, %s266_s23 }
  0x3d   :  { %183 = vmatpush3.bf16.msra.mxu0 %v90_v6 }
  0x3e   :  { %p273_p13 = por %p272_p12, %p271_p11 }
  0x40   :  { %185 = vmatmul.mubr.msk.bf16.vlgmr.msra.gmra.mrb[0].mxu0 %vm81_vm3, %v199_v7  ;;  %p274_p0 = pnand %p273_p13, %p267_p10 }
 0x113   :  { %v126_v9 = vpop.f32.mrb[0].mxu0 }
 0x114   :  { %v127_v10 = vadd.f32 %v163_v8, %v126_v9  ;;  %v186_v11 = vpop.f32.mrb[1].mxu0 }
 0x115   :  { %v129_v12 = vpop.f32.mrb[2].mxu0 }
 0x116   :  { %v130_v13 = vadd.f32 %v163_v8, %v129_v12  ;;  %v187_v14 = vpop.f32.mrb[3].mxu0  ;;  %v133_v15 = vmax.f32 %v127_v10, 0.0 }
 0x118   :  { %v134_v16 = vmax.f32 %v130_v13, 0.0 }
 0x11a   :  { %v175_v17 = vpack.c.bf16 %v134_v16, %v133_v15 }
 0x11c   :  { %176 = vst [vmem:[#allocation8] sm:$0xff] %v175_v17  }
 0x11d   :  { %277 = shalt.err (!%p274_p0)
}
 0x11e   :  { %s278_s28 = scalar_lea.hbm %s390_s3, 128 }
 0x11f   :  { %p279_p1 = scmp.ne.s32.totalorder %s390_s3, %s278_s28  ;;  %p282_p2 = scmp.lt.u32.totalorder %s278_s28, %s390_s3 }
 0x121   :  { %p284_p3 = pnand %p282_p2, %p279_p1 }
 0x123   :  { %287 = shalt.err (!%p284_p3)
}
 0x124   :  { %156 = dma.vmem_to_hbm [thread:$0]  %s151_s22, 128, %s390_s3, [#allocation4], %s296_s24, %s296_s24, %s297_s25  }
 0x125   :  { %292 = dma.done.wait [#allocation4], 128  }
 0x126   :  { %293 = vsyncadd [#allocation4], 4294967168 }
 0x127   :  { %160 = vsyncpa [#allocation3], 1 }
 0x128   :  { %161 = vsyncpa [#allocation6], 1 }
 0x129   :  { %162 = vsyncpa [#allocation4], 1 }

// kernel: feature_extractor.7
= control target key start
LH: loop header
LB: loop body
LE: loop exit
PB: predicated region body
PF: predicated region fallthrough
CT: control target
= control target key end

     0   :  { %9 = vsyncpa [#allocation4], 0  ;;  %s1315_s0 = inlined_call_operand.hbm [shape: bf16[6,256], index: 0, kind: input, shape index: {}]   ;;  %s1316_s1 = inlined_call_operand.hbm [shape: bf16[256,384], index: 1, kind: input, shape index: {}]   ;;  %s1317_s2 = inlined_call_operand.hbm [shape: bf16[128,384], index: 2, kind: input, shape index: {}]   ;;  %s1318_s3 = inlined_call_operand.hbm [shape: f32[2,128], index: 3, kind: input, shape index: {}]   ;;  %s1319_s4 = inlined_call_operand.hbm [shape: bf16[4,128], index: 4, kind: output, shape index: {}]  }
   0x1   :  { %10 = vsyncpa [#allocation7], 0 }
   0x2   :  { %11 = vsyncpa [#allocation10], 0 }
   0x3   :  { %12 = vsyncpa [#allocation5], 0  ;;  %s1189_s15 = smov [#allocation6]   ;;  %s1071_s19 = scalar_lea.hbm %s1316_s1, 6144 }
   0x4   :  { %s28_s16 = sshll.u32 %s1189_s15, 4  ;;  %p1072_p0 = scmp.ne.s32.totalorder %s1316_s1, %s1071_s19  ;;  %s29_s16 = int_to_ptr.vmem [resolvable:$true] %s28_s16 }
   0x5   :  { %p1075_p1 = scmp.lt.u32.totalorder %s1071_s19, %s1316_s1 }
   0x7   :  { %p1077_p2 = pnand %p1075_p1, %p1072_p0 }
   0x9   :  { %1080 = shalt.err (!%p1077_p2)
}
   0xa   :  { %s1081_s24 = scalar_lea.vmem %s29_s16, 6144  ;;  %p1086_p4 = scmp.lt.s32.totalorder %s29_s16, %s29_s16 }
   0xb   :  { %p1082_p3 = scmp.ne.s32.totalorder %s29_s16, %s1081_s24  ;;  %p1087_p5 = scmp.lt.s32.totalorder %s1081_s24, %s1081_s24 }
   0xd   :  { %p1088_p6 = por %p1087_p5, %p1086_p4 }
   0xf   :  { %p1089_p7 = pnand %p1088_p6, %p1082_p3 }
  0x11   :  { %1092 = shalt.err (!%p1089_p7)
}
  0x12   :  { %s1190_s25 = smov 192   ;;  %s1191_s26 = smov 12  }
  0x13   :  { %34 = dma.hbm_to_vmem [thread:$0]  %s1316_s1, 6144, %s29_s16, [#allocation7], %s1190_s25, %s1190_s25, %s1191_s26  }
  0x14   :  { %s1192_s29 = smov [#allocation3]   ;;  %s1193_s5 = smov [#allocation8]  }
  0x15   :  { %s19_s30 = sshll.u32 %s1192_s29, 4  ;;  %s40_s6 = sshll.u32 %s1193_s5, 4  ;;  %s20_s30 = int_to_ptr.vmem [resolvable:$true] %s19_s30  ;;  %s41_s6 = int_to_ptr.vmem [resolvable:$true] %s40_s6 }
  0x16   :  { %s1093_s9 = scalar_lea.hbm %s1315_s0, 128 }
  0x17   :  { %p1094_p8 = scmp.ne.s32.totalorder %s1315_s0, %s1093_s9  ;;  %p1097_p9 = scmp.lt.u32.totalorder %s1093_s9, %s1315_s0 }
  0x19   :  { %p1099_p10 = pnand %p1097_p9, %p1094_p8 }
  0x1b   :  { %1102 = shalt.err (!%p1099_p10)
}
  0x1c   :  { %s1103_s1 = scalar_lea.vmem %s20_s30, 128  ;;  %p1108_p12 = scmp.lt.s32.totalorder %s20_s30, %s20_s30 }
  0x1d   :  { %p1104_p11 = scmp.ne.s32.totalorder %s20_s30, %s1103_s1  ;;  %p1109_p13 = scmp.lt.s32.totalorder %s1103_s1, %s1103_s1 }
  0x1f   :  { %p1110_p0 = por %p1109_p13, %p1108_p12 }
  0x21   :  { %p1111_p1 = pnand %p1110_p0, %p1104_p11 }
  0x23   :  { %1114 = shalt.err (!%p1111_p1)
}
  0x24   :  { %22 = dma.hbm_to_vmem [thread:$0]  %s1315_s0, 128, %s20_s30, [#allocation4]  }
  0x25   :  { %s1115_s18 = scalar_lea.hbm %s1317_s2, 3072 }
  0x26   :  { %p1116_p2 = scmp.ne.s32.totalorder %s1317_s2, %s1115_s18  ;;  %p1119_p3 = scmp.lt.u32.totalorder %s1115_s18, %s1317_s2 }
  0x28   :  { %p1121_p4 = pnand %p1119_p3, %p1116_p2 }
  0x2a   :  { %1124 = shalt.err (!%p1121_p4)
}
  0x2b   :  { %s1125_s23 = scalar_lea.vmem %s41_s6, 3072  ;;  %p1130_p6 = scmp.lt.s32.totalorder %s41_s6, %s41_s6 }
  0x2c   :  { %p1126_p5 = scmp.ne.s32.totalorder %s41_s6, %s1125_s23  ;;  %p1131_p7 = scmp.lt.s32.totalorder %s1125_s23, %s1125_s23 }
  0x2e   :  { %p1132_p8 = por %p1131_p7, %p1130_p6 }
  0x30   :  { %p1133_p9 = pnand %p1132_p8, %p1126_p5 }
  0x32   :  { %1136 = shalt.err (!%p1133_p9)
}
  0x33   :  { %46 = dma.hbm_to_vmem [thread:$0]  %s1317_s2, 3072, %s41_s6, [#allocation7], %s1190_s25, %s1190_s25, %s1191_s26  }
  0x34   :  { %s1194_s27 = smov [#allocation9]   ;;  %s1137_s5 = scalar_lea.hbm %s1318_s3, 32 }
  0x35   :  { %s53_s28 = sshll.u32 %s1194_s27, 4  ;;  %p1138_p10 = scmp.ne.s32.totalorder %s1318_s3, %s1137_s5  ;;  %s54_s28 = int_to_ptr.vmem [resolvable:$true] %s53_s28 }
  0x36   :  { %p1141_p11 = scmp.lt.u32.totalorder %s1137_s5, %s1318_s3 }
  0x38   :  { %p1143_p12 = pnand %p1141_p11, %p1138_p10 }
  0x3a   :  { %1146 = shalt.err (!%p1143_p12)
}
  0x3b   :  { %s1147_s11 = scalar_lea.vmem %s54_s28, 32  ;;  %p1152_p0 = scmp.lt.s32.totalorder %s54_s28, %s54_s28 }
  0x3c   :  { %p1148_p13 = scmp.ne.s32.totalorder %s54_s28, %s1147_s11  ;;  %p1153_p1 = scmp.lt.s32.totalorder %s1147_s11, %s1147_s11 }
  0x3e   :  { %p1154_p2 = por %p1153_p1, %p1152_p0 }
  0x40   :  { %p1155_p3 = pnand %p1154_p2, %p1148_p13 }
  0x42   :  { %1158 = shalt.err (!%p1155_p3)
}
  0x43   :  { %56 = dma.hbm_to_vmem [thread:$0]  %s1318_s3, 32, %s54_s28, [#allocation10]  }
  0x44   :  { %1181 = dma.done.wait [#allocation4], 128  }
  0x45   :  { %1182 = vsyncadd [#allocation4], 4294967168 }
  0x46   :  { %1183 = dma.done.wait [#allocation7], 9216  }
  0x47   :  { %1184 = vsyncadd [#allocation7], 4294958080 }
  0x48   :  { %1185 = dma.done.wait [#allocation10], 32  }
  0x49   :  { %1186 = vsyncadd [#allocation10], 4294967264  ;;  %v973_v0 = vld [vmem:[#allocation6 + $0x4] ss:$12 sps:$4 sm:$0xff]   ;;  %v975_v1 = vld [vmem:[#allocation6] ss:$12 sps:$4 sm:$0xff]  }
  0x4a   :  { %399 = vmatprep.subr.bf16.mxu0 %v973_v0  ;;  %v976_v2 = vld [vmem:[#allocation6 + $0x1c] ss:$12 sps:$4 sm:$0xff]   ;;  %v978_v3 = vld [vmem:[#allocation6 + $0x18] ss:$12 sps:$4 sm:$0xff]   ;;  %v979_v4 = vld [vmem:[#allocation6 + $0x34] ss:$12 sps:$4 sm:$0xff]  }
  0x4b   :  { %400 = vmatpush1.bf16.msra.mxu0 %v975_v1  ;;  %v981_v5 = vld [vmem:[#allocation6 + $0x30] ss:$12 sps:$4 sm:$0xff]   ;;  %v982_v6 = vld [vmem:[#allocation6 + $0x4c] ss:$12 sps:$4 sm:$0xff]   ;;  %v984_v7 = vld [vmem:[#allocation6 + $0x48] ss:$12 sps:$4 sm:$0xff]  }
  0x4c   :  { %401 = vmatprep.subr.bf16.mxu0 %v976_v2  ;;  %v985_v8 = vld [vmem:[#allocation6 + $0x64] ss:$12 sps:$4 sm:$0xff]   ;;  %v987_v9 = vld [vmem:[#allocation6 + $0x60] ss:$12 sps:$4 sm:$0xff]   ;;  %v988_v10 = vld [vmem:[#allocation6 + $0x7c] ss:$12 sps:$4 sm:$0xff]  }
  0x4d   :  { %v990_v11 = vld [vmem:[#allocation6 + $0x78] ss:$12 sps:$4 sm:$0xff]   ;;  %v991_v12 = vld [vmem:[#allocation6 + $0x94] ss:$12 sps:$4 sm:$0xff]   ;;  %v993_v13 = vld [vmem:[#allocation6 + $0x90] ss:$12 sps:$4 sm:$0xff]  }
  0x4e   :  { %v1279_v14 = vld [vmem:[#allocation3] sm:$0x77]  ;;  %v1023_v17 = vld [vmem:[#allocation6 + $0xc8] ss:$12 sps:$4 sm:$0xff]   ;;  %v1025_v19 = vld [vmem:[#allocation6 + $0xe0] ss:$12 sps:$4 sm:$0xff]  }
  0x4f   :  { %402 = vmatpush1.bf16.msra.mxu0 %v978_v3  ;;  %v994_v15 = vld [vmem:[#allocation6 + $0xac] ss:$12 sps:$4 sm:$0xff]   ;;  %v836_v16 = vcombine.high %v1279_v14, %v1279_v14  ;;  %v1024_v18 = vld [vmem:[#allocation6 + $0x8] ss:$12 sps:$4 sm:$0xff]   ;;  %911 = vmatprep.subr.bf16.mxu1 %v1023_v17  ;;  %v997_v23 = vld [vmem:[#allocation6 + $0xc4] ss:$12 sps:$4 sm:$0xff]   ;;  %v835_v48 = vcombine.low %v1279_v14, %v1279_v14  ;;  %v484_v17 = vlaneseq }
  0x50   :  { %403 = vmatprep.subr.bf16.mxu0 %v979_v4  ;;  %v996_v20 = vld [vmem:[#allocation6 + $0xa8] ss:$12 sps:$4 sm:$0xff]   ;;  %912 = vmatpush3.bf16.msra.mxu1 %v1024_v18  ;;  %v1026_v21 = vld [vmem:[#allocation6 + $0x20] ss:$12 sps:$4 sm:$0xff]   ;;  %v1027_v22 = vld [vmem:[#allocation6 + $0xf8] ss:$12 sps:$4 sm:$0xff]  }
  0x51   :  { %431 = vmatprep.mubr.bf16.mxu0 %v836_v16  ;;  %472 = vmatprep.mubr.bf16.mxu1 %v836_v16  ;;  %v999_v24 = vld [vmem:[#allocation6 + $0xc0] ss:$12 sps:$4 sm:$0xff]   ;;  %v1028_v25 = vld [vmem:[#allocation6 + $0x38] ss:$12 sps:$4 sm:$0xff]   ;;  %v1029_v26 = vld [vmem:[#allocation6 + $0x110] ss:$12 sps:$4 sm:$0xff]  }
  0x52   :  { %913 = vmatprep.subr.bf16.mxu1 %v1025_v19  ;;  %v1000_v27 = vld [vmem:[#allocation6 + $0xdc] ss:$12 sps:$4 sm:$0xff]   ;;  %v1002_v28 = vld [vmem:[#allocation6 + $0xd8] ss:$12 sps:$4 sm:$0xff]   ;;  %v1003_v29 = vld [vmem:[#allocation6 + $0xf4] ss:$12 sps:$4 sm:$0xff]  }
  0x53   :  { %404 = vmatpush1.bf16.msra.mxu0 %v981_v5  ;;  %v1030_v30 = vld [vmem:[#allocation6 + $0x50] ss:$12 sps:$4 sm:$0xff]   ;;  %v1031_v31 = vld [vmem:[#allocation6 + $0x128] ss:$12 sps:$4 sm:$0xff]   ;;  %v1033_v34 = vld [vmem:[#allocation6 + $0x140] ss:$12 sps:$4 sm:$0xff]  }
  0x54   :  { %405 = vmatprep.subr.bf16.mxu0 %v982_v6  ;;  %914 = vmatpush3.bf16.msra.mxu1 %v1026_v21  ;;  %v1032_v32 = vld [vmem:[#allocation6 + $0x68] ss:$12 sps:$4 sm:$0xff]   ;;  %v1005_v33 = vld [vmem:[#allocation6 + $0xf0] ss:$12 sps:$4 sm:$0xff]   ;;  %v1006_v35 = vld [vmem:[#allocation6 + $0x10c] ss:$12 sps:$4 sm:$0xff]  }
  0x55   :  { %915 = vmatprep.subr.bf16.mxu1 %v1027_v22  ;;  %v1034_v36 = vld [vmem:[#allocation6 + $0x80] ss:$12 sps:$4 sm:$0xff]   ;;  %v1008_v37 = vld [vmem:[#allocation6 + $0x108] ss:$12 sps:$4 sm:$0xff]   ;;  %v1035_v38 = vld [vmem:[#allocation6 + $0x158] ss:$12 sps:$4 sm:$0xff]  }
  0x56   :  { %v1009_v39 = vld [vmem:[#allocation6 + $0x124] ss:$12 sps:$4 sm:$0xff]   ;;  %v1011_v41 = vld [vmem:[#allocation6 + $0x120] ss:$12 sps:$4 sm:$0xff]   ;;  %v1012_v43 = vld [vmem:[#allocation6 + $0x13c] ss:$12 sps:$4 sm:$0xff]  }
  0x57   :  { %406 = vmatpush1.bf16.msra.mxu0 %v984_v7  ;;  %v1036_v40 = vld [vmem:[#allocation6 + $0x98] ss:$12 sps:$4 sm:$0xff]   ;;  %v1037_v42 = vld [vmem:[#allocation6 + $0x170] ss:$12 sps:$4 sm:$0xff]   ;;  %v1015_v46 = vld [vmem:[#allocation6 + $0x154] ss:$12 sps:$4 sm:$0xff]  }
  0x58   :  { %407 = vmatprep.subr.bf16.mxu0 %v985_v8  ;;  %916 = vmatpush3.bf16.msra.mxu1 %v1028_v25  ;;  %v1038_v44 = vld [vmem:[#allocation6 + $0xb0] ss:$12 sps:$4 sm:$0xff]   ;;  %v1014_v45 = vld [vmem:[#allocation6 + $0x138] ss:$12 sps:$4 sm:$0xff]   ;;  %v1020_v50 = vld [vmem:[#allocation6 + $0x168] ss:$12 sps:$4 sm:$0xff]  }
  0x59   :  { %917 = vmatprep.subr.bf16.mxu1 %v1029_v26  ;;  %v1017_v47 = vld [vmem:[#allocation6 + $0x150] ss:$12 sps:$4 sm:$0xff]   ;;  %v1018_v49 = vld [vmem:[#allocation6 + $0x16c] ss:$12 sps:$4 sm:$0xff]   ;;  %vm520_vm0 = vcmask 1042434   ;;  %v1195_v54 = vmov 0.0  }
  0x5a   :  { %v1041_v51 = vld [vmem:[#allocation8 + $0x4] ss:$12 sps:$4 sm:$0xff]   ;;  %vm521_vm1 = vsmask.f32 2304  ;;  %v1039_v52 = vld [vmem:[#allocation8] ss:$12 sps:$4 sm:$0xff]  }
  0x5b   :  { %408 = vmatpush1.bf16.msra.mxu0 %v987_v9  ;;  %vm522_vm2 = vmand %vm520_vm0, %vm521_vm1  ;;  %v523_v53 = vld [vmem:[#allocation2] sm:$0x4]  ;;  %v1045_v57 = vld [vmem:[#allocation8 + $0x1c] ss:$12 sps:$4 sm:$0xff]   ;;  %vm490_vm3 = vcmask 1040384   ;;  %vm1197_vm6 = vmmov 0  }
  0x5c   :  { %409 = vmatprep.subr.bf16.mxu0 %v988_v10  ;;  %918 = vmatpush3.bf16.msra.mxu1 %v1030_v30  ;;  %v1042_v55 = vld [vmem:[#allocation8 + $0x8] ss:$12 sps:$4 sm:$0xff]   ;;  %v524_v56 = vsel %vm522_vm2, 0, %v523_v53  ;;  %vm491_vm4 = vsmask.f32 256  ;;  %v1296_v22 = vshrl.u32 %v484_v17, 7 }
  0x5d   :  { %919 = vmatprep.subr.bf16.mxu1 %v1031_v31  ;;  %525 = vst [vmem:[#allocation2] sm:$0x4] %v524_v56  ;;  %v1043_v58 = vld [vmem:[#allocation8 + $0x18] ss:$12 sps:$4 sm:$0xff]   ;;  %vm492_vm5 = vmand %vm490_vm3, %vm491_vm4  ;;  %v493_v59 = vld [vmem:[#allocation2] sm:$0x1] }
  0x5e   :  { %v1046_v60 = vld [vmem:[#allocation8 + $0x20] ss:$12 sps:$4 sm:$0xff]   ;;  %v494_v61 = vsel %vm492_vm5, 0, %v493_v59  ;;  %v1047_v63 = vld [vmem:[#allocation8 + $0x30] ss:$12 sps:$4 sm:$0xff]   ;;  %vm528_vm7 = vcmask 1043458  }
  0x5f   :  { %410 = vmatpush1.bf16.msra.mxu0 %v990_v11  ;;  %495 = vst [vmem:[#allocation2] sm:$0x1] %v494_v61  ;;  %v1049_v62 = vld [vmem:[#allocation8 + $0x34] ss:$12 sps:$4 sm:$0xff]   ;;  %v1050_v0 = vld [vmem:[#allocation8 + $0x38] ss:$12 sps:$4 sm:$0xff]  }
  0x60   :  { %411 = vmatprep.subr.bf16.mxu0 %v991_v12  ;;  %920 = vmatpush3.bf16.msra.mxu1 %v1032_v32  ;;  %v1053_v1 = vld [vmem:[#allocation8 + $0x4c] ss:$12 sps:$4 sm:$0xff]   ;;  %v1051_v2 = vld [vmem:[#allocation8 + $0x48] ss:$12 sps:$4 sm:$0xff]   ;;  %v1054_v3 = vld [vmem:[#allocation8 + $0x50] ss:$12 sps:$4 sm:$0xff]  }
  0x61   :  { %921 = vmatprep.subr.bf16.mxu1 %v1033_v34  ;;  %v1057_v4 = vld [vmem:[#allocation8 + $0x64] ss:$12 sps:$4 sm:$0xff]   ;;  %v1055_v5 = vld [vmem:[#allocation8 + $0x60] ss:$12 sps:$4 sm:$0xff]   ;;  %v1058_v6 = vld [vmem:[#allocation8 + $0x68] ss:$12 sps:$4 sm:$0xff]  }
  0x62   :  { %v1061_v7 = vld [vmem:[#allocation8 + $0x7c] ss:$12 sps:$4 sm:$0xff]   ;;  %v1059_v8 = vld [vmem:[#allocation8 + $0x78] ss:$12 sps:$4 sm:$0xff]   ;;  %v1062_v9 = vld [vmem:[#allocation8 + $0x80] ss:$12 sps:$4 sm:$0xff]  }
  0x63   :  { %412 = vmatpush1.bf16.msra.mxu0 %v993_v13  ;;  %v1065_v10 = vld [vmem:[#allocation8 + $0x94] ss:$12 sps:$4 sm:$0xff]   ;;  %v1063_v11 = vld [vmem:[#allocation8 + $0x90] ss:$12 sps:$4 sm:$0xff]   ;;  %v1066_v12 = vld [vmem:[#allocation8 + $0x98] ss:$12 sps:$4 sm:$0xff]  }
  0x64   :  { %413 = vmatprep.subr.bf16.mxu0 %v994_v15  ;;  %922 = vmatpush3.bf16.msra.mxu1 %v1034_v36  ;;  %v1069_v13 = vld [vmem:[#allocation8 + $0xac] ss:$12 sps:$4 sm:$0xff]   ;;  %v1067_v14 = vld [vmem:[#allocation8 + $0xa8] ss:$12 sps:$4 sm:$0xff]   ;;  %v1196_v15 = vmov 0   ;;  %vm508_vm10 = vcmask 1041408  }
  0x65   :  { %923 = vmatprep.subr.bf16.mxu1 %v1035_v38  ;;  %v1070_v16 = vld [vmem:[#allocation8 + $0xb0] ss:$12 sps:$4 sm:$0xff]   ;;  %v70_v25 = vld [vmem:[#allocation9] sm:$0x3]  ;;  %vm529_vm8 = vsmask.f32 3338 }
  0x66   :  { %vm530_vm9 = vmand %vm528_vm7, %vm529_vm8  ;;  %v531_v36 = vld [vmem:[#allocation2] sm:$0xc]  ;;  %vm509_vm11 = vsmask.f32 1282  ;;  %vm534_vm13 = vcmask 1043459   ;;  %vm514_vm0 = vcmask 1041409  }
  0x67   :  { %414 = vmatpush1.bf16.msra.mxu0 %v996_v20  ;;  %vm510_vm12 = vmand %vm508_vm10, %vm509_vm11  ;;  %vm535_vm14 = vsmask.f32 7950  ;;  %vm515_vm1 = vsmask.f32 7942  ;;  %s1199_s3 = smov [#allocation11]  }
  0x68   :  { %415 = vmatprep.subr.bf16.mxu0 %v997_v23  ;;  %924 = vmatpush3.bf16.msra.mxu1 %v1036_v40  ;;  %vm536_vm15 = vmand %vm534_vm13, %vm535_vm14  ;;  %s824_s26 = sshll.u32 %s1199_s3, 4  ;;  %s825_s26 = int_to_ptr.vmem [resolvable:$true] %s824_s26 }
  0x69   :  { %925 = vmatprep.subr.bf16.mxu1 %v1037_v42  ;;  %v511_v42 = vld [vmem:[#allocation2] sm:$0x3]  ;;  %vm516_vm2 = vmand %vm514_vm0, %vm515_vm1  ;;  %s1159_s6 = scalar_lea.vmem %s825_s26, 32  ;;  %p1164_p5 = scmp.lt.s32.totalorder %s825_s26, %s825_s26 }
  0x6a   :  { %p1160_p4 = scmp.ne.s32.totalorder %s825_s26, %s1159_s6  ;;  %p1165_p6 = scmp.lt.s32.totalorder %s1159_s6, %s1159_s6 }
  0x6b   :  { %416 = vmatpush1.bf16.msra.mxu0 %v999_v24  ;;  %v486_v24 = vsub.s32 0, %v1296_v22 }
  0x6c   :  { %417 = vmatprep.subr.bf16.mxu0 %v1000_v27  ;;  %926 = vmatpush3.bf16.msra.mxu1 %v1038_v44  ;;  %p1166_p7 = por %p1165_p6, %p1164_p5 }
  0x6d   :  { %701 = vmatprep.subr.bf16.mxu1 %v1041_v51 }
  0x6e   :  { %p1167_p8 = pnand %p1166_p7, %p1160_p4 }
  0x6f   :  { %418 = vmatpush1.bf16.msra.mxu0 %v1002_v28  ;;  %473 = vmatmul.mubr.bf16.vlgmr.msra.gmra.mrb[0].mxu1 %v835_v48 }
  0x70   :  { %419 = vmatprep.subr.bf16.mxu0 %v1003_v29  ;;  %702 = vmatpush1.bf16.msra.mxu1 %v1039_v52  ;;  %v487_v29 = vrot.slane %v70_v25, %v486_v24 }
  0x71   :  { %703 = vmatprep.subr.bf16.mxu1 %v1045_v57  ;;  %733 = vmatprep.mubr.bf16.mxu1 %v1196_v15 }
  0x73   :  { %420 = vmatpush1.bf16.msra.mxu0 %v1005_v33 }
  0x74   :  { %421 = vmatprep.subr.bf16.mxu0 %v1006_v35  ;;  %704 = vmatpush1.bf16.msra.mxu1 %v1043_v58 }
  0x75   :  { %705 = vmatprep.subr.bf16.mxu1 %v1049_v62  ;;  %v1198_v62 = vmov 1983009808  }
  0x77   :  { %422 = vmatpush1.bf16.msra.mxu0 %v1008_v37 }
  0x78   :  { %423 = vmatprep.subr.bf16.mxu0 %v1009_v39  ;;  %706 = vmatpush1.bf16.msra.mxu1 %v1047_v63  ;;  %v808_v63 = vunpack.c.l.s4 %v1198_v62 }
  0x79   :  { %707 = vmatprep.subr.bf16.mxu1 %v1053_v1 }
  0x7b   :  { %424 = vmatpush1.bf16.msra.mxu0 %v1011_v41 }
  0x7c   :  { %425 = vmatprep.subr.bf16.mxu0 %v1012_v43  ;;  %708 = vmatpush1.bf16.msra.mxu1 %v1051_v2 }
  0x7d   :  { %709 = vmatprep.subr.bf16.mxu1 %v1057_v4 }
  0x7f   :  { %426 = vmatpush1.bf16.msra.mxu0 %v1014_v45 }
  0x80   :  { %427 = vmatprep.subr.bf16.mxu0 %v1015_v46  ;;  %710 = vmatpush1.bf16.msra.mxu1 %v1055_v5  ;;  %v809_v5 = vunpack.c.0.s8 %v808_v63 }
  0x81   :  { %711 = vmatprep.subr.bf16.mxu1 %v1061_v7 }
  0x83   :  { %428 = vmatpush1.bf16.msra.mxu0 %v1017_v47 }
  0x84   :  { %429 = vmatprep.subr.bf16.mxu0 %v1018_v49  ;;  %712 = vmatpush1.bf16.msra.mxu1 %v1059_v8 }
  0x85   :  { %713 = vmatprep.subr.bf16.mxu1 %v1065_v10  ;;  %v812_v10 = vsub.s32 %v809_v5, %v1296_v22 }
  0x87   :  { %430 = vmatpush1.bf16.msra.mxu0 %v1020_v50 }
  0x88   :  { %942 = vmatprep.subr.bf16.mxu0 %v1195_v54  ;;  %714 = vmatpush1.bf16.msra.mxu1 %v1063_v11 }
  0x89   :  { %715 = vmatprep.subr.bf16.mxu1 %v1069_v13 }
  0x8a   :  { %432 = vmatmul.mubr.bf16.vlgmr.msra.gmra.mrb[0].mxu0 %v835_v48 }
  0x8b   :  { %943 = vmatpush3.bf16.msra.mxu0 %v1042_v55  ;;  %958 = vmatprep.mubr.msk.bf16.mxu0 %vm1197_vm6, %v1195_v54 }
  0x8c   :  { %944 = vmatprep.subr.bf16.mxu0 %v1195_v54  ;;  %716 = vmatpush1.bf16.msra.mxu1 %v1067_v14 }
  0x8f   :  { %945 = vmatpush3.bf16.msra.mxu0 %v1046_v60 }
  0x90   :  { %946 = vmatprep.subr.bf16.mxu0 %v1195_v54 }
  0x93   :  { %947 = vmatpush3.bf16.msra.mxu0 %v1050_v0 }
  0x94   :  { %948 = vmatprep.subr.bf16.mxu0 %v1195_v54 }
  0x97   :  { %949 = vmatpush3.bf16.msra.mxu0 %v1054_v3 }
  0x98   :  { %950 = vmatprep.subr.bf16.mxu0 %v1195_v54 }
  0x9b   :  { %951 = vmatpush3.bf16.msra.mxu0 %v1058_v6 }
  0x9c   :  { %952 = vmatprep.subr.bf16.mxu0 %v1195_v54 }
  0x9f   :  { %953 = vmatpush3.bf16.msra.mxu0 %v1062_v9 }
  0xa0   :  { %954 = vmatprep.subr.bf16.mxu0 %v1195_v54 }
  0xa3   :  { %955 = vmatpush3.bf16.msra.mxu0 %v1066_v12 }
  0xa4   :  { %956 = vmatprep.subr.bf16.mxu0 %v1195_v54  ;;  %v793_v54 = vsub.s32 1, %v1296_v22 }
  0xa6   :  { %v794_v0 = vrot.slane %v70_v25, %v793_v54 }
  0xa7   :  { %957 = vmatpush3.bf16.msra.mxu0 %v1070_v16 }
 0x142   :  { %v927_v18 = vpop.f32.mrb[0].mxu1 }
 0x143   :  { %v928_v19 = vpop.f32.mrb[1].mxu1 }
 0x144   :  { %v1294_v20 = vadd.f32 %v928_v19, %v927_v18  ;;  %v930_v21 = vpop.f32.mrb[2].mxu1 }
 0x145   :  { %v931_v23 = vpop.f32.mrb[3].mxu1 }
 0x146   :  { %v800_v1 = vrot.slane %v1294_v20, 7 }
 0x15d   :  { %v433_v26 = vpop.f32.mrb[0].mxu0 }
 0x15e   :  { %v435_v27 = vpop.f32.mrb[1].mxu0 }
 0x15f   :  { %v481_v28 = vrot.slane %v435_v27, 1  ;;  %v437_v30 = vpop.f32.mrb[2].mxu0 }
 0x160   :  { %v438_v31 = vpop.f32.mrb[3].mxu0 }
 0x161   :  { %v483_v32 = vadd.f32 %v481_v28, %v433_v26 }
 0x163   :  { %v488_v33 = vadd.f32 %v487_v29, %v483_v32 }
 0x165   :  { %v489_v34 = vmax.f32 %v488_v33, 0.0 }
 0x167   :  { %v910_v35 = vpack.c.bf16 %v489_v34, %v489_v34 }
 0x169   :  { %v501_v37 = vshrl.u32 %v910_v35, 16  ;;  %v526_v38 = vrot.slane %v910_v35, 7  ;;  %v504_v40 = vshll.u32 %v910_v35, 16 }
 0x16b   :  { %v503_v39 = vrot.slane %v501_v37, 7  ;;  %v532_v41 = vsel %vm530_vm9, %v526_v38, %v531_v36 }
 0x16c   :  { %533 = vst [vmem:[#allocation2] sm:$0xc] %v532_v41 }
 0x16d   :  { %v506_v43 = vor.u32 %v504_v40, %v503_v39 }
 0x16f   :  { %v512_v44 = vsel %vm510_vm12, %v506_v43, %v511_v42 }
 0x170   :  { %513 = vst [vmem:[#allocation2] sm:$0x3] %v512_v44 }
 0x173   :  { %v537_v45 = vld [vmem:[#allocation2] sm:$0x8] }
 0x174   :  { %v538_v46 = vsel %vm536_vm15, 0, %v537_v45 }
 0x175   :  { %539 = vst [vmem:[#allocation2] sm:$0x8] %v538_v46 }
 0x177   :  { %v517_v47 = vld [vmem:[#allocation2] sm:$0x2] }
 0x178   :  { %v518_v48 = vsel %vm516_vm2, 0, %v517_v47 }
 0x179   :  { %519 = vst [vmem:[#allocation2] sm:$0x2] %v518_v48 }
 0x180   :  { %v540_v49 = vld [vmem:[#allocation2] sm:$0xf] }
 0x181   :  { %734 = vmatmul.mubr.bf16.vlgmr.msra.gmra.mrb[4].mxu1 %v540_v49  ;;  %959 = vmatmul.mubr.bf16.vlgmr.msra.gmra.mrb[4].mxu0 %v540_v49 }
 0x254   :  { %v735_v50 = vpop.f32.mrb[4].mxu1  ;;  %v776_v51 = vpop.f32.mrb[4].mxu0 }
 0x255   :  { %v737_v52 = vpop.f32.mrb[5].mxu1  ;;  %v960_v53 = vpop.f32.mrb[5].mxu0  ;;  %v787_v60 = vrot.slane %v776_v51, 2 }
 0x256   :  { %v783_v55 = vrot.slane %v737_v52, 1  ;;  %v739_v56 = vpop.f32.mrb[6].mxu1  ;;  %v779_v57 = vpop.f32.mrb[6].mxu0 }
 0x257   :  { %v740_v58 = vpop.f32.mrb[7].mxu1  ;;  %v961_v59 = vpop.f32.mrb[7].mxu0 }
 0x258   :  { %v785_v61 = vadd.f32 %v783_v55, %v735_v50 }
 0x25a   :  { %v789_v2 = vadd.f32 %v787_v60, %v785_v61 }
 0x25c   :  { %v790_v3 = vadd.f32 %v1294_v20, %v789_v2  ;;  %v802_v4 = vadd.f32 %v800_v1, %v789_v2 }
 0x25e   :  { %v803_v6 = vadd.f32 %v802_v4, %v794_v0  ;;  %v795_v7 = vadd.f32 %v794_v0, %v790_v3 }
 0x260   :  { %v796_v8 = vmax.f32 %v795_v7, 0.0  ;;  %v804_v9 = vmax.f32 %v803_v6, 0.0 }
 0x262   :  { %v797_v11 = vpack.c.bf16 %v796_v8, %v796_v8  ;;  %v805_v12 = vpack.c.bf16 %v804_v9, %v804_v9 }
 0x264   :  { %798 = vst [vmem:[#allocation11] sm:$0x1] %v797_v11  ;;  %v813_v13 = vrot.slane %v805_v12, %v812_v10 }
 0x266   :  { %v814_v14 = vcombine.high %v813_v13, %v813_v13 }
 0x268   :  { %v815_v15 = vrot.slane %v814_v14, 7 }
 0x26a   :  { %817 = vst [vmem:[#allocation11] sm:$0x2] %v815_v15 }
 0x26b   :  { %1170 = shalt.err (!%p1167_p8)
}
 0x26c   :  { %s1171_s1 = scalar_lea.hbm %s1319_s4, 32 }
 0x26d   :  { %p1172_p9 = scmp.ne.s32.totalorder %s1319_s4, %s1171_s1  ;;  %p1175_p10 = scmp.lt.u32.totalorder %s1171_s1, %s1319_s4 }
 0x26f   :  { %p1177_p11 = pnand %p1175_p10, %p1172_p9 }
 0x271   :  { %1180 = shalt.err (!%p1177_p11)
}
 0x272   :  { %827 = dma.vmem_to_hbm [thread:$0]  %s825_s26, 32, %s1319_s4, [#allocation5]  }
 0x273   :  { %1187 = dma.done.wait [#allocation5], 32  }
 0x274   :  { %1188 = vsyncadd [#allocation5], 4294967264 }
 0x275   :  { %831 = vsyncpa [#allocation4], 1 }
 0x276   :  { %832 = vsyncpa [#allocation7], 1 }
 0x277   :  { %833 = vsyncpa [#allocation10], 1 }
 0x278   :  { %834 = vsyncpa [#allocation5], 1 }

// kernel: feature_extractor.6
= control target key start
LH: loop header
LB: loop body
LE: loop exit
PB: predicated region body
PF: predicated region fallthrough
CT: control target
= control target key end

     0   :  { %9 = vsyncpa [#allocation4], 0  ;;  %s1397_s0 = inlined_call_operand.hbm [shape: bf16[10,256], index: 0, kind: input, shape index: {}]   ;;  %s1398_s1 = inlined_call_operand.hbm [shape: bf16[256,384], index: 1, kind: input, shape index: {}]   ;;  %s1399_s2 = inlined_call_operand.hbm [shape: bf16[128,384], index: 2, kind: input, shape index: {}]   ;;  %s1400_s3 = inlined_call_operand.hbm [shape: f32[2,128], index: 3, kind: input, shape index: {}]   ;;  %s1401_s4 = inlined_call_operand.hbm [shape: bf16[8,128], index: 4, kind: output, shape index: {}]  }
   0x1   :  { %10 = vsyncpa [#allocation7], 0 }
   0x2   :  { %11 = vsyncpa [#allocation10], 0 }
   0x3   :  { %12 = vsyncpa [#allocation5], 0  ;;  %s1271_s15 = smov [#allocation6]   ;;  %s1153_s19 = scalar_lea.hbm %s1398_s1, 6144 }
   0x4   :  { %s30_s16 = sshll.u32 %s1271_s15, 4  ;;  %p1154_p0 = scmp.ne.s32.totalorder %s1398_s1, %s1153_s19  ;;  %s31_s16 = int_to_ptr.vmem [resolvable:$true] %s30_s16 }
   0x5   :  { %p1157_p1 = scmp.lt.u32.totalorder %s1153_s19, %s1398_s1 }
   0x7   :  { %p1159_p2 = pnand %p1157_p1, %p1154_p0 }
   0x9   :  { %1162 = shalt.err (!%p1159_p2)
}
   0xa   :  { %s1163_s24 = scalar_lea.vmem %s31_s16, 6144  ;;  %p1168_p4 = scmp.lt.s32.totalorder %s31_s16, %s31_s16 }
   0xb   :  { %p1164_p3 = scmp.ne.s32.totalorder %s31_s16, %s1163_s24  ;;  %p1169_p5 = scmp.lt.s32.totalorder %s1163_s24, %s1163_s24 }
   0xd   :  { %p1170_p6 = por %p1169_p5, %p1168_p4 }
   0xf   :  { %p1171_p7 = pnand %p1170_p6, %p1164_p3 }
  0x11   :  { %1174 = shalt.err (!%p1171_p7)
}
  0x12   :  { %s1272_s25 = smov 192   ;;  %s1273_s26 = smov 12  }
  0x13   :  { %36 = dma.hbm_to_vmem [thread:$0]  %s1398_s1, 6144, %s31_s16, [#allocation7], %s1272_s25, %s1272_s25, %s1273_s26  }
  0x14   :  { %s1274_s29 = smov [#allocation3]   ;;  %s1175_s7 = scalar_lea.hbm %s1397_s0, 256 }
  0x15   :  { %s18_s30 = sshll.u32 %s1274_s29, 4  ;;  %p1176_p8 = scmp.ne.s32.totalorder %s1397_s0, %s1175_s7  ;;  %s19_s30 = int_to_ptr.vmem [resolvable:$true] %s18_s30 }
  0x16   :  { %p1179_p9 = scmp.lt.u32.totalorder %s1175_s7, %s1397_s0 }
  0x18   :  { %p1181_p10 = pnand %p1179_p9, %p1176_p8 }
  0x1a   :  { %1184 = shalt.err (!%p1181_p10)
}
  0x1b   :  { %s1185_s12 = scalar_lea.vmem %s19_s30, 256  ;;  %p1190_p12 = scmp.lt.s32.totalorder %s19_s30, %s19_s30 }
  0x1c   :  { %p1186_p11 = scmp.ne.s32.totalorder %s19_s30, %s1185_s12  ;;  %p1191_p13 = scmp.lt.s32.totalorder %s1185_s12, %s1185_s12 }
  0x1e   :  { %p1192_p0 = por %p1191_p13, %p1190_p12 }
  0x20   :  { %p1193_p1 = pnand %p1192_p0, %p1186_p11 }
  0x22   :  { %1196 = shalt.err (!%p1193_p1)
}
  0x23   :  { %s1275_s1 = smov 128   ;;  %s1276_s13 = smov 8  }
  0x24   :  { %24 = dma.hbm_to_vmem [thread:$0]  %s1397_s0, 256, %s19_s30, [#allocation4], %s1275_s1, %s1275_s1, %s1276_s13  }
  0x25   :  { %s1277_s16 = smov [#allocation8]   ;;  %s1278_s18 = smov [#allocation9]  }
  0x26   :  { %s42_s17 = sshll.u32 %s1277_s16, 4  ;;  %s55_s19 = sshll.u32 %s1278_s18, 4  ;;  %s43_s17 = int_to_ptr.vmem [resolvable:$true] %s42_s17  ;;  %s56_s19 = int_to_ptr.vmem [resolvable:$true] %s55_s19 }
  0x27   :  { %s1197_s22 = scalar_lea.hbm %s1399_s2, 3072 }
  0x28   :  { %p1198_p2 = scmp.ne.s32.totalorder %s1399_s2, %s1197_s22  ;;  %p1201_p3 = scmp.lt.u32.totalorder %s1197_s22, %s1399_s2 }
  0x2a   :  { %p1203_p4 = pnand %p1201_p3, %p1198_p2 }
  0x2c   :  { %1206 = shalt.err (!%p1203_p4)
}
  0x2d   :  { %s1207_s0 = scalar_lea.vmem %s43_s17, 3072  ;;  %p1212_p6 = scmp.lt.s32.totalorder %s43_s17, %s43_s17 }
  0x2e   :  { %p1208_p5 = scmp.ne.s32.totalorder %s43_s17, %s1207_s0  ;;  %p1213_p7 = scmp.lt.s32.totalorder %s1207_s0, %s1207_s0 }
  0x30   :  { %p1214_p8 = por %p1213_p7, %p1212_p6 }
  0x32   :  { %p1215_p9 = pnand %p1214_p8, %p1208_p5 }
  0x34   :  { %1218 = shalt.err (!%p1215_p9)
}
  0x35   :  { %48 = dma.hbm_to_vmem [thread:$0]  %s1399_s2, 3072, %s43_s17, [#allocation7], %s1272_s25, %s1272_s25, %s1273_s26  }
  0x36   :  { %s1219_s7 = scalar_lea.hbm %s1400_s3, 32 }
  0x37   :  { %p1220_p10 = scmp.ne.s32.totalorder %s1400_s3, %s1219_s7  ;;  %p1223_p11 = scmp.lt.u32.totalorder %s1219_s7, %s1400_s3 }
  0x39   :  { %p1225_p12 = pnand %p1223_p11, %p1220_p10 }
  0x3b   :  { %1228 = shalt.err (!%p1225_p12)
}
  0x3c   :  { %s1229_s12 = scalar_lea.vmem %s56_s19, 32  ;;  %p1234_p0 = scmp.lt.s32.totalorder %s56_s19, %s56_s19 }
  0x3d   :  { %p1230_p13 = scmp.ne.s32.totalorder %s56_s19, %s1229_s12  ;;  %p1235_p1 = scmp.lt.s32.totalorder %s1229_s12, %s1229_s12 }
  0x3f   :  { %p1236_p2 = por %p1235_p1, %p1234_p0 }
  0x41   :  { %p1237_p3 = pnand %p1236_p2, %p1230_p13 }
  0x43   :  { %1240 = shalt.err (!%p1237_p3)
}
  0x44   :  { %58 = dma.hbm_to_vmem [thread:$0]  %s1400_s3, 32, %s56_s19, [#allocation10]  }
  0x45   :  { %1263 = dma.done.wait [#allocation4], 256  }
  0x46   :  { %1264 = vsyncadd [#allocation4], 4294967040 }
  0x47   :  { %1265 = dma.done.wait [#allocation7], 9216  }
  0x48   :  { %1266 = vsyncadd [#allocation7], 4294958080 }
  0x49   :  { %1267 = dma.done.wait [#allocation10], 32  }
  0x4a   :  { %1268 = vsyncadd [#allocation10], 4294967264  ;;  %v1053_v0 = vld [vmem:[#allocation6 + $0x4] ss:$12 sps:$4 sm:$0xff]   ;;  %v1055_v1 = vld [vmem:[#allocation6] ss:$12 sps:$4 sm:$0xff]  }
  0x4b   :  { %405 = vmatprep.subr.bf16.mxu0 %v1053_v0  ;;  %v1056_v2 = vld [vmem:[#allocation6 + $0x1c] ss:$12 sps:$4 sm:$0xff]   ;;  %v1058_v3 = vld [vmem:[#allocation6 + $0x18] ss:$12 sps:$4 sm:$0xff]   ;;  %v1059_v4 = vld [vmem:[#allocation6 + $0x34] ss:$12 sps:$4 sm:$0xff]  }
  0x4c   :  { %406 = vmatpush1.bf16.msra.mxu0 %v1055_v1  ;;  %v1061_v5 = vld [vmem:[#allocation6 + $0x30] ss:$12 sps:$4 sm:$0xff]   ;;  %v1062_v6 = vld [vmem:[#allocation6 + $0x4c] ss:$12 sps:$4 sm:$0xff]   ;;  %v1064_v7 = vld [vmem:[#allocation6 + $0x48] ss:$12 sps:$4 sm:$0xff]  }
  0x4d   :  { %407 = vmatprep.subr.bf16.mxu0 %v1056_v2  ;;  %v1065_v8 = vld [vmem:[#allocation6 + $0x64] ss:$12 sps:$4 sm:$0xff]   ;;  %v1067_v9 = vld [vmem:[#allocation6 + $0x60] ss:$12 sps:$4 sm:$0xff]   ;;  %v1068_v10 = vld [vmem:[#allocation6 + $0x7c] ss:$12 sps:$4 sm:$0xff]  }
  0x4e   :  { %v1070_v11 = vld [vmem:[#allocation6 + $0x78] ss:$12 sps:$4 sm:$0xff]   ;;  %v1071_v12 = vld [vmem:[#allocation6 + $0x94] ss:$12 sps:$4 sm:$0xff]   ;;  %v1073_v13 = vld [vmem:[#allocation6 + $0x90] ss:$12 sps:$4 sm:$0xff]  }
  0x4f   :  { %v1074_v14 = vld [vmem:[#allocation6 + $0xac] ss:$12 sps:$4 sm:$0xff]   ;;  %v1103_v15 = vld [vmem:[#allocation3 + $0x4] ss:$8 sps:$4 sm:$0x1f]   ;;  %vm541_vm0 = vcmask 1043459  }
  0x50   :  { %408 = vmatpush1.bf16.msra.mxu0 %v1058_v3  ;;  %v1104_v16 = vld [vmem:[#allocation6 + $0xc8] ss:$12 sps:$4 sm:$0xff]   ;;  %437 = vmatprep.mubr.bf16.mxu0 %v1103_v15  ;;  %v1106_v19 = vld [vmem:[#allocation6 + $0xe0] ss:$12 sps:$4 sm:$0xff]   ;;  %v1108_v21 = vld [vmem:[#allocation6 + $0xf8] ss:$12 sps:$4 sm:$0xff]  }
  0x51   :  { %409 = vmatprep.subr.bf16.mxu0 %v1059_v4  ;;  %v1105_v17 = vld [vmem:[#allocation6 + $0x8] ss:$12 sps:$4 sm:$0xff]   ;;  %990 = vmatprep.subr.bf16.mxu1 %v1104_v16  ;;  %v1107_v20 = vld [vmem:[#allocation6 + $0x20] ss:$12 sps:$4 sm:$0xff]   ;;  %v1077_v22 = vld [vmem:[#allocation6 + $0xc4] ss:$12 sps:$4 sm:$0xff]   ;;  %v493_v4 = vlaneseq }
  0x52   :  { %v1076_v18 = vld [vmem:[#allocation6 + $0xa8] ss:$12 sps:$4 sm:$0xff]   ;;  %480 = vmatprep.mubr.bf16.mxu1 %v1103_v15  ;;  %991 = vmatpush3.bf16.msra.mxu1 %v1105_v17  ;;  %v1079_v23 = vld [vmem:[#allocation6 + $0xc0] ss:$12 sps:$4 sm:$0xff]   ;;  %v1109_v24 = vld [vmem:[#allocation6 + $0x38] ss:$12 sps:$4 sm:$0xff]  }
  0x53   :  { %992 = vmatprep.subr.bf16.mxu1 %v1106_v19  ;;  %v1110_v25 = vld [vmem:[#allocation6 + $0x110] ss:$12 sps:$4 sm:$0xff]   ;;  %v1082_v27 = vld [vmem:[#allocation6 + $0xd8] ss:$12 sps:$4 sm:$0xff]   ;;  %v1083_v28 = vld [vmem:[#allocation6 + $0xf4] ss:$12 sps:$4 sm:$0xff]  }
  0x54   :  { %410 = vmatpush1.bf16.msra.mxu0 %v1061_v5  ;;  %v1080_v26 = vld [vmem:[#allocation6 + $0xdc] ss:$12 sps:$4 sm:$0xff]   ;;  %v1114_v33 = vld [vmem:[#allocation6 + $0x140] ss:$12 sps:$4 sm:$0xff]   ;;  %v1116_v37 = vld [vmem:[#allocation6 + $0x158] ss:$12 sps:$4 sm:$0xff]  }
  0x55   :  { %411 = vmatprep.subr.bf16.mxu0 %v1062_v6  ;;  %v1111_v29 = vld [vmem:[#allocation6 + $0x50] ss:$12 sps:$4 sm:$0xff]   ;;  %v1112_v30 = vld [vmem:[#allocation6 + $0x128] ss:$12 sps:$4 sm:$0xff]   ;;  %v1086_v34 = vld [vmem:[#allocation6 + $0x10c] ss:$12 sps:$4 sm:$0xff]  }
  0x56   :  { %993 = vmatpush3.bf16.msra.mxu1 %v1107_v20  ;;  %v1113_v31 = vld [vmem:[#allocation6 + $0x68] ss:$12 sps:$4 sm:$0xff]   ;;  %v1085_v32 = vld [vmem:[#allocation6 + $0xf0] ss:$12 sps:$4 sm:$0xff]   ;;  %v1115_v35 = vld [vmem:[#allocation6 + $0x80] ss:$12 sps:$4 sm:$0xff]  }
  0x57   :  { %994 = vmatprep.subr.bf16.mxu1 %v1108_v21  ;;  %v1088_v36 = vld [vmem:[#allocation6 + $0x108] ss:$12 sps:$4 sm:$0xff]   ;;  %v1089_v38 = vld [vmem:[#allocation6 + $0x124] ss:$12 sps:$4 sm:$0xff]   ;;  %v1091_v40 = vld [vmem:[#allocation6 + $0x120] ss:$12 sps:$4 sm:$0xff]  }
  0x58   :  { %412 = vmatpush1.bf16.msra.mxu0 %v1064_v7  ;;  %v1117_v39 = vld [vmem:[#allocation6 + $0x98] ss:$12 sps:$4 sm:$0xff]   ;;  %v1092_v41 = vld [vmem:[#allocation6 + $0x13c] ss:$12 sps:$4 sm:$0xff]   ;;  %v1095_v43 = vld [vmem:[#allocation6 + $0x154] ss:$12 sps:$4 sm:$0xff]  }
  0x59   :  { %413 = vmatprep.subr.bf16.mxu0 %v1065_v8  ;;  %v1094_v42 = vld [vmem:[#allocation6 + $0x138] ss:$12 sps:$4 sm:$0xff]   ;;  %v1097_v44 = vld [vmem:[#allocation6 + $0x150] ss:$12 sps:$4 sm:$0xff]   ;;  %v1100_v46 = vld [vmem:[#allocation6 + $0x168] ss:$12 sps:$4 sm:$0xff]  }
  0x5a   :  { %995 = vmatpush3.bf16.msra.mxu1 %v1109_v24  ;;  %v1098_v45 = vld [vmem:[#allocation6 + $0x16c] ss:$12 sps:$4 sm:$0xff]   ;;  %v1118_v48 = vld [vmem:[#allocation6 + $0x170] ss:$12 sps:$4 sm:$0xff]   ;;  %vm542_vm1 = vsmask.f32 3328 }
  0x5b   :  { %996 = vmatprep.subr.bf16.mxu1 %v1110_v25  ;;  %v1101_v47 = vld [vmem:[#allocation3] ss:$8 sps:$4 sm:$0x1f]   ;;  %v1120_v51 = vld [vmem:[#allocation8] ss:$12 sps:$4 sm:$0xff]   ;;  %vm499_vm2 = vcmask 1040384   ;;  %vm543_vm4 = vmand %vm541_vm0, %vm542_vm1 }
  0x5c   :  { %414 = vmatpush1.bf16.msra.mxu0 %v1067_v9  ;;  %v1119_v49 = vld [vmem:[#allocation6 + $0xb0] ss:$12 sps:$4 sm:$0xff]   ;;  %vm500_vm3 = vsmask.f32 256  ;;  %v544_v52 = vld [vmem:[#allocation2] sm:$0x8] }
  0x5d   :  { %415 = vmatprep.subr.bf16.mxu0 %v1068_v10  ;;  %v1122_v50 = vld [vmem:[#allocation8 + $0x4] ss:$12 sps:$4 sm:$0xff]   ;;  %v1279_v53 = vmov 0.0   ;;  %vm501_vm5 = vmand %vm499_vm2, %vm500_vm3  ;;  %v502_v54 = vld [vmem:[#allocation2] sm:$0x1]  ;;  %v545_v55 = vsel %vm543_vm4, 0, %v544_v52 }
  0x5e   :  { %997 = vmatpush3.bf16.msra.mxu1 %v1111_v29  ;;  %v1123_v56 = vld [vmem:[#allocation8 + $0x8] ss:$12 sps:$4 sm:$0xff]   ;;  %v503_v57 = vsel %vm501_vm5, 0, %v502_v54  ;;  %546 = vst [vmem:[#allocation2] sm:$0x8] %v545_v55  ;;  %v494_v8 = vshrl.u32 %v493_v4, 7 }
  0x5f   :  { %998 = vmatprep.subr.bf16.mxu1 %v1112_v30  ;;  %v1126_v58 = vld [vmem:[#allocation8 + $0x1c] ss:$12 sps:$4 sm:$0xff]   ;;  %504 = vst [vmem:[#allocation2] sm:$0x1] %v503_v57  ;;  %v1124_v59 = vld [vmem:[#allocation8 + $0x18] ss:$12 sps:$4 sm:$0xff]  }
  0x60   :  { %416 = vmatpush1.bf16.msra.mxu0 %v1070_v11  ;;  %v1127_v60 = vld [vmem:[#allocation8 + $0x20] ss:$12 sps:$4 sm:$0xff]   ;;  %v1128_v62 = vld [vmem:[#allocation8 + $0x30] ss:$12 sps:$4 sm:$0xff]   ;;  %v1131_v63 = vld [vmem:[#allocation8 + $0x38] ss:$12 sps:$4 sm:$0xff]  }
  0x61   :  { %417 = vmatprep.subr.bf16.mxu0 %v1071_v12  ;;  %v1130_v61 = vld [vmem:[#allocation8 + $0x34] ss:$12 sps:$4 sm:$0xff]   ;;  %v1134_v0 = vld [vmem:[#allocation8 + $0x4c] ss:$12 sps:$4 sm:$0xff]   ;;  %v1135_v2 = vld [vmem:[#allocation8 + $0x50] ss:$12 sps:$4 sm:$0xff]  }
  0x62   :  { %999 = vmatpush3.bf16.msra.mxu1 %v1113_v31  ;;  %v1132_v1 = vld [vmem:[#allocation8 + $0x48] ss:$12 sps:$4 sm:$0xff]   ;;  %v1138_v3 = vld [vmem:[#allocation8 + $0x64] ss:$12 sps:$4 sm:$0xff]   ;;  %v1136_v5 = vld [vmem:[#allocation8 + $0x60] ss:$12 sps:$4 sm:$0xff]  }
  0x63   :  { %1000 = vmatprep.subr.bf16.mxu1 %v1114_v33  ;;  %v1139_v6 = vld [vmem:[#allocation8 + $0x68] ss:$12 sps:$4 sm:$0xff]   ;;  %v1140_v9 = vld [vmem:[#allocation8 + $0x78] ss:$12 sps:$4 sm:$0xff]   ;;  %v1143_v10 = vld [vmem:[#allocation8 + $0x80] ss:$12 sps:$4 sm:$0xff]  }
  0x64   :  { %418 = vmatpush1.bf16.msra.mxu0 %v1073_v13  ;;  %v1142_v7 = vld [vmem:[#allocation8 + $0x7c] ss:$12 sps:$4 sm:$0xff]   ;;  %v841_v11 = vsub.s32 1, %v494_v8  ;;  %v72_v12 = vld [vmem:[#allocation9] sm:$0x3]  ;;  %v1280_v19 = vmov 0  }
  0x65   :  { %419 = vmatprep.subr.bf16.mxu0 %v1074_v14  ;;  %v1146_v13 = vld [vmem:[#allocation8 + $0x94] ss:$12 sps:$4 sm:$0xff]   ;;  %v1144_v15 = vld [vmem:[#allocation8 + $0x90] ss:$12 sps:$4 sm:$0xff]   ;;  %v1147_v16 = vld [vmem:[#allocation8 + $0x98] ss:$12 sps:$4 sm:$0xff]  }
  0x66   :  { %1001 = vmatpush3.bf16.msra.mxu1 %v1115_v35  ;;  %v1370_v14 = vrot.slane %v72_v12, %v841_v11  ;;  %v1150_v17 = vld [vmem:[#allocation8 + $0xac] ss:$12 sps:$4 sm:$0xff]   ;;  %vm1281_vm6 = vmmov 0   ;;  %v1151_v20 = vld [vmem:[#allocation8 + $0xb0] ss:$12 sps:$4 sm:$0xff]   ;;  %v495_v21 = vsub.s32 0, %v494_v8 }
  0x67   :  { %1002 = vmatprep.subr.bf16.mxu1 %v1116_v37  ;;  %vm530_vm7 = vcmask 1046528   ;;  %vm561_vm8 = vsmask.f32 7950  ;;  %vm517_vm9 = vcmask 1042432   ;;  %vm518_vm10 = vsmask.f32 2306 }
  0x68   :  { %420 = vmatpush1.bf16.msra.mxu0 %v1076_v18  ;;  %v1148_v18 = vld [vmem:[#allocation8 + $0xa8] ss:$12 sps:$4 sm:$0xff]   ;;  %v496_v25 = vrot.slane %v72_v12, %v495_v21  ;;  %vm553_vm11 = vcmask 1044484   ;;  %vm562_vm12 = vmand %vm541_vm0, %vm561_vm8  ;;  %vm566_vm13 = vcmask 1041408   ;;  %vm567_vm14 = vsmask.f32 1280 }
  0x69   :  { %421 = vmatprep.subr.bf16.mxu0 %v1077_v22  ;;  %vm519_vm15 = vmand %vm517_vm9, %vm518_vm10  ;;  %v569_v52 = vld [vmem:[#allocation2 + $0x4] sm:$0x3]  ;;  %vm523_vm0 = vcmask 1042434   ;;  %vm524_vm4 = vsmask.f32 7946  ;;  %vm572_vm5 = vcmask 1041409  }
  0x6a   :  { %1003 = vmatpush3.bf16.msra.mxu1 %v1117_v39  ;;  %vm554_vm1 = vmor %vm499_vm2, %vm553_vm11  ;;  %s1282_s3 = smov [#allocation11]  }
  0x6b   :  { %1004 = vmatprep.subr.bf16.mxu1 %v1118_v48  ;;  %vm568_vm3 = vmand %vm566_vm13, %vm567_vm14  ;;  %s893_s26 = sshll.u32 %s1282_s3, 4  ;;  %s894_s26 = int_to_ptr.vmem [resolvable:$true] %s893_s26 }
  0x6c   :  { %422 = vmatpush1.bf16.msra.mxu0 %v1079_v23  ;;  %vm525_vm8 = vmand %vm523_vm0, %vm524_vm4  ;;  %s1241_s1 = scalar_lea.vmem %s894_s26, 64  ;;  %p1246_p5 = scmp.lt.s32.totalorder %s894_s26, %s894_s26 }
  0x6d   :  { %423 = vmatprep.subr.bf16.mxu0 %v1080_v26  ;;  %p1242_p4 = scmp.ne.s32.totalorder %s894_s26, %s1241_s1  ;;  %p1247_p6 = scmp.lt.s32.totalorder %s1241_s1, %s1241_s1 }
  0x6e   :  { %1005 = vmatpush3.bf16.msra.mxu1 %v1119_v49 }
  0x6f   :  { %746 = vmatprep.subr.bf16.mxu1 %v1122_v50  ;;  %p1248_p7 = por %p1247_p6, %p1246_p5 }
  0x70   :  { %424 = vmatpush1.bf16.msra.mxu0 %v1082_v27 }
  0x71   :  { %425 = vmatprep.subr.bf16.mxu0 %v1083_v28  ;;  %481 = vmatmul.mubr.bf16.vlgmr.msra.gmra.mrb[0].mxu1 %v1101_v47  ;;  %p1249_p8 = pnand %p1248_p7, %p1242_p4 }
  0x72   :  { %747 = vmatpush1.bf16.msra.mxu1 %v1120_v51  ;;  %778 = vmatprep.mubr.bf16.mxu1 %v1280_v19 }
  0x73   :  { %748 = vmatprep.subr.bf16.mxu1 %v1126_v58 }
  0x74   :  { %426 = vmatpush1.bf16.msra.mxu0 %v1085_v32 }
  0x75   :  { %427 = vmatprep.subr.bf16.mxu0 %v1086_v34 }
  0x76   :  { %749 = vmatpush1.bf16.msra.mxu1 %v1124_v59 }
  0x77   :  { %750 = vmatprep.subr.bf16.mxu1 %v1130_v61 }
  0x78   :  { %428 = vmatpush1.bf16.msra.mxu0 %v1088_v36 }
  0x79   :  { %429 = vmatprep.subr.bf16.mxu0 %v1089_v38 }
  0x7a   :  { %751 = vmatpush1.bf16.msra.mxu1 %v1128_v62 }
  0x7b   :  { %752 = vmatprep.subr.bf16.mxu1 %v1134_v0 }
  0x7c   :  { %430 = vmatpush1.bf16.msra.mxu0 %v1091_v40 }
  0x7d   :  { %431 = vmatprep.subr.bf16.mxu0 %v1092_v41 }
  0x7e   :  { %753 = vmatpush1.bf16.msra.mxu1 %v1132_v1 }
  0x7f   :  { %754 = vmatprep.subr.bf16.mxu1 %v1138_v3 }
  0x80   :  { %432 = vmatpush1.bf16.msra.mxu0 %v1094_v42 }
  0x81   :  { %433 = vmatprep.subr.bf16.mxu0 %v1095_v43  ;;  %v563_v43 = vld [vmem:[#allocation2] sm:$0x8] }
  0x82   :  { %755 = vmatpush1.bf16.msra.mxu1 %v1136_v5 }
  0x83   :  { %756 = vmatprep.subr.bf16.mxu1 %v1142_v7 }
  0x84   :  { %434 = vmatpush1.bf16.msra.mxu0 %v1097_v44 }
  0x85   :  { %435 = vmatprep.subr.bf16.mxu0 %v1098_v45 }
  0x86   :  { %757 = vmatpush1.bf16.msra.mxu1 %v1140_v9 }
  0x87   :  { %758 = vmatprep.subr.bf16.mxu1 %v1146_v13 }
  0x88   :  { %436 = vmatpush1.bf16.msra.mxu0 %v1100_v46  ;;  %v520_v46 = vld [vmem:[#allocation2] sm:$0x7] }
  0x89   :  { %1021 = vmatprep.subr.bf16.mxu0 %v1279_v53 }
  0x8a   :  { %759 = vmatpush1.bf16.msra.mxu1 %v1144_v15 }
  0x8b   :  { %438 = vmatmul.mubr.bf16.vlgmr.msra.gmra.mrb[0].mxu0 %v1101_v47  ;;  %760 = vmatprep.subr.bf16.mxu1 %v1150_v17 }
  0x8c   :  { %1022 = vmatpush3.bf16.msra.mxu0 %v1123_v56  ;;  %1037 = vmatprep.mubr.msk.bf16.mxu0 %vm1281_vm6, %v1279_v53  ;;  %vm573_vm6 = vsmask.f32 7942 }
  0x8d   :  { %1023 = vmatprep.subr.bf16.mxu0 %v1279_v53  ;;  %vm574_vm10 = vmand %vm572_vm5, %vm573_vm6 }
  0x8e   :  { %761 = vmatpush1.bf16.msra.mxu1 %v1148_v18 }
  0x90   :  { %1024 = vmatpush3.bf16.msra.mxu0 %v1127_v60 }
  0x91   :  { %1025 = vmatprep.subr.bf16.mxu0 %v1279_v53 }
  0x94   :  { %1026 = vmatpush3.bf16.msra.mxu0 %v1131_v63 }
  0x95   :  { %1027 = vmatprep.subr.bf16.mxu0 %v1279_v53 }
  0x98   :  { %1028 = vmatpush3.bf16.msra.mxu0 %v1135_v2 }
  0x99   :  { %1029 = vmatprep.subr.bf16.mxu0 %v1279_v53 }
  0x9c   :  { %1030 = vmatpush3.bf16.msra.mxu0 %v1139_v6 }
  0x9d   :  { %1031 = vmatprep.subr.bf16.mxu0 %v1279_v53 }
  0xa0   :  { %1032 = vmatpush3.bf16.msra.mxu0 %v1143_v10 }
  0xa1   :  { %1033 = vmatprep.subr.bf16.mxu0 %v1279_v53 }
  0xa4   :  { %1034 = vmatpush3.bf16.msra.mxu0 %v1147_v16 }
  0xa5   :  { %1035 = vmatprep.subr.bf16.mxu0 %v1279_v53 }
  0xa8   :  { %1036 = vmatpush3.bf16.msra.mxu0 %v1151_v20 }
 0x144   :  { %v1006_v61 = vpop.f32.mrb[0].mxu1 }
 0x145   :  { %v1007_v62 = vpop.f32.mrb[1].mxu1 }
 0x146   :  { %v1008_v63 = vadd.f32 %v1007_v62, %v1006_v61  ;;  %v1009_v0 = vpop.f32.mrb[2].mxu1 }
 0x147   :  { %v1010_v1 = vpop.f32.mrb[3].mxu1 }
 0x148   :  { %v862_v2 = vrot.slane %v1008_v63, 7  ;;  %v1011_v3 = vadd.f32 %v1010_v1, %v1009_v0 }
 0x14a   :  { %v863_v4 = vrot.slane %v1011_v3, 7 }
 0x14c   :  { %v864_v5 = vsel %vm499_vm2, %v862_v2, %v863_v4  ;;  %vm879_vm2 = vcmask 1046532  }
 0x15e   :  { %v439_v22 = vpop.f32.mrb[0].mxu0 }
 0x15f   :  { %v441_v23 = vpop.f32.mrb[1].mxu0 }
 0x160   :  { %v490_v24 = vrot.slane %v441_v23, 1  ;;  %v443_v26 = vpop.f32.mrb[2].mxu0 }
 0x161   :  { %v445_v27 = vpop.f32.mrb[3].mxu0 }
 0x162   :  { %v492_v28 = vadd.f32 %v490_v24, %v439_v22  ;;  %v531_v29 = vrot.slane %v445_v27, 1 }
 0x164   :  { %v497_v30 = vadd.f32 %v496_v25, %v492_v28  ;;  %v532_v31 = vsel %vm530_vm7, %v490_v24, %v531_v29  ;;  %v536_v32 = vadd.f32 %v531_v29, %v443_v26 }
 0x165   :  { %v535_v33 = vadd.f32 %v532_v31, %v439_v22 }
 0x166   :  { %v498_v34 = vmax.f32 %v497_v30, 0.0  ;;  %v538_v35 = vadd.f32 %v536_v32, %v496_v25 }
 0x167   :  { %v537_v36 = vadd.f32 %v535_v33, %v496_v25 }
 0x168   :  { %v985_v37 = vpack.c.bf16 %v498_v34, %v498_v34  ;;  %v540_v38 = vmax.f32 %v538_v35, 0.0 }
 0x169   :  { %v539_v39 = vmax.f32 %v537_v36, 0.0 }
 0x16a   :  { %v510_v40 = vshrl.u32 %v985_v37, 16  ;;  %v987_v42 = vpack.c.bf16 %v540_v38, %v540_v38  ;;  %v513_v45 = vshll.u32 %v985_v37, 16 }
 0x16b   :  { %v986_v41 = vpack.c.bf16 %v539_v39, %v539_v39 }
 0x16c   :  { %v512_v44 = vrot.slane %v510_v40, 7  ;;  %v557_v50 = vrot.slane %v987_v42, 7 }
 0x16d   :  { %v555_v47 = vrot.slane %v986_v41, 7 }
 0x16e   :  { %v515_v48 = vor.u32 %v513_v45, %v512_v44 }
 0x16f   :  { %v556_v49 = vrot.slane %v555_v47, 4  ;;  %v564_v51 = vsel %vm562_vm12, %v555_v47, %v563_v43 }
 0x170   :  { %v521_v53 = vsel %vm519_vm15, %v515_v48, %v520_v46  ;;  %565 = vst [vmem:[#allocation2] sm:$0x8] %v564_v51 }
 0x171   :  { %522 = vst [vmem:[#allocation2] sm:$0x7] %v521_v53  ;;  %v558_v54 = vsel %vm554_vm1, %v556_v49, %v557_v50 }
 0x172   :  { %v570_v55 = vsel %vm568_vm3, %v558_v54, %v569_v52 }
 0x173   :  { %571 = vst [vmem:[#allocation2 + $0x4] sm:$0x3] %v570_v55 }
 0x178   :  { %v526_v56 = vld [vmem:[#allocation2] sm:$0x4] }
 0x179   :  { %v527_v57 = vsel %vm525_vm8, 0, %v526_v56 }
 0x17a   :  { %528 = vst [vmem:[#allocation2] sm:$0x4] %v527_v57  ;;  %v575_v58 = vld [vmem:[#allocation2 + $0x4] sm:$0x2] }
 0x17b   :  { %v576_v59 = vsel %vm574_vm10, 0, %v575_v58 }
 0x17c   :  { %577 = vst [vmem:[#allocation2 + $0x4] sm:$0x2] %v576_v59 }
 0x183   :  { %v1152_v60 = vld [vmem:[#allocation2] sm:$0x3f]  }
 0x184   :  { %779 = vmatmul.mubr.bf16.vlgmr.msra.gmra.mrb[4].mxu1 %v1152_v60  ;;  %1038 = vmatmul.mubr.bf16.vlgmr.msra.gmra.mrb[4].mxu0 %v1152_v60 }
 0x257   :  { %v780_v6 = vpop.f32.mrb[4].mxu1  ;;  %v823_v7 = vpop.f32.mrb[4].mxu0 }
 0x258   :  { %v782_v8 = vpop.f32.mrb[5].mxu1  ;;  %v1039_v9 = vpop.f32.mrb[5].mxu0  ;;  %v835_v16 = vrot.slane %v823_v7, 2 }
 0x259   :  { %v831_v10 = vrot.slane %v782_v8, 1  ;;  %v784_v11 = vpop.f32.mrb[6].mxu1  ;;  %v826_v12 = vpop.f32.mrb[6].mxu0 }
 0x25a   :  { %v786_v13 = vpop.f32.mrb[7].mxu1  ;;  %v1040_v15 = vpop.f32.mrb[7].mxu0  ;;  %v855_v20 = vrot.slane %v826_v12, 2 }
 0x25b   :  { %v833_v17 = vadd.f32 %v831_v10, %v780_v6  ;;  %v848_v18 = vrot.slane %v786_v13, 1 }
 0x25d   :  { %v837_v19 = vadd.f32 %v835_v16, %v833_v17  ;;  %v849_v21 = vsel %vm530_vm7, %v831_v10, %v848_v18  ;;  %v853_v22 = vadd.f32 %v848_v18, %v784_v11  ;;  %vm880_vm7 = vmor %vm517_vm9, %vm879_vm2 }
 0x25e   :  { %v852_v23 = vadd.f32 %v849_v21, %v780_v6 }
 0x25f   :  { %v838_v24 = vadd.f32 %v1008_v63, %v837_v19  ;;  %v858_v25 = vadd.f32 %v855_v20, %v853_v22 }
 0x260   :  { %v857_v26 = vadd.f32 %v855_v20, %v852_v23 }
 0x261   :  { %v868_v27 = vadd.f32 %v864_v5, %v858_v25  ;;  %v843_v28 = vadd.f32 %v1370_v14, %v838_v24 }
 0x262   :  { %v867_v29 = vadd.f32 %v862_v2, %v857_v26 }
 0x263   :  { %v870_v30 = vadd.f32 %v868_v27, %v1370_v14  ;;  %v844_v31 = vmax.f32 %v843_v28, 0.0 }
 0x264   :  { %v869_v32 = vadd.f32 %v867_v29, %v1370_v14 }
 0x265   :  { %v872_v33 = vmax.f32 %v870_v30, 0.0  ;;  %v845_v34 = vpack.c.bf16 %v844_v31, %v844_v31 }
 0x266   :  { %v871_v35 = vmax.f32 %v869_v32, 0.0 }
 0x267   :  { %v989_v36 = vpack.c.bf16 %v872_v33, %v872_v33  ;;  %846 = vst [vmem:[#allocation11] sm:$0x3] %v845_v34 }
 0x268   :  { %v988_v37 = vpack.c.bf16 %v871_v35, %v871_v35 }
 0x269   :  { %v883_v38 = vrot.slane %v989_v36, 5 }
 0x26a   :  { %v984_v39 = vrot.slane %v988_v37, 9 }
 0x26c   :  { %v884_v40 = vsel %vm880_vm7, %v984_v39, %v883_v38 }
 0x26d   :  { %886 = vst [vmem:[#allocation11] sm:$0xc] %v884_v40 }
 0x26e   :  { %1252 = shalt.err (!%p1249_p8)
}
 0x26f   :  { %s1253_s15 = scalar_lea.hbm %s1401_s4, 64 }
 0x270   :  { %p1254_p9 = scmp.ne.s32.totalorder %s1401_s4, %s1253_s15  ;;  %p1257_p10 = scmp.lt.u32.totalorder %s1253_s15, %s1401_s4 }
 0x272   :  { %p1259_p11 = pnand %p1257_p10, %p1254_p9 }
 0x274   :  { %1262 = shalt.err (!%p1259_p11)
}
 0x275   :  { %896 = dma.vmem_to_hbm [thread:$0]  %s894_s26, 64, %s1401_s4, [#allocation5]  }
 0x276   :  { %1269 = dma.done.wait [#allocation5], 64  }
 0x277   :  { %1270 = vsyncadd [#allocation5], 4294967232 }
 0x278   :  { %900 = vsyncpa [#allocation4], 1 }
 0x279   :  { %901 = vsyncpa [#allocation7], 1 }
 0x27a   :  { %902 = vsyncpa [#allocation10], 1 }
 0x27b   :  { %903 = vsyncpa [#allocation5], 1 }

// kernel: feature_extractor.8
= control target key start
LH: loop header
LB: loop body
LE: loop exit
PB: predicated region body
PF: predicated region fallthrough
CT: control target
= control target key end

     0   :  { %9 = vsyncpa [#allocation4], 0  ;;  %s2480_s0 = inlined_call_operand.hbm [shape: bf16[4,256], index: 0, kind: input, shape index: {}]   ;;  %s2481_s1 = inlined_call_operand.hbm [shape: bf16[256,768], index: 1, kind: input, shape index: {}]   ;;  %s2482_s2 = inlined_call_operand.hbm [shape: bf16[256,768], index: 2, kind: input, shape index: {}]   ;;  %s2483_s3 = inlined_call_operand.hbm [shape: f32[2,256], index: 3, kind: input, shape index: {}]   ;;  %s2484_s4 = inlined_call_operand.hbm [shape: bf16[2,256], index: 4, kind: output, shape index: {}]  }
   0x1   :  { %10 = vsyncpa [#allocation7], 0 }
   0x2   :  { %11 = vsyncpa [#allocation10], 0 }
   0x3   :  { %12 = vsyncpa [#allocation5], 0  ;;  %s2304_s15 = smov [#allocation6]   ;;  %s2186_s19 = scalar_lea.hbm %s2481_s1, 12288 }
   0x4   :  { %s28_s16 = sshll.u32 %s2304_s15, 4  ;;  %p2187_p0 = scmp.ne.s32.totalorder %s2481_s1, %s2186_s19  ;;  %s29_s16 = int_to_ptr.vmem [resolvable:$true] %s28_s16 }
   0x5   :  { %p2190_p1 = scmp.lt.u32.totalorder %s2186_s19, %s2481_s1 }
   0x7   :  { %p2192_p2 = pnand %p2190_p1, %p2187_p0 }
   0x9   :  { %2195 = shalt.err (!%p2192_p2)
}
   0xa   :  { %s2196_s24 = scalar_lea.vmem %s29_s16, 12288  ;;  %p2201_p4 = scmp.lt.s32.totalorder %s29_s16, %s29_s16 }
   0xb   :  { %p2197_p3 = scmp.ne.s32.totalorder %s29_s16, %s2196_s24  ;;  %p2202_p5 = scmp.lt.s32.totalorder %s2196_s24, %s2196_s24 }
   0xd   :  { %p2203_p6 = por %p2202_p5, %p2201_p4 }
   0xf   :  { %p2204_p7 = pnand %p2203_p6, %p2197_p3 }
  0x11   :  { %2207 = shalt.err (!%p2204_p7)
}
  0x12   :  { %s2305_s25 = smov 384   ;;  %s2306_s26 = smov 24  }
  0x13   :  { %34 = dma.hbm_to_vmem [thread:$0]  %s2481_s1, 12288, %s29_s16, [#allocation7], %s2305_s25, %s2305_s25, %s2306_s26  }
  0x14   :  { %s2307_s29 = smov [#allocation3]   ;;  %s2308_s5 = smov [#allocation8]  }
  0x15   :  { %s19_s30 = sshll.u32 %s2307_s29, 4  ;;  %s40_s6 = sshll.u32 %s2308_s5, 4  ;;  %s20_s30 = int_to_ptr.vmem [resolvable:$true] %s19_s30  ;;  %s41_s6 = int_to_ptr.vmem [resolvable:$true] %s40_s6 }
  0x16   :  { %s2208_s9 = scalar_lea.hbm %s2480_s0, 64 }
  0x17   :  { %p2209_p8 = scmp.ne.s32.totalorder %s2480_s0, %s2208_s9  ;;  %p2212_p9 = scmp.lt.u32.totalorder %s2208_s9, %s2480_s0 }
  0x19   :  { %p2214_p10 = pnand %p2212_p9, %p2209_p8 }
  0x1b   :  { %2217 = shalt.err (!%p2214_p10)
}
  0x1c   :  { %s2218_s1 = scalar_lea.vmem %s20_s30, 64  ;;  %p2223_p12 = scmp.lt.s32.totalorder %s20_s30, %s20_s30 }
  0x1d   :  { %p2219_p11 = scmp.ne.s32.totalorder %s20_s30, %s2218_s1  ;;  %p2224_p13 = scmp.lt.s32.totalorder %s2218_s1, %s2218_s1 }
  0x1f   :  { %p2225_p0 = por %p2224_p13, %p2223_p12 }
  0x21   :  { %p2226_p1 = pnand %p2225_p0, %p2219_p11 }
  0x23   :  { %2229 = shalt.err (!%p2226_p1)
}
  0x24   :  { %22 = dma.hbm_to_vmem [thread:$0]  %s2480_s0, 64, %s20_s30, [#allocation4]  }
  0x25   :  { %s2230_s18 = scalar_lea.hbm %s2482_s2, 12288 }
  0x26   :  { %p2231_p2 = scmp.ne.s32.totalorder %s2482_s2, %s2230_s18  ;;  %p2234_p3 = scmp.lt.u32.totalorder %s2230_s18, %s2482_s2 }
  0x28   :  { %p2236_p4 = pnand %p2234_p3, %p2231_p2 }
  0x2a   :  { %2239 = shalt.err (!%p2236_p4)
}
  0x2b   :  { %s2240_s23 = scalar_lea.vmem %s41_s6, 12288  ;;  %p2245_p6 = scmp.lt.s32.totalorder %s41_s6, %s41_s6 }
  0x2c   :  { %p2241_p5 = scmp.ne.s32.totalorder %s41_s6, %s2240_s23  ;;  %p2246_p7 = scmp.lt.s32.totalorder %s2240_s23, %s2240_s23 }
  0x2e   :  { %p2247_p8 = por %p2246_p7, %p2245_p6 }
  0x30   :  { %p2248_p9 = pnand %p2247_p8, %p2241_p5 }
  0x32   :  { %2251 = shalt.err (!%p2248_p9)
}
  0x33   :  { %46 = dma.hbm_to_vmem [thread:$0]  %s2482_s2, 12288, %s41_s6, [#allocation7], %s2305_s25, %s2305_s25, %s2306_s26  }
  0x34   :  { %s2309_s27 = smov [#allocation9]   ;;  %s2252_s5 = scalar_lea.hbm %s2483_s3, 64 }
  0x35   :  { %s53_s28 = sshll.u32 %s2309_s27, 4  ;;  %p2253_p10 = scmp.ne.s32.totalorder %s2483_s3, %s2252_s5  ;;  %s54_s28 = int_to_ptr.vmem [resolvable:$true] %s53_s28 }
  0x36   :  { %p2256_p11 = scmp.lt.u32.totalorder %s2252_s5, %s2483_s3 }
  0x38   :  { %p2258_p12 = pnand %p2256_p11, %p2253_p10 }
  0x3a   :  { %2261 = shalt.err (!%p2258_p12)
}
  0x3b   :  { %s2262_s11 = scalar_lea.vmem %s54_s28, 64  ;;  %p2267_p0 = scmp.lt.s32.totalorder %s54_s28, %s54_s28 }
  0x3c   :  { %p2263_p13 = scmp.ne.s32.totalorder %s54_s28, %s2262_s11  ;;  %p2268_p1 = scmp.lt.s32.totalorder %s2262_s11, %s2262_s11 }
  0x3e   :  { %p2269_p2 = por %p2268_p1, %p2267_p0 }
  0x40   :  { %p2270_p3 = pnand %p2269_p2, %p2263_p13 }
  0x42   :  { %2273 = shalt.err (!%p2270_p3)
}
  0x43   :  { %56 = dma.hbm_to_vmem [thread:$0]  %s2483_s3, 64, %s54_s28, [#allocation10]  }
  0x44   :  { %2296 = dma.done.wait [#allocation4], 64  }
  0x45   :  { %2297 = vsyncadd [#allocation4], 4294967232 }
  0x46   :  { %2298 = dma.done.wait [#allocation7], 24576  }
  0x47   :  { %2299 = vsyncadd [#allocation7], 4294942720 }
  0x48   :  { %2300 = dma.done.wait [#allocation10], 64  }
  0x49   :  { %2301 = vsyncadd [#allocation10], 4294967232  ;;  %v1896_v0 = vld [vmem:[#allocation6 + $0x4] ss:$24 sps:$4 sm:$0xff]   ;;  %v1900_v2 = vld [vmem:[#allocation6] ss:$24 sps:$4 sm:$0xff]  }
  0x4a   :  { %v1898_v1 = vld [vmem:[#allocation6 + $0xc] ss:$24 sps:$4 sm:$0xff]   ;;  %659 = vmatprep.subr.bf16.mxu0 %v1896_v0  ;;  %v1901_v3 = vld [vmem:[#allocation6 + $0x8] ss:$24 sps:$4 sm:$0xff]   ;;  %v1904_v5 = vld [vmem:[#allocation6 + $0x3c] ss:$24 sps:$4 sm:$0xff]  }
  0x4b   :  { %700 = vmatprep.subr.bf16.mxu1 %v1898_v1  ;;  %v1902_v4 = vld [vmem:[#allocation6 + $0x34] ss:$24 sps:$4 sm:$0xff]   ;;  %660 = vmatpush1.bf16.msra.mxu0 %v1900_v2  ;;  %v1906_v6 = vld [vmem:[#allocation6 + $0x30] ss:$24 sps:$4 sm:$0xff]   ;;  %v1908_v8 = vld [vmem:[#allocation6 + $0x64] ss:$24 sps:$4 sm:$0xff]  }
  0x4c   :  { %701 = vmatpush1.bf16.msra.mxu1 %v1901_v3  ;;  %661 = vmatprep.subr.bf16.mxu0 %v1902_v4  ;;  %v1907_v7 = vld [vmem:[#allocation6 + $0x38] ss:$24 sps:$4 sm:$0xff]   ;;  %v1910_v9 = vld [vmem:[#allocation6 + $0x6c] ss:$24 sps:$4 sm:$0xff]   ;;  %v1913_v11 = vld [vmem:[#allocation6 + $0x68] ss:$24 sps:$4 sm:$0xff]  }
  0x4d   :  { %702 = vmatprep.subr.bf16.mxu1 %v1904_v5  ;;  %v1912_v10 = vld [vmem:[#allocation6 + $0x60] ss:$24 sps:$4 sm:$0xff]   ;;  %v1914_v12 = vld [vmem:[#allocation6 + $0x94] ss:$24 sps:$4 sm:$0xff]   ;;  %v1918_v14 = vld [vmem:[#allocation6 + $0x90] ss:$24 sps:$4 sm:$0xff]  }
  0x4e   :  { %v1916_v13 = vld [vmem:[#allocation6 + $0x9c] ss:$24 sps:$4 sm:$0xff]   ;;  %v1919_v15 = vld [vmem:[#allocation6 + $0x98] ss:$24 sps:$4 sm:$0xff]   ;;  %v1922_v17 = vld [vmem:[#allocation6 + $0xcc] ss:$24 sps:$4 sm:$0xff]  }
  0x4f   :  { %662 = vmatpush1.bf16.msra.mxu0 %v1906_v6  ;;  %v1920_v16 = vld [vmem:[#allocation6 + $0xc4] ss:$24 sps:$4 sm:$0xff]   ;;  %v1924_v18 = vld [vmem:[#allocation6 + $0xc0] ss:$24 sps:$4 sm:$0xff]   ;;  %v1926_v20 = vld [vmem:[#allocation6 + $0xf4] ss:$24 sps:$4 sm:$0xff]  }
  0x50   :  { %703 = vmatpush1.bf16.msra.mxu1 %v1907_v7  ;;  %663 = vmatprep.subr.bf16.mxu0 %v1908_v8  ;;  %v1925_v19 = vld [vmem:[#allocation6 + $0xc8] ss:$24 sps:$4 sm:$0xff]   ;;  %v1928_v21 = vld [vmem:[#allocation6 + $0xfc] ss:$24 sps:$4 sm:$0xff]   ;;  %v1931_v23 = vld [vmem:[#allocation6 + $0xf8] ss:$24 sps:$4 sm:$0xff]  }
  0x51   :  { %704 = vmatprep.subr.bf16.mxu1 %v1910_v9  ;;  %v1930_v22 = vld [vmem:[#allocation6 + $0xf0] ss:$24 sps:$4 sm:$0xff]   ;;  %v1932_v24 = vld [vmem:[#allocation6 + $0x124] ss:$24 sps:$4 sm:$0xff]   ;;  %v1936_v26 = vld [vmem:[#allocation6 + $0x120] ss:$24 sps:$4 sm:$0xff]  }
  0x52   :  { %v1934_v25 = vld [vmem:[#allocation6 + $0x12c] ss:$24 sps:$4 sm:$0xff]   ;;  %v1937_v27 = vld [vmem:[#allocation6 + $0x128] ss:$24 sps:$4 sm:$0xff]   ;;  %v1940_v29 = vld [vmem:[#allocation6 + $0x15c] ss:$24 sps:$4 sm:$0xff]  }
  0x53   :  { %664 = vmatpush1.bf16.msra.mxu0 %v1912_v10  ;;  %v1938_v28 = vld [vmem:[#allocation6 + $0x154] ss:$24 sps:$4 sm:$0xff]   ;;  %v1942_v30 = vld [vmem:[#allocation6 + $0x150] ss:$24 sps:$4 sm:$0xff]   ;;  %v1944_v32 = vld [vmem:[#allocation6 + $0x184] ss:$24 sps:$4 sm:$0xff]  }
  0x54   :  { %705 = vmatpush1.bf16.msra.mxu1 %v1913_v11  ;;  %665 = vmatprep.subr.bf16.mxu0 %v1914_v12  ;;  %v1943_v31 = vld [vmem:[#allocation6 + $0x158] ss:$24 sps:$4 sm:$0xff]   ;;  %v1946_v33 = vld [vmem:[#allocation6 + $0x18c] ss:$24 sps:$4 sm:$0xff]   ;;  %v1949_v35 = vld [vmem:[#allocation6 + $0x188] ss:$24 sps:$4 sm:$0xff]  }
  0x55   :  { %706 = vmatprep.subr.bf16.mxu1 %v1916_v13  ;;  %v1948_v34 = vld [vmem:[#allocation6 + $0x180] ss:$24 sps:$4 sm:$0xff]   ;;  %v1950_v36 = vld [vmem:[#allocation6 + $0x1b4] ss:$24 sps:$4 sm:$0xff]   ;;  %v1954_v38 = vld [vmem:[#allocation6 + $0x1b0] ss:$24 sps:$4 sm:$0xff]  }
  0x56   :  { %v1952_v37 = vld [vmem:[#allocation6 + $0x1bc] ss:$24 sps:$4 sm:$0xff]   ;;  %v1955_v39 = vld [vmem:[#allocation6 + $0x1b8] ss:$24 sps:$4 sm:$0xff]   ;;  %v1958_v41 = vld [vmem:[#allocation6 + $0x1ec] ss:$24 sps:$4 sm:$0xff]  }
  0x57   :  { %666 = vmatpush1.bf16.msra.mxu0 %v1918_v14  ;;  %v1956_v40 = vld [vmem:[#allocation6 + $0x1e4] ss:$24 sps:$4 sm:$0xff]   ;;  %v1960_v42 = vld [vmem:[#allocation6 + $0x1e0] ss:$24 sps:$4 sm:$0xff]   ;;  %v1962_v44 = vld [vmem:[#allocation6 + $0x214] ss:$24 sps:$4 sm:$0xff]  }
  0x58   :  { %707 = vmatpush1.bf16.msra.mxu1 %v1919_v15  ;;  %667 = vmatprep.subr.bf16.mxu0 %v1920_v16  ;;  %v1961_v43 = vld [vmem:[#allocation6 + $0x1e8] ss:$24 sps:$4 sm:$0xff]   ;;  %v1964_v45 = vld [vmem:[#allocation6 + $0x21c] ss:$24 sps:$4 sm:$0xff]   ;;  %v1967_v48 = vld [vmem:[#allocation6 + $0x218] ss:$24 sps:$4 sm:$0xff]  }
  0x59   :  { %708 = vmatprep.subr.bf16.mxu1 %v1922_v17  ;;  %v2391_v46 = vld.sshfl [vmem:[#allocation3] sm:$0x33 pattern:$0x76325410]  ;;  %v1966_v47 = vld [vmem:[#allocation6 + $0x210] ss:$24 sps:$4 sm:$0xff]  }
  0x5a   :  { %v176_v49 = vcombine.high %v2391_v46, %v2391_v46  ;;  %v1968_v50 = vld [vmem:[#allocation6 + $0x244] ss:$24 sps:$4 sm:$0xff]   ;;  %v1972_v52 = vld [vmem:[#allocation6 + $0x240] ss:$24 sps:$4 sm:$0xff]   ;;  %v1974_v54 = vld [vmem:[#allocation6 + $0x274] ss:$24 sps:$4 sm:$0xff]  }
  0x5b   :  { %668 = vmatpush1.bf16.msra.mxu0 %v1924_v18  ;;  %v1970_v51 = vld [vmem:[#allocation6 + $0x24c] ss:$24 sps:$4 sm:$0xff]   ;;  %v1973_v53 = vld [vmem:[#allocation6 + $0x248] ss:$24 sps:$4 sm:$0xff]   ;;  %v1976_v55 = vld [vmem:[#allocation6 + $0x27c] ss:$24 sps:$4 sm:$0xff]  }
  0x5c   :  { %709 = vmatpush1.bf16.msra.mxu1 %v1925_v19  ;;  %669 = vmatprep.subr.bf16.mxu0 %v1926_v20  ;;  %v1978_v56 = vld [vmem:[#allocation6 + $0x270] ss:$24 sps:$4 sm:$0xff]   ;;  %v1980_v58 = vld [vmem:[#allocation6 + $0x2a4] ss:$24 sps:$4 sm:$0xff]   ;;  %v1984_v60 = vld [vmem:[#allocation6 + $0x2a0] ss:$24 sps:$4 sm:$0xff]  }
  0x5d   :  { %710 = vmatprep.subr.bf16.mxu1 %v1928_v21  ;;  %691 = vmatprep.mubr.bf16.mxu0 %v176_v49  ;;  %v1979_v57 = vld [vmem:[#allocation6 + $0x278] ss:$24 sps:$4 sm:$0xff]   ;;  %v1982_v59 = vld [vmem:[#allocation6 + $0x2ac] ss:$24 sps:$4 sm:$0xff]   ;;  %v1985_v61 = vld [vmem:[#allocation6 + $0x2a8] ss:$24 sps:$4 sm:$0xff]  }
  0x5e   :  { %732 = vmatprep.mubr.bf16.mxu1 %v176_v49  ;;  %v1986_v62 = vld [vmem:[#allocation6 + $0x2d4] ss:$24 sps:$4 sm:$0xff]   ;;  %v1990_v0 = vld [vmem:[#allocation6 + $0x2d0] ss:$24 sps:$4 sm:$0xff]   ;;  %v1997_v4 = vld [vmem:[#allocation6 + $0x44] ss:$24 sps:$4 sm:$0xff]  }
  0x5f   :  { %670 = vmatpush1.bf16.msra.mxu0 %v1930_v22  ;;  %v1988_v63 = vld [vmem:[#allocation6 + $0x2dc] ss:$24 sps:$4 sm:$0xff]   ;;  %v1991_v1 = vld [vmem:[#allocation6 + $0x2d8] ss:$24 sps:$4 sm:$0xff]   ;;  %vm805_vm0 = vcmask 1040384   ;;  %vm808_vm2 = vcmask 1044484  }
  0x60   :  { %711 = vmatpush1.bf16.msra.mxu1 %v1931_v23  ;;  %671 = vmatprep.subr.bf16.mxu0 %v1932_v24  ;;  %v1994_v2 = vld [vmem:[#allocation6 + $0x14] ss:$24 sps:$4 sm:$0xff]   ;;  %v1992_v3 = vld [vmem:[#allocation6 + $0x10] ss:$24 sps:$4 sm:$0xff]   ;;  %v2042_v5 = vld [vmem:[#allocation8 + $0x4] ss:$24 sps:$4 sm:$0xff]  }
  0x61   :  { %712 = vmatprep.subr.bf16.mxu1 %v1934_v25  ;;  %v2040_v6 = vld [vmem:[#allocation8] ss:$24 sps:$4 sm:$0xff]   ;;  %v2048_v8 = vld [vmem:[#allocation8 + $0x34] ss:$24 sps:$4 sm:$0xff]   ;;  %v2046_v10 = vld [vmem:[#allocation8 + $0x30] ss:$24 sps:$4 sm:$0xff]  }
  0x62   :  { %v1995_v7 = vld [vmem:[#allocation6 + $0x40] ss:$24 sps:$4 sm:$0xff]   ;;  %v2000_v9 = vld [vmem:[#allocation6 + $0x74] ss:$24 sps:$4 sm:$0xff]   ;;  %v2054_v11 = vld [vmem:[#allocation8 + $0x64] ss:$24 sps:$4 sm:$0xff]  }
  0x63   :  { %672 = vmatpush1.bf16.msra.mxu0 %v1936_v26  ;;  %v1998_v12 = vld [vmem:[#allocation6 + $0x70] ss:$24 sps:$4 sm:$0xff]   ;;  %v2003_v13 = vld [vmem:[#allocation6 + $0xa4] ss:$24 sps:$4 sm:$0xff]   ;;  %v2052_v14 = vld [vmem:[#allocation8 + $0x60] ss:$24 sps:$4 sm:$0xff]  }
  0x64   :  { %713 = vmatpush1.bf16.msra.mxu1 %v1937_v27  ;;  %673 = vmatprep.subr.bf16.mxu0 %v1938_v28  ;;  %v2060_v15 = vld [vmem:[#allocation8 + $0x94] ss:$24 sps:$4 sm:$0xff]   ;;  %v2001_v16 = vld [vmem:[#allocation6 + $0xa0] ss:$24 sps:$4 sm:$0xff]   ;;  %v2058_v18 = vld [vmem:[#allocation8 + $0x90] ss:$24 sps:$4 sm:$0xff]  }
  0x65   :  { %714 = vmatprep.subr.bf16.mxu1 %v1940_v29  ;;  %v2006_v17 = vld [vmem:[#allocation6 + $0xd4] ss:$24 sps:$4 sm:$0xff]   ;;  %v2066_v19 = vld [vmem:[#allocation8 + $0xc4] ss:$24 sps:$4 sm:$0xff]   ;;  %v2004_v20 = vld [vmem:[#allocation6 + $0xd0] ss:$24 sps:$4 sm:$0xff]  }
  0x66   :  { %v2009_v21 = vld [vmem:[#allocation6 + $0x104] ss:$24 sps:$4 sm:$0xff]   ;;  %v2007_v22 = vld [vmem:[#allocation6 + $0x100] ss:$24 sps:$4 sm:$0xff]   ;;  %v2072_v24 = vld [vmem:[#allocation8 + $0xf4] ss:$24 sps:$4 sm:$0xff]  }
  0x67   :  { %674 = vmatpush1.bf16.msra.mxu0 %v1942_v30  ;;  %v2064_v23 = vld [vmem:[#allocation8 + $0xc0] ss:$24 sps:$4 sm:$0xff]   ;;  %v2012_v25 = vld [vmem:[#allocation6 + $0x134] ss:$24 sps:$4 sm:$0xff]   ;;  %v2070_v26 = vld [vmem:[#allocation8 + $0xf0] ss:$24 sps:$4 sm:$0xff]  }
  0x68   :  { %715 = vmatpush1.bf16.msra.mxu1 %v1943_v31  ;;  %675 = vmatprep.subr.bf16.mxu0 %v1944_v32  ;;  %v2078_v27 = vld [vmem:[#allocation8 + $0x124] ss:$24 sps:$4 sm:$0xff]   ;;  %v2010_v28 = vld [vmem:[#allocation6 + $0x130] ss:$24 sps:$4 sm:$0xff]   ;;  %v2076_v30 = vld [vmem:[#allocation8 + $0x120] ss:$24 sps:$4 sm:$0xff]  }
  0x69   :  { %716 = vmatprep.subr.bf16.mxu1 %v1946_v33  ;;  %v2015_v29 = vld [vmem:[#allocation6 + $0x164] ss:$24 sps:$4 sm:$0xff]   ;;  %v2084_v31 = vld [vmem:[#allocation8 + $0x154] ss:$24 sps:$4 sm:$0xff]   ;;  %v2013_v32 = vld [vmem:[#allocation6 + $0x160] ss:$24 sps:$4 sm:$0xff]  }
  0x6a   :  { %v2018_v33 = vld [vmem:[#allocation6 + $0x194] ss:$24 sps:$4 sm:$0xff]   ;;  %vm806_vm1 = vsmask.f32 256  ;;  %vm809_vm4 = vsmask.f32 4352 }
  0x6b   :  { %676 = vmatpush1.bf16.msra.mxu0 %v1948_v34  ;;  %v2082_v34 = vld [vmem:[#allocation8 + $0x150] ss:$24 sps:$4 sm:$0xff]   ;;  %vm2399_vm3 = vmand %vm805_vm0, %vm806_vm1  ;;  %vm834_vm7 = vcmask 1041409   ;;  %vm835_vm8 = vsmask.f32 1280  ;;  %vm837_vm9 = vcmask 1045509  }
  0x6c   :  { %717 = vmatpush1.bf16.msra.mxu1 %v1949_v35  ;;  %677 = vmatprep.subr.bf16.mxu0 %v1950_v36  ;;  %v2016_v35 = vld [vmem:[#allocation6 + $0x190] ss:$24 sps:$4 sm:$0xff]   ;;  %v2021_v36 = vld [vmem:[#allocation6 + $0x1c4] ss:$24 sps:$4 sm:$0xff]   ;;  %vm810_vm5 = vmand %vm808_vm2, %vm809_vm4  ;;  %vm838_vm10 = vsmask.f32 5376 }
  0x6d   :  { %718 = vmatprep.subr.bf16.mxu1 %v1952_v37  ;;  %v2019_v37 = vld [vmem:[#allocation6 + $0x1c0] ss:$24 sps:$4 sm:$0xff]   ;;  %vm811_vm6 = vmor %vm810_vm5, %vm2399_vm3  ;;  %vm844_vm14 = vsmask.f32 7942  ;;  %vm846_vm15 = vsmask.f32 7958 }
  0x6e   :  { %vm2407_vm11 = vmand %vm834_vm7, %vm835_vm8  ;;  %vm854_vm8 = vcmask 1042434   ;;  %s2311_s3 = smov [#allocation11]  }
  0x6f   :  { %678 = vmatpush1.bf16.msra.mxu0 %v1954_v38  ;;  %v2024_v38 = vld [vmem:[#allocation6 + $0x1f4] ss:$24 sps:$4 sm:$0xff]   ;;  %vm839_vm12 = vmand %vm837_vm9, %vm838_vm10  ;;  %s1678_s26 = sshll.u32 %s2311_s3, 4  ;;  %s1679_s26 = int_to_ptr.vmem [resolvable:$true] %s1678_s26 }
  0x70   :  { %719 = vmatpush1.bf16.msra.mxu1 %v1955_v39  ;;  %679 = vmatprep.subr.bf16.mxu0 %v1956_v40  ;;  %v2022_v39 = vld [vmem:[#allocation6 + $0x1f0] ss:$24 sps:$4 sm:$0xff]   ;;  %v2027_v40 = vld [vmem:[#allocation6 + $0x224] ss:$24 sps:$4 sm:$0xff]   ;;  %vm840_vm13 = vmor %vm839_vm12, %vm2407_vm11  ;;  %vm857_vm12 = vcmask 1046534   ;;  %s2274_s6 = scalar_lea.vmem %s1679_s26, 32  ;;  %p2279_p5 = scmp.lt.s32.totalorder %s1679_s26, %s1679_s26 }
  0x71   :  { %720 = vmatprep.subr.bf16.mxu1 %v1958_v41  ;;  %v2025_v41 = vld [vmem:[#allocation6 + $0x220] ss:$24 sps:$4 sm:$0xff]   ;;  %vm2415_vm1 = vmand %vm834_vm7, %vm844_vm14  ;;  %vm828_vm7 = vsmask.f32 7954  ;;  %p2275_p4 = scmp.ne.s32.totalorder %s1679_s26, %s2274_s6  ;;  %p2280_p6 = scmp.lt.s32.totalorder %s2274_s6, %s2274_s6 }
  0x72   :  { %vm847_vm4 = vmand %vm837_vm9, %vm846_vm15  ;;  %vm855_vm9 = vsmask.f32 2304 }
  0x73   :  { %680 = vmatpush1.bf16.msra.mxu0 %v1960_v42  ;;  %v2030_v42 = vld [vmem:[#allocation6 + $0x254] ss:$24 sps:$4 sm:$0xff]   ;;  %vm848_vm5 = vmor %vm847_vm4, %vm2415_vm1  ;;  %p2281_p7 = por %p2280_p6, %p2279_p5 }
  0x74   :  { %721 = vmatpush1.bf16.msra.mxu1 %v1961_v43  ;;  %681 = vmatprep.subr.bf16.mxu0 %v1962_v44  ;;  %v2028_v43 = vld [vmem:[#allocation6 + $0x250] ss:$24 sps:$4 sm:$0xff]   ;;  %v2033_v44 = vld [vmem:[#allocation6 + $0x284] ss:$24 sps:$4 sm:$0xff]   ;;  %vm829_vm14 = vmand %vm808_vm2, %vm828_vm7 }
  0x75   :  { %722 = vmatprep.subr.bf16.mxu1 %v1964_v45  ;;  %v2031_v45 = vld [vmem:[#allocation6 + $0x280] ss:$24 sps:$4 sm:$0xff]   ;;  %vm856_vm15 = vmand %vm854_vm8, %vm855_vm9  ;;  %p2282_p8 = pnand %p2281_p7, %p2275_p4 }
  0x77   :  { %682 = vmatpush1.bf16.msra.mxu0 %v1966_v47  ;;  %v2036_v47 = vld [vmem:[#allocation6 + $0x2b4] ss:$24 sps:$4 sm:$0xff]  }
  0x78   :  { %723 = vmatpush1.bf16.msra.mxu1 %v1967_v48  ;;  %683 = vmatprep.subr.bf16.mxu0 %v1968_v50  ;;  %v2034_v48 = vld [vmem:[#allocation6 + $0x2b0] ss:$24 sps:$4 sm:$0xff]   ;;  %v2037_v50 = vld [vmem:[#allocation6 + $0x2e0] ss:$24 sps:$4 sm:$0xff]  }
  0x79   :  { %724 = vmatprep.subr.bf16.mxu1 %v1970_v51  ;;  %v2045_v51 = vld [vmem:[#allocation8 + $0xc] ss:$24 sps:$4 sm:$0xff]  }
  0x7b   :  { %684 = vmatpush1.bf16.msra.mxu0 %v1972_v52  ;;  %v2043_v52 = vld [vmem:[#allocation8 + $0x8] ss:$24 sps:$4 sm:$0xff]  }
  0x7c   :  { %725 = vmatpush1.bf16.msra.mxu1 %v1973_v53  ;;  %685 = vmatprep.subr.bf16.mxu0 %v1974_v54  ;;  %v2051_v53 = vld [vmem:[#allocation8 + $0x3c] ss:$24 sps:$4 sm:$0xff]   ;;  %v2049_v54 = vld [vmem:[#allocation8 + $0x38] ss:$24 sps:$4 sm:$0xff]  }
  0x7d   :  { %726 = vmatprep.subr.bf16.mxu1 %v1976_v55  ;;  %v2057_v55 = vld [vmem:[#allocation8 + $0x6c] ss:$24 sps:$4 sm:$0xff]  }
  0x7f   :  { %686 = vmatpush1.bf16.msra.mxu0 %v1978_v56  ;;  %v2055_v56 = vld [vmem:[#allocation8 + $0x68] ss:$24 sps:$4 sm:$0xff]  }
  0x80   :  { %727 = vmatpush1.bf16.msra.mxu1 %v1979_v57  ;;  %687 = vmatprep.subr.bf16.mxu0 %v1980_v58  ;;  %v2063_v57 = vld [vmem:[#allocation8 + $0x9c] ss:$24 sps:$4 sm:$0xff]   ;;  %v2061_v58 = vld [vmem:[#allocation8 + $0x98] ss:$24 sps:$4 sm:$0xff]  }
  0x81   :  { %728 = vmatprep.subr.bf16.mxu1 %v1982_v59  ;;  %v2069_v59 = vld [vmem:[#allocation8 + $0xcc] ss:$24 sps:$4 sm:$0xff]  }
  0x83   :  { %688 = vmatpush1.bf16.msra.mxu0 %v1984_v60  ;;  %v2067_v60 = vld [vmem:[#allocation8 + $0xc8] ss:$24 sps:$4 sm:$0xff]  }
  0x84   :  { %729 = vmatpush1.bf16.msra.mxu1 %v1985_v61  ;;  %689 = vmatprep.subr.bf16.mxu0 %v1986_v62  ;;  %v2075_v61 = vld [vmem:[#allocation8 + $0xfc] ss:$24 sps:$4 sm:$0xff]   ;;  %v2073_v62 = vld [vmem:[#allocation8 + $0xf8] ss:$24 sps:$4 sm:$0xff]  }
  0x85   :  { %730 = vmatprep.subr.bf16.mxu1 %v1988_v63  ;;  %v2090_v63 = vld [vmem:[#allocation8 + $0x184] ss:$24 sps:$4 sm:$0xff]  }
  0x87   :  { %690 = vmatpush1.bf16.msra.mxu0 %v1990_v0  ;;  %v2088_v0 = vld [vmem:[#allocation8 + $0x180] ss:$24 sps:$4 sm:$0xff]  }
  0x88   :  { %731 = vmatpush1.bf16.msra.mxu1 %v1991_v1  ;;  %741 = vmatprep.subr.bf16.mxu0 %v1994_v2  ;;  %v2079_v1 = vld [vmem:[#allocation8 + $0x128] ss:$24 sps:$4 sm:$0xff]   ;;  %v2087_v2 = vld [vmem:[#allocation8 + $0x15c] ss:$24 sps:$4 sm:$0xff]  }
  0x89   :  { %1456 = vmatprep.subr.bf16.mxu1 %v2042_v5  ;;  %v2096_v5 = vld [vmem:[#allocation8 + $0x1b4] ss:$24 sps:$4 sm:$0xff]  }
  0x8a   :  { %692 = vmatmul.mubr.bf16.vlgmr.msra.gmra.mrb[0].mxu0 %v2391_v46 }
  0x8b   :  { %733 = vmatmul.mubr.bf16.vlgmr.msra.gmra.mrb[0].mxu1 %v2391_v46  ;;  %742 = vmatpush1.bf16.msra.mxu0 %v1992_v3 }
  0x8c   :  { %743 = vmatprep.subr.bf16.mxu0 %v1997_v4  ;;  %773 = vmatprep.mubr.bf16.mxu0 %v176_v49  ;;  %v2039_v49 = vld [vmem:[#allocation6 + $0x2e4] ss:$24 sps:$4 sm:$0xff]   ;;  %v812_v4 = vld [vmem:[#allocation2] sm:$0x11] }
  0x8d   :  { %1457 = vmatpush1.bf16.msra.mxu1 %v2040_v6  ;;  %v2094_v6 = vld [vmem:[#allocation8 + $0x1b0] ss:$24 sps:$4 sm:$0xff]  }
  0x8e   :  { %1458 = vmatprep.subr.bf16.mxu1 %v2048_v8  ;;  %v813_v8 = vsel %vm811_vm6, 0, %v812_v4  ;;  %vm826_vm6 = vsmask.f32 7938 }
  0x8f   :  { %744 = vmatpush1.bf16.msra.mxu0 %v1995_v7  ;;  %v2085_v7 = vld [vmem:[#allocation8 + $0x158] ss:$24 sps:$4 sm:$0xff]   ;;  %814 = vst [vmem:[#allocation2] sm:$0x11] %v813_v8  ;;  %vm2431_vm10 = vmand %vm805_vm0, %vm826_vm6  ;;  %vm864_vm6 = vsmask.f32 7946 }
  0x90   :  { %745 = vmatprep.subr.bf16.mxu0 %v2000_v9  ;;  %v2093_v9 = vld [vmem:[#allocation8 + $0x18c] ss:$24 sps:$4 sm:$0xff]   ;;  %vm865_vm2 = vmand %vm854_vm8, %vm864_vm6 }
  0x91   :  { %1459 = vmatpush1.bf16.msra.mxu1 %v2046_v10  ;;  %v2102_v10 = vld [vmem:[#allocation8 + $0x1e4] ss:$24 sps:$4 sm:$0xff]  }
  0x92   :  { %1460 = vmatprep.subr.bf16.mxu1 %v2054_v11  ;;  %v2100_v11 = vld [vmem:[#allocation8 + $0x1e0] ss:$24 sps:$4 sm:$0xff]  }
  0x93   :  { %746 = vmatpush1.bf16.msra.mxu0 %v1998_v12  ;;  %v2091_v12 = vld [vmem:[#allocation8 + $0x188] ss:$24 sps:$4 sm:$0xff]  }
  0x94   :  { %747 = vmatprep.subr.bf16.mxu0 %v2003_v13  ;;  %v2099_v13 = vld [vmem:[#allocation8 + $0x1bc] ss:$24 sps:$4 sm:$0xff]  }
  0x95   :  { %1461 = vmatpush1.bf16.msra.mxu1 %v2052_v14  ;;  %v2108_v14 = vld [vmem:[#allocation8 + $0x214] ss:$24 sps:$4 sm:$0xff]  }
  0x96   :  { %1462 = vmatprep.subr.bf16.mxu1 %v2060_v15  ;;  %v2106_v15 = vld [vmem:[#allocation8 + $0x210] ss:$24 sps:$4 sm:$0xff]  }
  0x97   :  { %748 = vmatpush1.bf16.msra.mxu0 %v2001_v16  ;;  %v2097_v16 = vld [vmem:[#allocation8 + $0x1b8] ss:$24 sps:$4 sm:$0xff]  }
  0x98   :  { %749 = vmatprep.subr.bf16.mxu0 %v2006_v17  ;;  %v2105_v17 = vld [vmem:[#allocation8 + $0x1ec] ss:$24 sps:$4 sm:$0xff]  }
  0x99   :  { %1463 = vmatpush1.bf16.msra.mxu1 %v2058_v18  ;;  %v2114_v18 = vld [vmem:[#allocation8 + $0x244] ss:$24 sps:$4 sm:$0xff]  }
  0x9a   :  { %1464 = vmatprep.subr.bf16.mxu1 %v2066_v19  ;;  %v2112_v19 = vld [vmem:[#allocation8 + $0x240] ss:$24 sps:$4 sm:$0xff]  }
  0x9b   :  { %750 = vmatpush1.bf16.msra.mxu0 %v2004_v20  ;;  %v2103_v20 = vld [vmem:[#allocation8 + $0x1e8] ss:$24 sps:$4 sm:$0xff]  }
  0x9c   :  { %751 = vmatprep.subr.bf16.mxu0 %v2009_v21  ;;  %v2111_v21 = vld [vmem:[#allocation8 + $0x21c] ss:$24 sps:$4 sm:$0xff]  }
  0x9d   :  { %1465 = vmatpush1.bf16.msra.mxu1 %v2064_v23  ;;  %v2118_v23 = vld [vmem:[#allocation8 + $0x270] ss:$24 sps:$4 sm:$0xff]  }
  0x9e   :  { %1466 = vmatprep.subr.bf16.mxu1 %v2072_v24 }
  0x9f   :  { %752 = vmatpush1.bf16.msra.mxu0 %v2007_v22  ;;  %v2120_v22 = vld [vmem:[#allocation8 + $0x274] ss:$24 sps:$4 sm:$0xff]  }
  0xa0   :  { %753 = vmatprep.subr.bf16.mxu0 %v2012_v25  ;;  %v2109_v25 = vld [vmem:[#allocation8 + $0x218] ss:$24 sps:$4 sm:$0xff]  }
  0xa1   :  { %1467 = vmatpush1.bf16.msra.mxu1 %v2070_v26  ;;  %v2117_v26 = vld [vmem:[#allocation8 + $0x24c] ss:$24 sps:$4 sm:$0xff]  }
  0xa2   :  { %1468 = vmatprep.subr.bf16.mxu1 %v2078_v27  ;;  %v841_v27 = vld [vmem:[#allocation2] sm:$0x22] }
  0xa3   :  { %754 = vmatpush1.bf16.msra.mxu0 %v2010_v28  ;;  %v2124_v28 = vld [vmem:[#allocation8 + $0x2a0] ss:$24 sps:$4 sm:$0xff]  }
  0xa4   :  { %755 = vmatprep.subr.bf16.mxu0 %v2015_v29  ;;  %v2126_v29 = vld [vmem:[#allocation8 + $0x2a4] ss:$24 sps:$4 sm:$0xff]  }
  0xa5   :  { %1469 = vmatpush1.bf16.msra.mxu1 %v2076_v30  ;;  %v2132_v30 = vld [vmem:[#allocation8 + $0x2d4] ss:$24 sps:$4 sm:$0xff]  }
  0xa6   :  { %1470 = vmatprep.subr.bf16.mxu1 %v2084_v31  ;;  %v2115_v31 = vld [vmem:[#allocation8 + $0x248] ss:$24 sps:$4 sm:$0xff]  }
  0xa7   :  { %756 = vmatpush1.bf16.msra.mxu0 %v2013_v32  ;;  %v842_v32 = vsel %vm840_vm13, 0, %v841_v27  ;;  %vm858_vm13 = vsmask.f32 6400  ;;  %v2155_v27 = vld [vmem:[#allocation8 + $0x104] ss:$24 sps:$4 sm:$0xff]  }
  0xa8   :  { %757 = vmatprep.subr.bf16.mxu0 %v2018_v33  ;;  %v2123_v33 = vld [vmem:[#allocation8 + $0x27c] ss:$24 sps:$4 sm:$0xff]   ;;  %843 = vst [vmem:[#allocation2] sm:$0x22] %v842_v32  ;;  %vm859_vm4 = vmand %vm857_vm12, %vm858_vm13  ;;  %v2159_v32 = vld [vmem:[#allocation8 + $0x160] ss:$24 sps:$4 sm:$0xff]  }
  0xa9   :  { %1471 = vmatpush1.bf16.msra.mxu1 %v2082_v34  ;;  %v2130_v34 = vld [vmem:[#allocation8 + $0x2d0] ss:$24 sps:$4 sm:$0xff]   ;;  %vm860_vm0 = vmor %vm859_vm4, %vm856_vm15 }
  0xaa   :  { %1472 = vmatprep.subr.bf16.mxu1 %v2090_v63 }
  0xab   :  { %758 = vmatpush1.bf16.msra.mxu0 %v2016_v35  ;;  %v2490_v35 = vmov 0 }
  0xac   :  { %759 = vmatprep.subr.bf16.mxu0 %v2021_v36  ;;  %v2491_v35 = vsel %vm2415_vm1, 4294967295, %v2490_v35  ;;  %v2121_v36 = vld [vmem:[#allocation8 + $0x278] ss:$24 sps:$4 sm:$0xff]   ;;  %vm866_vm1 = vsmask.f32 7962 }
  0xad   :  { %1473 = vmatpush1.bf16.msra.mxu1 %v2088_v0  ;;  %vm867_vm7 = vmand %vm857_vm12, %vm866_vm1  ;;  %vm2494_vm8 = vnez %v2491_v35 }
  0xae   :  { %1474 = vmatprep.subr.bf16.mxu1 %v2096_v5  ;;  %vm868_vm9 = vmor %vm867_vm7, %vm865_vm2 }
  0xaf   :  { %760 = vmatpush1.bf16.msra.mxu0 %v2019_v37  ;;  %v2129_v37 = vld [vmem:[#allocation8 + $0x2ac] ss:$24 sps:$4 sm:$0xff]   ;;  %vm1631_vm1 = vmor %vm2407_vm11, %vm2399_vm3 }
  0xb0   :  { %761 = vmatprep.subr.bf16.mxu0 %v2024_v38  ;;  %v2140_v38 = vld [vmem:[#allocation8 + $0x14] ss:$24 sps:$4 sm:$0xff]   ;;  %vm1668_vm12 = vmor %vm2494_vm8, %vm2431_vm10 }
  0xb1   :  { %1475 = vmatpush1.bf16.msra.mxu1 %v2094_v6  ;;  %v831_v6 = vld [vmem:[#allocation2] sm:$0x11] }
  0xb2   :  { %1476 = vmatprep.subr.bf16.mxu1 %v2102_v10 }
  0xb3   :  { %762 = vmatpush1.bf16.msra.mxu0 %v2022_v39  ;;  %v2127_v39 = vld [vmem:[#allocation8 + $0x2a8] ss:$24 sps:$4 sm:$0xff]  }
  0xb4   :  { %763 = vmatprep.subr.bf16.mxu0 %v2027_v40  ;;  %v849_v40 = vld [vmem:[#allocation2] sm:$0x22] }
  0xb5   :  { %1477 = vmatpush1.bf16.msra.mxu1 %v2100_v11 }
  0xb6   :  { %1478 = vmatprep.subr.bf16.mxu1 %v2108_v14 }
  0xb7   :  { %764 = vmatpush1.bf16.msra.mxu0 %v2025_v41  ;;  %v2135_v41 = vld [vmem:[#allocation8 + $0x2dc] ss:$24 sps:$4 sm:$0xff]  }
  0xb8   :  { %765 = vmatprep.subr.bf16.mxu0 %v2030_v42  ;;  %v850_v42 = vsel %vm848_vm5, 0, %v849_v40  ;;  %vm830_vm5 = vmor %vm829_vm14, %vm2431_vm10 }
  0xb9   :  { %1479 = vmatpush1.bf16.msra.mxu1 %v2106_v15  ;;  %851 = vst [vmem:[#allocation2] sm:$0x22] %v850_v42  ;;  %v2170_v42 = vld [vmem:[#allocation8 + $0x1f4] ss:$24 sps:$4 sm:$0xff]  }
  0xba   :  { %1480 = vmatprep.subr.bf16.mxu1 %v2114_v18  ;;  %v2143_v18 = vld [vmem:[#allocation8 + $0x44] ss:$24 sps:$4 sm:$0xff]  }
  0xbb   :  { %766 = vmatpush1.bf16.msra.mxu0 %v2028_v43  ;;  %v2133_v43 = vld [vmem:[#allocation8 + $0x2d8] ss:$24 sps:$4 sm:$0xff]  }
  0xbc   :  { %767 = vmatprep.subr.bf16.mxu0 %v2033_v44  ;;  %v791_v44 = vlaneseq }
  0xbd   :  { %1481 = vmatpush1.bf16.msra.mxu1 %v2112_v19  ;;  %v2141_v19 = vld [vmem:[#allocation8 + $0x40] ss:$24 sps:$4 sm:$0xff]  }
  0xbe   :  { %1482 = vmatprep.subr.bf16.mxu1 %v2120_v22  ;;  %v2149_v22 = vld [vmem:[#allocation8 + $0xa4] ss:$24 sps:$4 sm:$0xff]  }
  0xbf   :  { %768 = vmatpush1.bf16.msra.mxu0 %v2031_v45  ;;  %v2422_v45 = vshrl.u32 %v791_v44, 7  ;;  %v2173_v44 = vld [vmem:[#allocation8 + $0x224] ss:$24 sps:$4 sm:$0xff]  }
  0xc0   :  { %769 = vmatprep.subr.bf16.mxu0 %v2036_v47 }
  0xc1   :  { %1483 = vmatpush1.bf16.msra.mxu1 %v2118_v23  ;;  %v793_v47 = vsub.s32 0, %v2422_v45  ;;  %v2147_v23 = vld [vmem:[#allocation8 + $0xa0] ss:$24 sps:$4 sm:$0xff]  }
  0xc2   :  { %1484 = vmatprep.subr.bf16.mxu1 %v2126_v29  ;;  %v2158_v29 = vld [vmem:[#allocation8 + $0x134] ss:$24 sps:$4 sm:$0xff]  }
  0xc3   :  { %770 = vmatpush1.bf16.msra.mxu0 %v2034_v48  ;;  %v2425_v48 = vld [vmem:[#allocation9] sm:$0xf] }
  0xc4   :  { %771 = vmatprep.subr.bf16.mxu0 %v2039_v49  ;;  %v797_v49 = vsub.s32 2, %v2422_v45 }
  0xc5   :  { %1485 = vmatpush1.bf16.msra.mxu1 %v2124_v28  ;;  %v2153_v28 = vld [vmem:[#allocation8 + $0x100] ss:$24 sps:$4 sm:$0xff]  }
  0xc6   :  { %1486 = vmatprep.subr.bf16.mxu1 %v2132_v30  ;;  %v2156_v30 = vld [vmem:[#allocation8 + $0x130] ss:$24 sps:$4 sm:$0xff]  }
  0xc7   :  { %772 = vmatpush1.bf16.msra.mxu0 %v2037_v50 }
  0xc8   :  { %1497 = vmatprep.subr.bf16.mxu0 %v2045_v51 }
  0xc9   :  { %1487 = vmatpush1.bf16.msra.mxu1 %v2130_v34  ;;  %v2162_v34 = vld [vmem:[#allocation8 + $0x190] ss:$24 sps:$4 sm:$0xff]  }
  0xca   :  { %774 = vmatmul.mubr.bf16.vlgmr.msra.gmra.mrb[4].mxu0 %v2391_v46  ;;  %v2081_v46 = vld [vmem:[#allocation8 + $0x12c] ss:$24 sps:$4 sm:$0xff]   ;;  %1538 = vmatprep.subr.bf16.mxu1 %v2140_v38 }
  0xcb   :  { %1498 = vmatpush1.bf16.msra.mxu0 %v2043_v52 }
  0xcc   :  { %1499 = vmatprep.subr.bf16.mxu0 %v2051_v53  ;;  %v794_v53 = vrot.slane %v2425_v48, %v793_v47  ;;  %v2171_v47 = vld [vmem:[#allocation8 + $0x220] ss:$24 sps:$4 sm:$0xff]  }
  0xcf   :  { %1500 = vmatpush1.bf16.msra.mxu0 %v2049_v54 }
  0xd0   :  { %1501 = vmatprep.subr.bf16.mxu0 %v2057_v55 }
  0xd3   :  { %1502 = vmatpush1.bf16.msra.mxu0 %v2055_v56 }
  0xd4   :  { %1503 = vmatprep.subr.bf16.mxu0 %v2063_v57  ;;  %v798_v57 = vrot.slane %v2425_v48, %v797_v49  ;;  %v2176_v49 = vld [vmem:[#allocation8 + $0x254] ss:$24 sps:$4 sm:$0xff]  }
  0xd7   :  { %1504 = vmatpush1.bf16.msra.mxu0 %v2061_v58 }
  0xd8   :  { %1505 = vmatprep.subr.bf16.mxu0 %v2069_v59 }
  0xdb   :  { %1506 = vmatpush1.bf16.msra.mxu0 %v2067_v60 }
  0xdc   :  { %1507 = vmatprep.subr.bf16.mxu0 %v2075_v61 }
  0xdf   :  { %1508 = vmatpush1.bf16.msra.mxu0 %v2073_v62 }
  0xe0   :  { %1509 = vmatprep.subr.bf16.mxu0 %v2081_v46 }
  0xe3   :  { %1510 = vmatpush1.bf16.msra.mxu0 %v2079_v1 }
  0xe4   :  { %1511 = vmatprep.subr.bf16.mxu0 %v2087_v2 }
  0xe7   :  { %1512 = vmatpush1.bf16.msra.mxu0 %v2085_v7  ;;  %v861_v7 = vld [vmem:[#allocation2] sm:$0x44] }
  0xe8   :  { %1513 = vmatprep.subr.bf16.mxu0 %v2093_v9 }
  0xeb   :  { %1514 = vmatpush1.bf16.msra.mxu0 %v2091_v12 }
  0xec   :  { %1515 = vmatprep.subr.bf16.mxu0 %v2099_v13 }
  0xef   :  { %1516 = vmatpush1.bf16.msra.mxu0 %v2097_v16 }
  0xf0   :  { %1517 = vmatprep.subr.bf16.mxu0 %v2105_v17  ;;  %v2138_v17 = vld [vmem:[#allocation8 + $0x10] ss:$24 sps:$4 sm:$0xff]  }
  0xf3   :  { %1518 = vmatpush1.bf16.msra.mxu0 %v2103_v20  ;;  %v2146_v20 = vld [vmem:[#allocation8 + $0x74] ss:$24 sps:$4 sm:$0xff]  }
  0xf4   :  { %1519 = vmatprep.subr.bf16.mxu0 %v2111_v21  ;;  %v2144_v21 = vld [vmem:[#allocation8 + $0x70] ss:$24 sps:$4 sm:$0xff]  }
  0xf7   :  { %1520 = vmatpush1.bf16.msra.mxu0 %v2109_v25  ;;  %v2152_v25 = vld [vmem:[#allocation8 + $0xd4] ss:$24 sps:$4 sm:$0xff]  }
  0xf8   :  { %1521 = vmatprep.subr.bf16.mxu0 %v2117_v26  ;;  %v2150_v26 = vld [vmem:[#allocation8 + $0xd0] ss:$24 sps:$4 sm:$0xff]  }
  0xfb   :  { %1522 = vmatpush1.bf16.msra.mxu0 %v2115_v31  ;;  %v2161_v31 = vld [vmem:[#allocation8 + $0x164] ss:$24 sps:$4 sm:$0xff]  }
  0xfc   :  { %1523 = vmatprep.subr.bf16.mxu0 %v2123_v33  ;;  %v2164_v33 = vld [vmem:[#allocation8 + $0x194] ss:$24 sps:$4 sm:$0xff]  }
  0xff   :  { %1524 = vmatpush1.bf16.msra.mxu0 %v2121_v36 }
 0x100   :  { %1525 = vmatprep.subr.bf16.mxu0 %v2129_v37  ;;  %v2167_v37 = vld [vmem:[#allocation8 + $0x1c4] ss:$24 sps:$4 sm:$0xff]  }
 0x103   :  { %1526 = vmatpush1.bf16.msra.mxu0 %v2127_v39 }
 0x104   :  { %1527 = vmatprep.subr.bf16.mxu0 %v2135_v41  ;;  %v2165_v41 = vld [vmem:[#allocation8 + $0x1c0] ss:$24 sps:$4 sm:$0xff]  }
 0x107   :  { %1528 = vmatpush1.bf16.msra.mxu0 %v2133_v43  ;;  %v2168_v43 = vld [vmem:[#allocation8 + $0x1f0] ss:$24 sps:$4 sm:$0xff]  }
 0x15d   :  { %v693_v50 = vpop.f32.mrb[0].mxu0 }
 0x15e   :  { %v734_v51 = vpop.f32.mrb[0].mxu1  ;;  %v695_v54 = vpop.f32.mrb[1].mxu0 }
 0x15f   :  { %v784_v52 = vrot.slane %v734_v51, 1  ;;  %v736_v55 = vpop.f32.mrb[1].mxu1  ;;  %v697_v58 = vpop.f32.mrb[2].mxu0  ;;  %v2179_v51 = vld [vmem:[#allocation8 + $0x284] ss:$24 sps:$4 sm:$0xff]  }
 0x160   :  { %v785_v56 = vrot.slane %v736_v55, 1  ;;  %v738_v59 = vpop.f32.mrb[2].mxu1  ;;  %v698_v61 = vpop.f32.mrb[3].mxu0  ;;  %v2185_v55 = vld [vmem:[#allocation8 + $0x2e4] ss:$24 sps:$4 sm:$0xff]  }
 0x161   :  { %v788_v60 = vadd.f32 %v784_v52, %v693_v50  ;;  %v739_v62 = vpop.f32.mrb[3].mxu1  ;;  %v2174_v50 = vld [vmem:[#allocation8 + $0x250] ss:$24 sps:$4 sm:$0xff]   ;;  %v2177_v52 = vld [vmem:[#allocation8 + $0x280] ss:$24 sps:$4 sm:$0xff]  }
 0x162   :  { %v789_v46 = vadd.f32 %v785_v56, %v695_v54  ;;  %v2180_v54 = vld [vmem:[#allocation8 + $0x2b0] ss:$24 sps:$4 sm:$0xff]   ;;  %v2183_v56 = vld [vmem:[#allocation8 + $0x2e0] ss:$24 sps:$4 sm:$0xff]  }
 0x163   :  { %v801_v63 = vadd.f32 %v794_v53, %v788_v60  ;;  %v2182_v53 = vld [vmem:[#allocation8 + $0x2b4] ss:$24 sps:$4 sm:$0xff]  }
 0x164   :  { %v802_v1 = vadd.f32 %v798_v57, %v789_v46 }
 0x165   :  { %v803_v2 = vmax.f32 %v801_v63, 0.0 }
 0x166   :  { %v804_v4 = vmax.f32 %v802_v1, 0.0 }
 0x168   :  { %v1887_v5 = vpack.c.bf16 %v804_v4, %v803_v2 }
 0x16a   :  { %v823_v8 = vshll.u32 %v1887_v5, 16  ;;  %v852_v9 = vrot.slane %v1887_v5, 7 }
 0x16c   :  { %v832_v10 = vsel %vm830_vm5, %v823_v8, %v831_v6  ;;  %v862_v11 = vsel %vm860_vm0, %v852_v9, %v861_v7  ;;  %v1599_v6 = vsub.s32 1, %v2422_v45  ;;  %v1603_v8 = vsub.s32 3, %v2422_v45 }
 0x16d   :  { %833 = vst [vmem:[#allocation2] sm:$0x11] %v832_v10  ;;  %863 = vst [vmem:[#allocation2] sm:$0x44] %v862_v11 }
 0x174   :  { %v869_v12 = vld [vmem:[#allocation2] sm:$0x44] }
 0x175   :  { %v870_v13 = vsel %vm868_vm9, 0, %v869_v12  ;;  %v2310_v12 = vmov 1966171168  }
 0x176   :  { %871 = vst [vmem:[#allocation2] sm:$0x44] %v870_v13  ;;  %v1617_v13 = vunpack.c.l.s4 %v2310_v12 }
 0x17d   :  { %v872_v14 = vld [vmem:[#allocation2] sm:$0x77] }
 0x17e   :  { %v2442_v15 = vcombine.low %v872_v14, %v872_v14  ;;  %v1788_v16 = vcombine.high %v872_v14, %v872_v14 }
 0x180   :  { %1488 = vmatprep.mubr.bf16.mxu1 %v1788_v16  ;;  %1529 = vmatprep.mubr.bf16.mxu0 %v1788_v16 }
 0x181   :  { %1489 = vmatmul.mubr.bf16.vlgmr.msra.gmra.mrb[4].mxu1 %v2442_v15  ;;  %1530 = vmatmul.mubr.bf16.vlgmr.msra.gmra.mrb[8].mxu0 %v2442_v15 }
 0x182   :  { %1539 = vmatpush1.bf16.msra.mxu1 %v2138_v17  ;;  %1570 = vmatprep.mubr.bf16.mxu1 %v1788_v16  ;;  %v1600_v17 = vrot.slane %v2425_v48, %v1599_v6 }
 0x183   :  { %1540 = vmatprep.subr.bf16.mxu1 %v2143_v18 }
 0x186   :  { %1541 = vmatpush1.bf16.msra.mxu1 %v2141_v19 }
 0x187   :  { %1542 = vmatprep.subr.bf16.mxu1 %v2146_v20 }
 0x18a   :  { %1543 = vmatpush1.bf16.msra.mxu1 %v2144_v21  ;;  %v1604_v21 = vrot.slane %v2425_v48, %v1603_v8 }
 0x18b   :  { %1544 = vmatprep.subr.bf16.mxu1 %v2149_v22 }
 0x18e   :  { %1545 = vmatpush1.bf16.msra.mxu1 %v2147_v23 }
 0x18f   :  { %1546 = vmatprep.subr.bf16.mxu1 %v2152_v25 }
 0x192   :  { %1547 = vmatpush1.bf16.msra.mxu1 %v2150_v26  ;;  %v1618_v26 = vunpack.c.0.s8 %v1617_v13 }
 0x193   :  { %1548 = vmatprep.subr.bf16.mxu1 %v2155_v27 }
 0x196   :  { %1549 = vmatpush1.bf16.msra.mxu1 %v2153_v28 }
 0x197   :  { %1550 = vmatprep.subr.bf16.mxu1 %v2158_v29 }
 0x19a   :  { %1551 = vmatpush1.bf16.msra.mxu1 %v2156_v30 }
 0x19b   :  { %1552 = vmatprep.subr.bf16.mxu1 %v2161_v31 }
 0x19d   :  { %v2446_v36 = vpop.f32.mrb[4].mxu0 }
 0x19e   :  { %1553 = vmatpush1.bf16.msra.mxu1 %v2159_v32  ;;  %v2448_v38 = vpop.f32.mrb[5].mxu0 }
 0x19f   :  { %1554 = vmatprep.subr.bf16.mxu1 %v2164_v33  ;;  %v779_v39 = vpop.f32.mrb[6].mxu0  ;;  %v1638_v19 = vrot.slane %v2448_v38, 7 }
 0x1a0   :  { %v780_v40 = vpop.f32.mrb[7].mxu0 }
 0x1a2   :  { %1555 = vmatpush1.bf16.msra.mxu1 %v2162_v34 }
 0x1a3   :  { %1556 = vmatprep.subr.bf16.mxu1 %v2167_v37  ;;  %v1621_v37 = vsub.s32 %v1618_v26, %v2422_v45 }
 0x1a6   :  { %1557 = vmatpush1.bf16.msra.mxu1 %v2165_v41 }
 0x1a7   :  { %1558 = vmatprep.subr.bf16.mxu1 %v2170_v42 }
 0x1aa   :  { %1559 = vmatpush1.bf16.msra.mxu1 %v2168_v43 }
 0x1ab   :  { %1560 = vmatprep.subr.bf16.mxu1 %v2173_v44 }
 0x1ae   :  { %1561 = vmatpush1.bf16.msra.mxu1 %v2171_v47 }
 0x1af   :  { %1562 = vmatprep.subr.bf16.mxu1 %v2176_v49 }
 0x1b2   :  { %1563 = vmatpush1.bf16.msra.mxu1 %v2174_v50 }
 0x1b3   :  { %1564 = vmatprep.subr.bf16.mxu1 %v2179_v51 }
 0x1b6   :  { %1565 = vmatpush1.bf16.msra.mxu1 %v2177_v52 }
 0x1b7   :  { %1566 = vmatprep.subr.bf16.mxu1 %v2182_v53 }
 0x1ba   :  { %1567 = vmatpush1.bf16.msra.mxu1 %v2180_v54 }
 0x1bb   :  { %1568 = vmatprep.subr.bf16.mxu1 %v2185_v55 }
 0x1be   :  { %1569 = vmatpush1.bf16.msra.mxu1 %v2183_v56 }
 0x1c1   :  { %1571 = vmatmul.mubr.bf16.vlgmr.msra.gmra.mrb[8].mxu1 %v2442_v15  ;;  %v1637_v15 = vrot.slane %v2446_v36, 7 }
 0x254   :  { %v1490_v57 = vpop.f32.mrb[4].mxu1  ;;  %v1531_v58 = vpop.f32.mrb[8].mxu0 }
 0x255   :  { %v1581_v59 = vrot.slane %v1531_v58, 1  ;;  %v1492_v60 = vpop.f32.mrb[5].mxu1  ;;  %v1533_v61 = vpop.f32.mrb[9].mxu0 }
 0x256   :  { %v1582_v62 = vrot.slane %v1533_v61, 1  ;;  %v1494_v46 = vpop.f32.mrb[6].mxu1  ;;  %v1535_v63 = vpop.f32.mrb[10].mxu0 }
 0x257   :  { %v1585_v1 = vadd.f32 %v1581_v59, %v1490_v57  ;;  %v1495_v2 = vpop.f32.mrb[7].mxu1  ;;  %v1536_v4 = vpop.f32.mrb[11].mxu0 }
 0x258   :  { %v1586_v5 = vadd.f32 %v1582_v62, %v1492_v60 }
 0x294   :  { %v1572_v7 = vpop.f32.mrb[8].mxu1 }
 0x295   :  { %v1589_v9 = vrot.slane %v1572_v7, 2  ;;  %v1574_v10 = vpop.f32.mrb[9].mxu1 }
 0x296   :  { %v1590_v11 = vrot.slane %v1574_v10, 2  ;;  %v1576_v14 = vpop.f32.mrb[10].mxu1 }
 0x297   :  { %v1593_v16 = vadd.f32 %v1589_v9, %v1585_v1  ;;  %v1577_v18 = vpop.f32.mrb[11].mxu1 }
 0x298   :  { %v1594_v20 = vadd.f32 %v1590_v11, %v1586_v5 }
 0x299   :  { %v1595_v22 = vadd.f32 %v1593_v16, %v2446_v36  ;;  %v1641_v23 = vadd.f32 %v1637_v15, %v1593_v16  ;;  %v1632_v36 = vld [vmem:[#allocation11] sm:$0x3] }
 0x29a   :  { %v1596_v25 = vadd.f32 %v1594_v20, %v2448_v38  ;;  %v1642_v27 = vadd.f32 %v1638_v19, %v1594_v20 }
 0x29b   :  { %v1607_v28 = vadd.f32 %v1600_v17, %v1595_v22  ;;  %v1643_v29 = vadd.f32 %v1641_v23, %v1600_v17 }
 0x29c   :  { %v1608_v30 = vadd.f32 %v1604_v21, %v1596_v25  ;;  %v1644_v31 = vadd.f32 %v1642_v27, %v1604_v21 }
 0x29d   :  { %v1609_v32 = vmax.f32 %v1607_v28, 0.0  ;;  %v1645_v33 = vmax.f32 %v1643_v29, 0.0 }
 0x29e   :  { %v1610_v34 = vmax.f32 %v1608_v30, 0.0  ;;  %v1646_v39 = vmax.f32 %v1644_v31, 0.0 }
 0x2a0   :  { %v1885_v40 = vpack.c.bf16 %v1610_v34, %v1609_v32  ;;  %v1886_v41 = vpack.c.bf16 %v1646_v39, %v1645_v33 }
 0x2a2   :  { %v1622_v48 = vrot.slane %v1885_v40, %v1621_v37  ;;  %v1658_v42 = vrot.slane %v1886_v41, %v1621_v37 }
 0x2a4   :  { %v1629_v38 = vrot.slane %v1622_v48, %v1621_v37  ;;  %v1659_v44 = vcombine.high %v1658_v42, %v1658_v42 }
 0x2a6   :  { %v1633_v43 = vsel %vm1631_vm1, %v1629_v38, %v1632_v36  ;;  %v1666_v45 = vrot.slane %v1659_v44, %v1621_v37 }
 0x2a7   :  { %1634 = vst [vmem:[#allocation11] sm:$0x3] %v1633_v43 }
 0x2ae   :  { %v1669_v47 = vld [vmem:[#allocation11] sm:$0x3] }
 0x2af   :  { %v1670_v3 = vsel %vm1668_vm12, %v1666_v45, %v1669_v47 }
 0x2b0   :  { %1671 = vst [vmem:[#allocation11] sm:$0x3] %v1670_v3 }
 0x2b1   :  { %2285 = shalt.err (!%p2282_p8)
}
 0x2b2   :  { %s2286_s1 = scalar_lea.hbm %s2484_s4, 32 }
 0x2b3   :  { %p2287_p9 = scmp.ne.s32.totalorder %s2484_s4, %s2286_s1  ;;  %p2290_p10 = scmp.lt.u32.totalorder %s2286_s1, %s2484_s4 }
 0x2b5   :  { %p2292_p11 = pnand %p2290_p10, %p2287_p9 }
 0x2b7   :  { %2295 = shalt.err (!%p2292_p11)
}
 0x2b8   :  { %1681 = dma.vmem_to_hbm [thread:$0]  %s1679_s26, 32, %s2484_s4, [#allocation5]  }
 0x2b9   :  { %2302 = dma.done.wait [#allocation5], 32  }
 0x2ba   :  { %2303 = vsyncadd [#allocation5], 4294967264 }
 0x2bb   :  { %1685 = vsyncpa [#allocation4], 1 }
 0x2bc   :  { %1686 = vsyncpa [#allocation7], 1 }
 0x2bd   :  { %1687 = vsyncpa [#allocation10], 1 }
 0x2be   :  { %1688 = vsyncpa [#allocation5], 1 }

// kernel: feature_extractor.9
= control target key start
LH: loop header
LB: loop body
LE: loop exit
PB: predicated region body
PF: predicated region fallthrough
CT: control target
= control target key end

     0   :  { %11 = vsyncpa [#allocation4], 0  ;;  %s3714_s0 = inlined_call_operand.hbm [shape: bf16[4,512], index: 0, kind: input, shape index: {}]   ;;  %s3715_s1 = inlined_call_operand.hbm [shape: bf16[512,768], index: 1, kind: input, shape index: {}]   ;;  %s3716_s2 = inlined_call_operand.hbm [shape: bf16[256,768], index: 2, kind: input, shape index: {}]   ;;  %s3717_s3 = inlined_call_operand.hbm [shape: f32[2,256], index: 3, kind: input, shape index: {}]   ;;  %s3718_s4 = inlined_call_operand.hbm [shape: f32[256,128], index: 4, kind: input, shape index: {}]   ;;  %s3719_s5 = inlined_call_operand.hbm [shape: f32[1,128], index: 5, kind: input, shape index: {}]   ;;  %s3720_s6 = inlined_call_operand.hbm [shape: f32[2,128], index: 6, kind: output, shape index: {}]  }
   0x1   :  { %12 = vsyncpa [#allocation7], 0 }
   0x2   :  { %13 = vsyncpa [#allocation10], 0 }
   0x3   :  { %14 = vsyncpa [#allocation13], 0 }
   0x4   :  { %15 = vsyncpa [#allocation5], 0  ;;  %s3494_s21 = smov [#allocation6]   ;;  %s3330_s25 = scalar_lea.hbm %s3715_s1, 24576 }
   0x5   :  { %s31_s22 = sshll.u32 %s3494_s21, 4  ;;  %p3331_p0 = scmp.ne.s32.totalorder %s3715_s1, %s3330_s25  ;;  %s32_s22 = int_to_ptr.vmem [resolvable:$true] %s31_s22 }
   0x6   :  { %p3334_p1 = scmp.lt.u32.totalorder %s3330_s25, %s3715_s1 }
   0x8   :  { %p3336_p2 = pnand %p3334_p1, %p3331_p0 }
   0xa   :  { %3339 = shalt.err (!%p3336_p2)
}
   0xb   :  { %s3340_s30 = scalar_lea.vmem %s32_s22, 24576  ;;  %p3345_p4 = scmp.lt.s32.totalorder %s32_s22, %s32_s22 }
   0xc   :  { %p3341_p3 = scmp.ne.s32.totalorder %s32_s22, %s3340_s30  ;;  %p3346_p5 = scmp.lt.s32.totalorder %s3340_s30, %s3340_s30 }
   0xe   :  { %p3347_p6 = por %p3346_p5, %p3345_p4 }
  0x10   :  { %p3348_p7 = pnand %p3347_p6, %p3341_p3 }
  0x12   :  { %3351 = shalt.err (!%p3348_p7)
}
  0x13   :  { %s3495_s7 = smov 384   ;;  %s3496_s8 = smov 24  }
  0x14   :  { %37 = dma.hbm_to_vmem [thread:$0]  %s3715_s1, 24576, %s32_s22, [#allocation7], %s3495_s7, %s3495_s7, %s3496_s8  }
  0x15   :  { %s3497_s11 = smov [#allocation9]   ;;  %s3498_s13 = smov [#allocation3]  }
  0x16   :  { %s56_s12 = sshll.u32 %s3497_s11, 4  ;;  %s22_s14 = sshll.u32 %s3498_s13, 4  ;;  %s57_s12 = int_to_ptr.vmem [resolvable:$true] %s56_s12  ;;  %s23_s14 = int_to_ptr.vmem [resolvable:$true] %s22_s14 }
  0x17   :  { %s3352_s17 = scalar_lea.hbm %s3717_s3, 64 }
  0x18   :  { %p3353_p8 = scmp.ne.s32.totalorder %s3717_s3, %s3352_s17  ;;  %p3356_p9 = scmp.lt.u32.totalorder %s3352_s17, %s3717_s3 }
  0x1a   :  { %p3358_p10 = pnand %p3356_p9, %p3353_p8 }
  0x1c   :  { %3361 = shalt.err (!%p3358_p10)
}
  0x1d   :  { %s3362_s1 = scalar_lea.vmem %s57_s12, 64  ;;  %p3367_p12 = scmp.lt.s32.totalorder %s57_s12, %s57_s12 }
  0x1e   :  { %p3363_p11 = scmp.ne.s32.totalorder %s57_s12, %s3362_s1  ;;  %p3368_p13 = scmp.lt.s32.totalorder %s3362_s1, %s3362_s1 }
  0x20   :  { %p3369_p0 = por %p3368_p13, %p3367_p12 }
  0x22   :  { %p3370_p1 = pnand %p3369_p0, %p3363_p11 }
  0x24   :  { %3373 = shalt.err (!%p3370_p1)
}
  0x25   :  { %59 = dma.hbm_to_vmem [thread:$0]  %s3717_s3, 64, %s57_s12, [#allocation10]  }
  0x26   :  { %s3374_s26 = scalar_lea.hbm %s3714_s0, 128 }
  0x27   :  { %p3375_p2 = scmp.ne.s32.totalorder %s3714_s0, %s3374_s26  ;;  %p3378_p3 = scmp.lt.u32.totalorder %s3374_s26, %s3714_s0 }
  0x29   :  { %p3380_p4 = pnand %p3378_p3, %p3375_p2 }
  0x2b   :  { %3383 = shalt.err (!%p3380_p4)
}
  0x2c   :  { %s3384_s9 = scalar_lea.vmem %s23_s14, 128  ;;  %p3389_p6 = scmp.lt.s32.totalorder %s23_s14, %s23_s14 }
  0x2d   :  { %p3385_p5 = scmp.ne.s32.totalorder %s23_s14, %s3384_s9  ;;  %p3390_p7 = scmp.lt.s32.totalorder %s3384_s9, %s3384_s9 }
  0x2f   :  { %p3391_p8 = por %p3390_p7, %p3389_p6 }
  0x31   :  { %p3392_p9 = pnand %p3391_p8, %p3385_p5 }
  0x33   :  { %3395 = shalt.err (!%p3392_p9)
}
  0x34   :  { %25 = dma.hbm_to_vmem [thread:$0]  %s3714_s0, 128, %s23_s14, [#allocation4]  }
  0x35   :  { %s3499_s11 = smov [#allocation8]   ;;  %s3500_s13 = smov [#allocation11]  }
  0x36   :  { %s43_s12 = sshll.u32 %s3499_s11, 4  ;;  %s65_s15 = sshll.u32 %s3500_s13, 4  ;;  %s44_s12 = int_to_ptr.vmem [resolvable:$true] %s43_s12  ;;  %s66_s15 = int_to_ptr.vmem [resolvable:$true] %s65_s15 }
  0x37   :  { %s3396_s18 = scalar_lea.hbm %s3716_s2, 12288 }
  0x38   :  { %p3397_p10 = scmp.ne.s32.totalorder %s3716_s2, %s3396_s18  ;;  %p3400_p11 = scmp.lt.u32.totalorder %s3396_s18, %s3716_s2 }
  0x3a   :  { %p3402_p12 = pnand %p3400_p11, %p3397_p10 }
  0x3c   :  { %3405 = shalt.err (!%p3402_p12)
}
  0x3d   :  { %s3406_s0 = scalar_lea.vmem %s44_s12, 12288  ;;  %p3411_p0 = scmp.lt.s32.totalorder %s44_s12, %s44_s12 }
  0x3e   :  { %p3407_p13 = scmp.ne.s32.totalorder %s44_s12, %s3406_s0  ;;  %p3412_p1 = scmp.lt.s32.totalorder %s3406_s0, %s3406_s0 }
  0x40   :  { %p3413_p2 = por %p3412_p1, %p3411_p0 }
  0x42   :  { %p3414_p3 = pnand %p3413_p2, %p3407_p13 }
  0x44   :  { %3417 = shalt.err (!%p3414_p3)
}
  0x45   :  { %49 = dma.hbm_to_vmem [thread:$0]  %s3716_s2, 12288, %s44_s12, [#allocation7], %s3495_s7, %s3495_s7, %s3496_s8  }
  0x46   :  { %s3418_s25 = scalar_lea.hbm %s3718_s4, 4096 }
  0x47   :  { %p3419_p4 = scmp.ne.s32.totalorder %s3718_s4, %s3418_s25  ;;  %p3422_p5 = scmp.lt.u32.totalorder %s3418_s25, %s3718_s4 }
  0x49   :  { %p3424_p6 = pnand %p3422_p5, %p3419_p4 }
  0x4b   :  { %3427 = shalt.err (!%p3424_p6)
}
  0x4c   :  { %s3428_s30 = scalar_lea.vmem %s66_s15, 4096  ;;  %p3433_p8 = scmp.lt.s32.totalorder %s66_s15, %s66_s15 }
  0x4d   :  { %p3429_p7 = scmp.ne.s32.totalorder %s66_s15, %s3428_s30  ;;  %p3434_p9 = scmp.lt.s32.totalorder %s3428_s30, %s3428_s30 }
  0x4f   :  { %p3435_p10 = por %p3434_p9, %p3433_p8 }
  0x51   :  { %p3436_p11 = pnand %p3435_p10, %p3429_p7 }
  0x53   :  { %3439 = shalt.err (!%p3436_p11)
}
  0x54   :  { %s3501_s2 = smov 128   ;;  %s3502_s7 = smov 8  }
  0x55   :  { %71 = dma.hbm_to_vmem [thread:$0]  %s3718_s4, 4096, %s66_s15, [#allocation10], %s3501_s2, %s3501_s2, %s3502_s7  }
  0x56   :  { %s3503_s3 = smov [#allocation12]   ;;  %s3440_s13 = scalar_lea.hbm %s3719_s5, 16 }
  0x57   :  { %s78_s10 = sshll.u32 %s3503_s3, 4  ;;  %p3441_p12 = scmp.ne.s32.totalorder %s3719_s5, %s3440_s13  ;;  %s79_s10 = int_to_ptr.vmem [resolvable:$true] %s78_s10 }
  0x58   :  { %p3444_p13 = scmp.lt.u32.totalorder %s3440_s13, %s3719_s5 }
  0x5a   :  { %p3446_p0 = pnand %p3444_p13, %p3441_p12 }
  0x5c   :  { %3449 = shalt.err (!%p3446_p0)
}
  0x5d   :  { %s3450_s20 = scalar_lea.vmem %s79_s10, 16  ;;  %s3454_s4 = scalar_lea.vmem %s79_s10, 32 }
  0x5e   :  { %p3451_p1 = scmp.ne.s32.totalorder %s79_s10, %s3450_s20  ;;  %p3455_p2 = scmp.lt.s32.totalorder %s79_s10, %s79_s10 }
  0x5f   :  { %p3456_p3 = scmp.lt.s32.totalorder %s3454_s4, %s3450_s20 }
  0x61   :  { %p3457_p4 = por %p3456_p3, %p3455_p2 }
  0x63   :  { %p3458_p5 = pnand %p3457_p4, %p3451_p1 }
  0x65   :  { %3461 = shalt.err (!%p3458_p5)
}
  0x66   :  { %81 = dma.hbm_to_vmem [thread:$0]  %s3719_s5, 16, %s79_s10, [#allocation13]  }
  0x67   :  { %3484 = dma.done.wait [#allocation4], 128  }
  0x68   :  { %3485 = vsyncadd [#allocation4], 4294967168 }
  0x69   :  { %3486 = dma.done.wait [#allocation7], 36864  }
  0x6a   :  { %3487 = vsyncadd [#allocation7], 4294930432 }
  0x6b   :  { %3488 = dma.done.wait [#allocation10], 4160  }
  0x6c   :  { %3489 = vsyncadd [#allocation10], 4294963136 }
  0x6d   :  { %3490 = dma.done.wait [#allocation13], 16  }
  0x6e   :  { %3491 = vsyncadd [#allocation13], 4294967280  ;;  %v2893_v0 = vld [vmem:[#allocation6 + $0x4] ss:$24 sps:$4 sm:$0xff]   ;;  %v2897_v2 = vld [vmem:[#allocation6] ss:$24 sps:$4 sm:$0xff]   ;;  %v300_v38 = vlaneseq }
  0x6f   :  { %v2895_v1 = vld [vmem:[#allocation6 + $0x304] ss:$24 sps:$4 sm:$0xff]   ;;  %1277 = vmatprep.subr.bf16.mxu0 %v2893_v0  ;;  %v2898_v3 = vld [vmem:[#allocation6 + $0x300] ss:$24 sps:$4 sm:$0xff]   ;;  %v2899_v4 = vld [vmem:[#allocation6 + $0x34] ss:$24 sps:$4 sm:$0xff]  }
  0x70   :  { %1318 = vmatprep.subr.bf16.mxu1 %v2895_v1  ;;  %1278 = vmatpush1.bf16.msra.mxu0 %v2897_v2  ;;  %v2901_v5 = vld [vmem:[#allocation6 + $0x334] ss:$24 sps:$4 sm:$0xff]   ;;  %v2903_v6 = vld [vmem:[#allocation6 + $0x30] ss:$24 sps:$4 sm:$0xff]   ;;  %v2905_v8 = vld [vmem:[#allocation6 + $0x64] ss:$24 sps:$4 sm:$0xff]  }
  0x71   :  { %1319 = vmatpush1.bf16.msra.mxu1 %v2898_v3  ;;  %1279 = vmatprep.subr.bf16.mxu0 %v2899_v4  ;;  %v2904_v7 = vld [vmem:[#allocation6 + $0x330] ss:$24 sps:$4 sm:$0xff]   ;;  %v2907_v9 = vld [vmem:[#allocation6 + $0x364] ss:$24 sps:$4 sm:$0xff]   ;;  %v2909_v10 = vld [vmem:[#allocation6 + $0x60] ss:$24 sps:$4 sm:$0xff]  }
  0x72   :  { %1320 = vmatprep.subr.bf16.mxu1 %v2901_v5  ;;  %v2910_v11 = vld [vmem:[#allocation6 + $0x360] ss:$24 sps:$4 sm:$0xff]   ;;  %v2911_v12 = vld [vmem:[#allocation6 + $0x94] ss:$24 sps:$4 sm:$0xff]   ;;  %v2915_v14 = vld [vmem:[#allocation6 + $0x90] ss:$24 sps:$4 sm:$0xff]  }
  0x73   :  { %v2913_v13 = vld [vmem:[#allocation6 + $0x394] ss:$24 sps:$4 sm:$0xff]   ;;  %v2916_v15 = vld [vmem:[#allocation6 + $0x390] ss:$24 sps:$4 sm:$0xff]   ;;  %v2917_v16 = vld [vmem:[#allocation6 + $0xc4] ss:$24 sps:$4 sm:$0xff]  }
  0x74   :  { %1280 = vmatpush1.bf16.msra.mxu0 %v2903_v6  ;;  %v2919_v17 = vld [vmem:[#allocation6 + $0x3c4] ss:$24 sps:$4 sm:$0xff]   ;;  %v2921_v18 = vld [vmem:[#allocation6 + $0xc0] ss:$24 sps:$4 sm:$0xff]   ;;  %v2923_v20 = vld [vmem:[#allocation6 + $0xf4] ss:$24 sps:$4 sm:$0xff]  }
  0x75   :  { %1321 = vmatpush1.bf16.msra.mxu1 %v2904_v7  ;;  %1281 = vmatprep.subr.bf16.mxu0 %v2905_v8  ;;  %v2922_v19 = vld [vmem:[#allocation6 + $0x3c0] ss:$24 sps:$4 sm:$0xff]   ;;  %v2925_v21 = vld [vmem:[#allocation6 + $0x3f4] ss:$24 sps:$4 sm:$0xff]   ;;  %v2927_v22 = vld [vmem:[#allocation6 + $0xf0] ss:$24 sps:$4 sm:$0xff]  }
  0x76   :  { %1322 = vmatprep.subr.bf16.mxu1 %v2907_v9  ;;  %v2928_v23 = vld [vmem:[#allocation6 + $0x3f0] ss:$24 sps:$4 sm:$0xff]   ;;  %v2929_v24 = vld [vmem:[#allocation6 + $0x124] ss:$24 sps:$4 sm:$0xff]   ;;  %v2933_v26 = vld [vmem:[#allocation6 + $0x120] ss:$24 sps:$4 sm:$0xff]  }
  0x77   :  { %v2931_v25 = vld [vmem:[#allocation6 + $0x424] ss:$24 sps:$4 sm:$0xff]   ;;  %v2934_v27 = vld [vmem:[#allocation6 + $0x420] ss:$24 sps:$4 sm:$0xff]   ;;  %v2935_v28 = vld [vmem:[#allocation6 + $0x154] ss:$24 sps:$4 sm:$0xff]  }
  0x78   :  { %1282 = vmatpush1.bf16.msra.mxu0 %v2909_v10  ;;  %v2937_v29 = vld [vmem:[#allocation6 + $0x454] ss:$24 sps:$4 sm:$0xff]   ;;  %v2939_v30 = vld [vmem:[#allocation6 + $0x150] ss:$24 sps:$4 sm:$0xff]   ;;  %v2941_v32 = vld [vmem:[#allocation6 + $0x184] ss:$24 sps:$4 sm:$0xff]  }
  0x79   :  { %1323 = vmatpush1.bf16.msra.mxu1 %v2910_v11  ;;  %1283 = vmatprep.subr.bf16.mxu0 %v2911_v12  ;;  %v2940_v31 = vld [vmem:[#allocation6 + $0x450] ss:$24 sps:$4 sm:$0xff]   ;;  %v2943_v33 = vld [vmem:[#allocation6 + $0x484] ss:$24 sps:$4 sm:$0xff]   ;;  %v2945_v34 = vld [vmem:[#allocation6 + $0x180] ss:$24 sps:$4 sm:$0xff]  }
  0x7a   :  { %1324 = vmatprep.subr.bf16.mxu1 %v2913_v13  ;;  %v2946_v35 = vld [vmem:[#allocation6 + $0x480] ss:$24 sps:$4 sm:$0xff]   ;;  %v3504_v36 = vmov 1983009808   ;;  %v2947_v39 = vld [vmem:[#allocation6 + $0x1b4] ss:$24 sps:$4 sm:$0xff]  }
  0x7b   :  { %v298_v37 = vunpack.c.l.s4 %v3504_v36  ;;  %v2949_v40 = vld [vmem:[#allocation6 + $0x4b4] ss:$24 sps:$4 sm:$0xff]   ;;  %v2951_v41 = vld [vmem:[#allocation6 + $0x1b0] ss:$24 sps:$4 sm:$0xff]   ;;  %v3619_v43 = vshrl.u32 %v300_v38, 7  ;;  %v102_v52 = vld [vmem:[#allocation3] sm:$0xff] }
  0x7c   :  { %1284 = vmatpush1.bf16.msra.mxu0 %v2915_v14  ;;  %v2952_v44 = vld [vmem:[#allocation6 + $0x4b0] ss:$24 sps:$4 sm:$0xff]   ;;  %v2953_v45 = vld [vmem:[#allocation6 + $0x1e4] ss:$24 sps:$4 sm:$0xff]   ;;  %v2957_v47 = vld [vmem:[#allocation6 + $0x1e0] ss:$24 sps:$4 sm:$0xff]   ;;  %v296_v55 = vcombine.high %v102_v52, %v102_v52 }
  0x7d   :  { %1325 = vmatpush1.bf16.msra.mxu1 %v2916_v15  ;;  %1285 = vmatprep.subr.bf16.mxu0 %v2917_v16  ;;  %v299_v42 = vunpack.c.0.s8 %v298_v37  ;;  %v2955_v46 = vld [vmem:[#allocation6 + $0x4e4] ss:$24 sps:$4 sm:$0xff]   ;;  %v2958_v48 = vld [vmem:[#allocation6 + $0x4e0] ss:$24 sps:$4 sm:$0xff]   ;;  %v2959_v50 = vld [vmem:[#allocation6 + $0x214] ss:$24 sps:$4 sm:$0xff]  }
  0x7e   :  { %1326 = vmatprep.subr.bf16.mxu1 %v2919_v17  ;;  %v2961_v51 = vld [vmem:[#allocation6 + $0x514] ss:$24 sps:$4 sm:$0xff]   ;;  %v2963_v53 = vld [vmem:[#allocation6 + $0x210] ss:$24 sps:$4 sm:$0xff]   ;;  %v2965_v57 = vld [vmem:[#allocation6 + $0x244] ss:$24 sps:$4 sm:$0xff]  }
  0x7f   :  { %v302_v49 = vsub.s32 %v299_v42, %v3619_v43  ;;  %v2964_v56 = vld [vmem:[#allocation6 + $0x510] ss:$24 sps:$4 sm:$0xff]   ;;  %v2967_v58 = vld [vmem:[#allocation6 + $0x544] ss:$24 sps:$4 sm:$0xff]   ;;  %v2969_v61 = vld [vmem:[#allocation6 + $0x240] ss:$24 sps:$4 sm:$0xff]  }
  0x80   :  { %1286 = vmatpush1.bf16.msra.mxu0 %v2921_v18  ;;  %v2970_v63 = vld [vmem:[#allocation6 + $0x540] ss:$24 sps:$4 sm:$0xff]   ;;  %v2971_v0 = vld [vmem:[#allocation6 + $0x274] ss:$24 sps:$4 sm:$0xff]   ;;  %v2975_v2 = vld [vmem:[#allocation6 + $0x270] ss:$24 sps:$4 sm:$0xff]  }
  0x81   :  { %1327 = vmatpush1.bf16.msra.mxu1 %v2922_v19  ;;  %1287 = vmatprep.subr.bf16.mxu0 %v2923_v20  ;;  %v3622_v54 = vrot.slane %v102_v52, %v302_v49  ;;  %v3626_v60 = vrot.slane %v296_v55, %v302_v49  ;;  %v2973_v1 = vld [vmem:[#allocation6 + $0x574] ss:$24 sps:$4 sm:$0xff]   ;;  %v2976_v3 = vld [vmem:[#allocation6 + $0x570] ss:$24 sps:$4 sm:$0xff]   ;;  %v2977_v4 = vld [vmem:[#allocation6 + $0x2a4] ss:$24 sps:$4 sm:$0xff]  }
  0x82   :  { %1328 = vmatprep.subr.bf16.mxu1 %v2925_v21  ;;  %v2979_v5 = vld [vmem:[#allocation6 + $0x5a4] ss:$24 sps:$4 sm:$0xff]   ;;  %v2981_v6 = vld [vmem:[#allocation6 + $0x2a0] ss:$24 sps:$4 sm:$0xff]   ;;  %v2983_v8 = vld [vmem:[#allocation6 + $0x2d4] ss:$24 sps:$4 sm:$0xff]  }
  0x83   :  { %v311_v59 = vcombine.high %v3622_v54, %v3622_v54  ;;  %v3630_v62 = vcombine.high %v3626_v60, %v3626_v60  ;;  %v2982_v7 = vld [vmem:[#allocation6 + $0x5a0] ss:$24 sps:$4 sm:$0xff]   ;;  %v2985_v9 = vld [vmem:[#allocation6 + $0x5d4] ss:$24 sps:$4 sm:$0xff]   ;;  %v2987_v10 = vld [vmem:[#allocation6 + $0x2d0] ss:$24 sps:$4 sm:$0xff]  }
  0x84   :  { %1288 = vmatpush1.bf16.msra.mxu0 %v2927_v22  ;;  %v2988_v11 = vld [vmem:[#allocation6 + $0x5d0] ss:$24 sps:$4 sm:$0xff]   ;;  %v2992_v12 = vld [vmem:[#allocation6 + $0xc] ss:$24 sps:$4 sm:$0xff]   ;;  %v2995_v14 = vld [vmem:[#allocation6 + $0x3c] ss:$24 sps:$4 sm:$0xff]  }
  0x85   :  { %1329 = vmatpush1.bf16.msra.mxu1 %v2928_v23  ;;  %1289 = vmatprep.subr.bf16.mxu0 %v2929_v24  ;;  %v2990_v13 = vld [vmem:[#allocation6 + $0x8] ss:$24 sps:$4 sm:$0xff]   ;;  %v2993_v15 = vld [vmem:[#allocation6 + $0x38] ss:$24 sps:$4 sm:$0xff]   ;;  %v2998_v16 = vld [vmem:[#allocation6 + $0x6c] ss:$24 sps:$4 sm:$0xff]  }
  0x86   :  { %1330 = vmatprep.subr.bf16.mxu1 %v2931_v25  ;;  %1309 = vmatprep.mubr.bf16.mxu0 %v311_v59  ;;  %v2996_v17 = vld [vmem:[#allocation6 + $0x68] ss:$24 sps:$4 sm:$0xff]   ;;  %v3001_v18 = vld [vmem:[#allocation6 + $0x9c] ss:$24 sps:$4 sm:$0xff]   ;;  %v2999_v19 = vld [vmem:[#allocation6 + $0x98] ss:$24 sps:$4 sm:$0xff]  }
  0x87   :  { %1350 = vmatprep.mubr.bf16.mxu1 %v3630_v62  ;;  %v3004_v20 = vld [vmem:[#allocation6 + $0xcc] ss:$24 sps:$4 sm:$0xff]   ;;  %v3002_v21 = vld [vmem:[#allocation6 + $0xc8] ss:$24 sps:$4 sm:$0xff]   ;;  %v3007_v22 = vld [vmem:[#allocation6 + $0xfc] ss:$24 sps:$4 sm:$0xff]  }
  0x88   :  { %1290 = vmatpush1.bf16.msra.mxu0 %v2933_v26  ;;  %v3005_v23 = vld [vmem:[#allocation6 + $0xf8] ss:$24 sps:$4 sm:$0xff]   ;;  %v3010_v24 = vld [vmem:[#allocation6 + $0x12c] ss:$24 sps:$4 sm:$0xff]   ;;  %v3014_v36 = vld [vmem:[#allocation6 + $0x188] ss:$24 sps:$4 sm:$0xff]  }
  0x89   :  { %1331 = vmatpush1.bf16.msra.mxu1 %v2934_v27  ;;  %1291 = vmatprep.subr.bf16.mxu0 %v2935_v28  ;;  %v3086_v25 = vld [vmem:[#allocation6 + $0x10] ss:$24 sps:$4 sm:$0xff]   ;;  %v3088_v26 = vld [vmem:[#allocation6 + $0x14] ss:$24 sps:$4 sm:$0xff]   ;;  %v3091_v28 = vld [vmem:[#allocation6 + $0x44] ss:$24 sps:$4 sm:$0xff]  }
  0x8a   :  { %1332 = vmatprep.subr.bf16.mxu1 %v2937_v29  ;;  %v3008_v27 = vld [vmem:[#allocation6 + $0x128] ss:$24 sps:$4 sm:$0xff]   ;;  %v3013_v29 = vld [vmem:[#allocation6 + $0x15c] ss:$24 sps:$4 sm:$0xff]   ;;  %v3023_v49 = vld [vmem:[#allocation6 + $0x218] ss:$24 sps:$4 sm:$0xff]  }
  0x8b   :  { %v3019_v37 = vld [vmem:[#allocation6 + $0x1bc] ss:$24 sps:$4 sm:$0xff]   ;;  %v3095_v38 = vld [vmem:[#allocation6 + $0xa0] ss:$24 sps:$4 sm:$0xff]   ;;  %v3098_v42 = vld [vmem:[#allocation6 + $0xd0] ss:$24 sps:$4 sm:$0xff]  }
  0x8c   :  { %1292 = vmatpush1.bf16.msra.mxu0 %v2939_v30  ;;  %v3089_v30 = vld [vmem:[#allocation6 + $0x40] ss:$24 sps:$4 sm:$0xff]   ;;  %v3109_v52 = vld [vmem:[#allocation6 + $0x164] ss:$24 sps:$4 sm:$0xff]   ;;  %vm1546_vm0 = vcmask 1040384   ;;  %vm1549_vm3 = vcmask 1044484  }
  0x8d   :  { %1333 = vmatpush1.bf16.msra.mxu1 %v2940_v31  ;;  %1293 = vmatprep.subr.bf16.mxu0 %v2941_v32  ;;  %v3094_v31 = vld [vmem:[#allocation6 + $0x74] ss:$24 sps:$4 sm:$0xff]   ;;  %v3011_v32 = vld [vmem:[#allocation6 + $0x158] ss:$24 sps:$4 sm:$0xff]   ;;  %vm1547_vm1 = vsmask.f32 256 }
  0x8e   :  { %1334 = vmatprep.subr.bf16.mxu1 %v2943_v33  ;;  %v3016_v33 = vld [vmem:[#allocation6 + $0x18c] ss:$24 sps:$4 sm:$0xff]   ;;  %v3031_v55 = vld [vmem:[#allocation6 + $0x27c] ss:$24 sps:$4 sm:$0xff]   ;;  %vm1548_vm2 = vmand %vm1546_vm0, %vm1547_vm1  ;;  %vm1550_vm4 = vsmask.f32 4352 }
  0x8f   :  { %vm1551_vm5 = vmand %vm1549_vm3, %vm1550_vm4  ;;  %vm1575_vm7 = vcmask 1041409   ;;  %vm1576_vm8 = vsmask.f32 1280  ;;  %vm1578_vm9 = vcmask 1045509   ;;  %vm1579_vm10 = vsmask.f32 5376 }
  0x90   :  { %1294 = vmatpush1.bf16.msra.mxu0 %v2945_v34  ;;  %v3092_v34 = vld [vmem:[#allocation6 + $0x70] ss:$24 sps:$4 sm:$0xff]   ;;  %vm1552_vm6 = vmor %vm1551_vm5, %vm1548_vm2  ;;  %vm1585_vm14 = vsmask.f32 7942  ;;  %vm1587_vm15 = vsmask.f32 7958 }
  0x91   :  { %1335 = vmatpush1.bf16.msra.mxu1 %v2946_v35  ;;  %1295 = vmatprep.subr.bf16.mxu0 %v2947_v39  ;;  %v3097_v35 = vld [vmem:[#allocation6 + $0xa4] ss:$24 sps:$4 sm:$0xff]   ;;  %v3100_v39 = vld [vmem:[#allocation6 + $0xd4] ss:$24 sps:$4 sm:$0xff]   ;;  %vm3648_vm11 = vmand %vm1575_vm7, %vm1576_vm8  ;;  %vm1567_vm5 = vsmask.f32 7938 }
  0x92   :  { %1336 = vmatprep.subr.bf16.mxu1 %v2949_v40  ;;  %v3017_v40 = vld [vmem:[#allocation6 + $0x1b8] ss:$24 sps:$4 sm:$0xff]   ;;  %vm1580_vm12 = vmand %vm1578_vm9, %vm1579_vm10  ;;  %vm1596_vm8 = vsmask.f32 2304  ;;  %vm1598_vm10 = vcmask 1046534   ;;  %s3505_s5 = smov [#allocation14]  }
  0x93   :  { %vm1581_vm13 = vmor %vm1580_vm12, %vm3648_vm11  ;;  %vm1599_vm11 = vsmask.f32 6400  ;;  %s2501_s1 = sshll.u32 %s3505_s5, 4  ;;  %s2502_s1 = int_to_ptr.vmem [resolvable:$true] %s2501_s1 }
  0x94   :  { %1296 = vmatpush1.bf16.msra.mxu0 %v2951_v41  ;;  %v3022_v41 = vld [vmem:[#allocation6 + $0x1ec] ss:$24 sps:$4 sm:$0xff]   ;;  %vm3656_vm1 = vmand %vm1575_vm7, %vm1585_vm14  ;;  %vm1595_vm7 = vcmask 1042434   ;;  %s3462_s0 = scalar_lea.vmem %s2502_s1, 32  ;;  %p3467_p7 = scmp.lt.s32.totalorder %s2502_s1, %s2502_s1 }
  0x95   :  { %1337 = vmatpush1.bf16.msra.mxu1 %v2952_v44  ;;  %1297 = vmatprep.subr.bf16.mxu0 %v2953_v45  ;;  %v3103_v44 = vld [vmem:[#allocation6 + $0x104] ss:$24 sps:$4 sm:$0xff]   ;;  %v3020_v45 = vld [vmem:[#allocation6 + $0x1e8] ss:$24 sps:$4 sm:$0xff]   ;;  %vm1588_vm2 = vmand %vm1578_vm9, %vm1587_vm15  ;;  %p3463_p6 = scmp.ne.s32.totalorder %s2502_s1, %s3462_s0  ;;  %p3468_p8 = scmp.lt.s32.totalorder %s3462_s0, %s3462_s0 }
  0x96   :  { %1338 = vmatprep.subr.bf16.mxu1 %v2955_v46  ;;  %v3025_v46 = vld [vmem:[#allocation6 + $0x21c] ss:$24 sps:$4 sm:$0xff]   ;;  %vm1589_vm4 = vmor %vm1588_vm2, %vm3656_vm1  ;;  %vm1605_vm2 = vsmask.f32 7946 }
  0x97   :  { %vm3672_vm9 = vmand %vm1546_vm0, %vm1567_vm5  ;;  %p3469_p9 = por %p3468_p8, %p3467_p7 }
  0x98   :  { %1298 = vmatpush1.bf16.msra.mxu0 %v2957_v47  ;;  %v3101_v47 = vld [vmem:[#allocation6 + $0x100] ss:$24 sps:$4 sm:$0xff]   ;;  %vm1600_vm14 = vmand %vm1598_vm10, %vm1599_vm11 }
  0x99   :  { %1339 = vmatpush1.bf16.msra.mxu1 %v2958_v48  ;;  %1299 = vmatprep.subr.bf16.mxu0 %v2959_v50  ;;  %v3106_v48 = vld [vmem:[#allocation6 + $0x134] ss:$24 sps:$4 sm:$0xff]   ;;  %p3470_p10 = pnand %p3469_p9, %p3463_p6 }
  0x9a   :  { %1340 = vmatprep.subr.bf16.mxu1 %v2961_v51  ;;  %v3028_v50 = vld [vmem:[#allocation6 + $0x24c] ss:$24 sps:$4 sm:$0xff]   ;;  %v3104_v51 = vld [vmem:[#allocation6 + $0x130] ss:$24 sps:$4 sm:$0xff]  }
  0x9c   :  { %1300 = vmatpush1.bf16.msra.mxu0 %v2963_v53  ;;  %v3026_v53 = vld [vmem:[#allocation6 + $0x248] ss:$24 sps:$4 sm:$0xff]  }
  0x9d   :  { %1341 = vmatpush1.bf16.msra.mxu1 %v2964_v56  ;;  %1301 = vmatprep.subr.bf16.mxu0 %v2965_v57  ;;  %v3107_v56 = vld [vmem:[#allocation6 + $0x160] ss:$24 sps:$4 sm:$0xff]   ;;  %v3112_v57 = vld [vmem:[#allocation6 + $0x194] ss:$24 sps:$4 sm:$0xff]  }
  0x9e   :  { %1342 = vmatprep.subr.bf16.mxu1 %v2967_v58  ;;  %v3029_v58 = vld [vmem:[#allocation6 + $0x278] ss:$24 sps:$4 sm:$0xff]  }
  0xa0   :  { %1302 = vmatpush1.bf16.msra.mxu0 %v2969_v61  ;;  %v3110_v61 = vld [vmem:[#allocation6 + $0x190] ss:$24 sps:$4 sm:$0xff]  }
  0xa1   :  { %1343 = vmatpush1.bf16.msra.mxu1 %v2970_v63  ;;  %1303 = vmatprep.subr.bf16.mxu0 %v2971_v0  ;;  %v3032_v63 = vld [vmem:[#allocation6 + $0x2a8] ss:$24 sps:$4 sm:$0xff]   ;;  %v3037_v0 = vld [vmem:[#allocation6 + $0x2dc] ss:$24 sps:$4 sm:$0xff]  }
  0xa2   :  { %1344 = vmatprep.subr.bf16.mxu1 %v2973_v1  ;;  %v3035_v1 = vld [vmem:[#allocation6 + $0x2d8] ss:$24 sps:$4 sm:$0xff]  }
  0xa4   :  { %1304 = vmatpush1.bf16.msra.mxu0 %v2975_v2  ;;  %v3040_v2 = vld [vmem:[#allocation6 + $0x30c] ss:$24 sps:$4 sm:$0xff]  }
  0xa5   :  { %1345 = vmatpush1.bf16.msra.mxu1 %v2976_v3  ;;  %1305 = vmatprep.subr.bf16.mxu0 %v2977_v4  ;;  %v3038_v3 = vld [vmem:[#allocation6 + $0x308] ss:$24 sps:$4 sm:$0xff]   ;;  %v3043_v4 = vld [vmem:[#allocation6 + $0x33c] ss:$24 sps:$4 sm:$0xff]  }
  0xa6   :  { %1346 = vmatprep.subr.bf16.mxu1 %v2979_v5  ;;  %v3041_v5 = vld [vmem:[#allocation6 + $0x338] ss:$24 sps:$4 sm:$0xff]  }
  0xa8   :  { %1306 = vmatpush1.bf16.msra.mxu0 %v2981_v6  ;;  %v3046_v6 = vld [vmem:[#allocation6 + $0x36c] ss:$24 sps:$4 sm:$0xff]  }
  0xa9   :  { %1347 = vmatpush1.bf16.msra.mxu1 %v2982_v7  ;;  %1307 = vmatprep.subr.bf16.mxu0 %v2983_v8  ;;  %v3044_v7 = vld [vmem:[#allocation6 + $0x368] ss:$24 sps:$4 sm:$0xff]   ;;  %v3049_v8 = vld [vmem:[#allocation6 + $0x39c] ss:$24 sps:$4 sm:$0xff]  }
  0xaa   :  { %1348 = vmatprep.subr.bf16.mxu1 %v2985_v9  ;;  %v3047_v9 = vld [vmem:[#allocation6 + $0x398] ss:$24 sps:$4 sm:$0xff]  }
  0xac   :  { %1308 = vmatpush1.bf16.msra.mxu0 %v2987_v10  ;;  %v3052_v10 = vld [vmem:[#allocation6 + $0x3cc] ss:$24 sps:$4 sm:$0xff]  }
  0xad   :  { %1349 = vmatpush1.bf16.msra.mxu1 %v2988_v11  ;;  %1359 = vmatprep.subr.bf16.mxu0 %v2992_v12  ;;  %v3050_v11 = vld [vmem:[#allocation6 + $0x3c8] ss:$24 sps:$4 sm:$0xff]   ;;  %v3055_v12 = vld [vmem:[#allocation6 + $0x3fc] ss:$24 sps:$4 sm:$0xff]  }
  0xae   :  { %1441 = vmatprep.subr.bf16.mxu1 %v3088_v26  ;;  %v3062_v26 = vld [vmem:[#allocation6 + $0x488] ss:$24 sps:$4 sm:$0xff]  }
  0xaf   :  { %1310 = vmatmul.mubr.bf16.vlgmr.msra.gmra.mrb[0].mxu0 %v3622_v54 }
  0xb0   :  { %1351 = vmatmul.mubr.bf16.vlgmr.msra.gmra.mrb[0].mxu1 %v3626_v60  ;;  %1360 = vmatpush1.bf16.msra.mxu0 %v2990_v13  ;;  %v3053_v13 = vld [vmem:[#allocation6 + $0x3f8] ss:$24 sps:$4 sm:$0xff]  }
  0xb1   :  { %1391 = vmatprep.mubr.bf16.mxu0 %v311_v59  ;;  %1361 = vmatprep.subr.bf16.mxu0 %v2995_v14  ;;  %v3058_v14 = vld [vmem:[#allocation6 + $0x42c] ss:$24 sps:$4 sm:$0xff]  }
  0xb2   :  { %1473 = vmatprep.mubr.bf16.mxu1 %v311_v59  ;;  %1442 = vmatpush1.bf16.msra.mxu1 %v3086_v25  ;;  %v3034_v59 = vld [vmem:[#allocation6 + $0x2ac] ss:$24 sps:$4 sm:$0xff]  }
  0xb3   :  { %1443 = vmatprep.subr.bf16.mxu1 %v3091_v28  ;;  %v3124_v25 = vld [vmem:[#allocation6 + $0x254] ss:$24 sps:$4 sm:$0xff]   ;;  %v3122_v28 = vld [vmem:[#allocation6 + $0x250] ss:$24 sps:$4 sm:$0xff]  }
  0xb4   :  { %1362 = vmatpush1.bf16.msra.mxu0 %v2993_v15  ;;  %v3115_v15 = vld [vmem:[#allocation6 + $0x1c4] ss:$24 sps:$4 sm:$0xff]  }
  0xb5   :  { %1363 = vmatprep.subr.bf16.mxu0 %v2998_v16  ;;  %v3113_v16 = vld [vmem:[#allocation6 + $0x1c0] ss:$24 sps:$4 sm:$0xff]  }
  0xb6   :  { %1444 = vmatpush1.bf16.msra.mxu1 %v3089_v30  ;;  %v3065_v30 = vld [vmem:[#allocation6 + $0x4b8] ss:$24 sps:$4 sm:$0xff]  }
  0xb7   :  { %1445 = vmatprep.subr.bf16.mxu1 %v3094_v31  ;;  %v3070_v31 = vld [vmem:[#allocation6 + $0x4ec] ss:$24 sps:$4 sm:$0xff]  }
  0xb8   :  { %1364 = vmatpush1.bf16.msra.mxu0 %v2996_v17  ;;  %v3056_v17 = vld [vmem:[#allocation6 + $0x428] ss:$24 sps:$4 sm:$0xff]  }
  0xb9   :  { %1365 = vmatprep.subr.bf16.mxu0 %v3001_v18  ;;  %v3061_v18 = vld [vmem:[#allocation6 + $0x45c] ss:$24 sps:$4 sm:$0xff]  }
  0xba   :  { %1446 = vmatpush1.bf16.msra.mxu1 %v3092_v34  ;;  %v3068_v34 = vld [vmem:[#allocation6 + $0x4e8] ss:$24 sps:$4 sm:$0xff]  }
  0xbb   :  { %1447 = vmatprep.subr.bf16.mxu1 %v3097_v35  ;;  %v3073_v35 = vld [vmem:[#allocation6 + $0x51c] ss:$24 sps:$4 sm:$0xff]  }
  0xbc   :  { %1366 = vmatpush1.bf16.msra.mxu0 %v2999_v19  ;;  %v3116_v19 = vld [vmem:[#allocation6 + $0x1f0] ss:$24 sps:$4 sm:$0xff]  }
  0xbd   :  { %1367 = vmatprep.subr.bf16.mxu0 %v3004_v20  ;;  %v3118_v20 = vld [vmem:[#allocation6 + $0x1f4] ss:$24 sps:$4 sm:$0xff]  }
  0xbe   :  { %1448 = vmatpush1.bf16.msra.mxu1 %v3095_v38  ;;  %v3071_v38 = vld [vmem:[#allocation6 + $0x518] ss:$24 sps:$4 sm:$0xff]  }
  0xbf   :  { %1449 = vmatprep.subr.bf16.mxu1 %v3100_v39  ;;  %v3076_v39 = vld [vmem:[#allocation6 + $0x54c] ss:$24 sps:$4 sm:$0xff]  }
  0xc0   :  { %1368 = vmatpush1.bf16.msra.mxu0 %v3002_v21  ;;  %v3121_v21 = vld [vmem:[#allocation6 + $0x224] ss:$24 sps:$4 sm:$0xff]  }
  0xc1   :  { %1369 = vmatprep.subr.bf16.mxu0 %v3007_v22  ;;  %v3059_v22 = vld [vmem:[#allocation6 + $0x458] ss:$24 sps:$4 sm:$0xff]  }
  0xc2   :  { %1450 = vmatpush1.bf16.msra.mxu1 %v3098_v42  ;;  %v3074_v42 = vld [vmem:[#allocation6 + $0x548] ss:$24 sps:$4 sm:$0xff]  }
  0xc3   :  { %1451 = vmatprep.subr.bf16.mxu1 %v3103_v44  ;;  %v3079_v44 = vld [vmem:[#allocation6 + $0x57c] ss:$24 sps:$4 sm:$0xff]  }
  0xc4   :  { %1370 = vmatpush1.bf16.msra.mxu0 %v3005_v23  ;;  %v3064_v23 = vld [vmem:[#allocation6 + $0x48c] ss:$24 sps:$4 sm:$0xff]  }
  0xc5   :  { %1371 = vmatprep.subr.bf16.mxu0 %v3010_v24  ;;  %v3119_v24 = vld [vmem:[#allocation6 + $0x220] ss:$24 sps:$4 sm:$0xff]  }
  0xc6   :  { %1452 = vmatpush1.bf16.msra.mxu1 %v3101_v47  ;;  %v3077_v47 = vld [vmem:[#allocation6 + $0x578] ss:$24 sps:$4 sm:$0xff]  }
  0xc7   :  { %1453 = vmatprep.subr.bf16.mxu1 %v3106_v48  ;;  %v3082_v48 = vld [vmem:[#allocation6 + $0x5ac] ss:$24 sps:$4 sm:$0xff]  }
  0xc8   :  { %1372 = vmatpush1.bf16.msra.mxu0 %v3008_v27  ;;  %v3067_v27 = vld [vmem:[#allocation6 + $0x4bc] ss:$24 sps:$4 sm:$0xff]  }
  0xc9   :  { %1373 = vmatprep.subr.bf16.mxu0 %v3013_v29  ;;  %v3127_v29 = vld [vmem:[#allocation6 + $0x284] ss:$24 sps:$4 sm:$0xff]  }
  0xca   :  { %1454 = vmatpush1.bf16.msra.mxu1 %v3104_v51  ;;  %v3080_v51 = vld [vmem:[#allocation6 + $0x5a8] ss:$24 sps:$4 sm:$0xff]  }
  0xcb   :  { %1455 = vmatprep.subr.bf16.mxu1 %v3109_v52  ;;  %v3085_v52 = vld [vmem:[#allocation6 + $0x5dc] ss:$24 sps:$4 sm:$0xff]  }
  0xcc   :  { %1374 = vmatpush1.bf16.msra.mxu0 %v3011_v32  ;;  %v3125_v32 = vld [vmem:[#allocation6 + $0x280] ss:$24 sps:$4 sm:$0xff]  }
  0xcd   :  { %1375 = vmatprep.subr.bf16.mxu0 %v3016_v33  ;;  %v3130_v33 = vld [vmem:[#allocation6 + $0x2b4] ss:$24 sps:$4 sm:$0xff]  }
  0xce   :  { %1456 = vmatpush1.bf16.msra.mxu1 %v3107_v56  ;;  %v3083_v56 = vld [vmem:[#allocation6 + $0x5d8] ss:$24 sps:$4 sm:$0xff]  }
  0xcf   :  { %1457 = vmatprep.subr.bf16.mxu1 %v3112_v57  ;;  %v3184_v57 = vld [vmem:[#allocation8 + $0x4] ss:$24 sps:$4 sm:$0xff]  }
  0xd0   :  { %1376 = vmatpush1.bf16.msra.mxu0 %v3014_v36  ;;  %v3128_v36 = vld [vmem:[#allocation6 + $0x2b0] ss:$24 sps:$4 sm:$0xff]  }
  0xd1   :  { %1377 = vmatprep.subr.bf16.mxu0 %v3019_v37  ;;  %v3133_v37 = vld [vmem:[#allocation6 + $0x2e4] ss:$24 sps:$4 sm:$0xff]  }
  0xd2   :  { %1458 = vmatpush1.bf16.msra.mxu1 %v3110_v61  ;;  %v3190_v61 = vld [vmem:[#allocation8 + $0x34] ss:$24 sps:$4 sm:$0xff]  }
  0xd3   :  { %1459 = vmatprep.subr.bf16.mxu1 %v3115_v15  ;;  %v3163_v15 = vld [vmem:[#allocation6 + $0x4c4] ss:$24 sps:$4 sm:$0xff]  }
  0xd4   :  { %1378 = vmatpush1.bf16.msra.mxu0 %v3017_v40  ;;  %v3131_v40 = vld [vmem:[#allocation6 + $0x2e0] ss:$24 sps:$4 sm:$0xff]  }
  0xd5   :  { %1379 = vmatprep.subr.bf16.mxu0 %v3022_v41  ;;  %v3136_v41 = vld [vmem:[#allocation6 + $0x314] ss:$24 sps:$4 sm:$0xff]  }
  0xd6   :  { %1460 = vmatpush1.bf16.msra.mxu1 %v3113_v16  ;;  %v3212_v16 = vld [vmem:[#allocation8 + $0xf0] ss:$24 sps:$4 sm:$0xff]  }
  0xd7   :  { %1461 = vmatprep.subr.bf16.mxu1 %v3118_v20  ;;  %v3218_v20 = vld [vmem:[#allocation8 + $0x120] ss:$24 sps:$4 sm:$0xff]  }
  0xd8   :  { %1380 = vmatpush1.bf16.msra.mxu0 %v3020_v45  ;;  %v3134_v45 = vld [vmem:[#allocation6 + $0x310] ss:$24 sps:$4 sm:$0xff]  }
  0xd9   :  { %1381 = vmatprep.subr.bf16.mxu0 %v3025_v46  ;;  %v3139_v46 = vld [vmem:[#allocation6 + $0x344] ss:$24 sps:$4 sm:$0xff]  }
  0xda   :  { %1462 = vmatpush1.bf16.msra.mxu1 %v3116_v19  ;;  %v3166_v19 = vld [vmem:[#allocation6 + $0x4f4] ss:$24 sps:$4 sm:$0xff]  }
  0xdb   :  { %1463 = vmatprep.subr.bf16.mxu1 %v3121_v21  ;;  %v3164_v21 = vld [vmem:[#allocation6 + $0x4f0] ss:$24 sps:$4 sm:$0xff]  }
  0xdc   :  { %1382 = vmatpush1.bf16.msra.mxu0 %v3023_v49  ;;  %v3137_v49 = vld [vmem:[#allocation6 + $0x340] ss:$24 sps:$4 sm:$0xff]  }
  0xdd   :  { %1383 = vmatprep.subr.bf16.mxu0 %v3028_v50  ;;  %v3142_v50 = vld [vmem:[#allocation6 + $0x374] ss:$24 sps:$4 sm:$0xff]  }
  0xde   :  { %1464 = vmatpush1.bf16.msra.mxu1 %v3119_v24  ;;  %v3224_v24 = vld [vmem:[#allocation8 + $0x150] ss:$24 sps:$4 sm:$0xff]  }
  0xdf   :  { %1465 = vmatprep.subr.bf16.mxu1 %v3124_v25  ;;  %v3167_v25 = vld [vmem:[#allocation6 + $0x520] ss:$24 sps:$4 sm:$0xff]  }
  0xe0   :  { %1384 = vmatpush1.bf16.msra.mxu0 %v3026_v53  ;;  %v3140_v53 = vld [vmem:[#allocation6 + $0x370] ss:$24 sps:$4 sm:$0xff]  }
  0xe1   :  { %1385 = vmatprep.subr.bf16.mxu0 %v3031_v55  ;;  %v3145_v55 = vld [vmem:[#allocation6 + $0x3a4] ss:$24 sps:$4 sm:$0xff]  }
  0xe2   :  { %1466 = vmatpush1.bf16.msra.mxu1 %v3122_v28  ;;  %v3175_v28 = vld [vmem:[#allocation6 + $0x584] ss:$24 sps:$4 sm:$0xff]  }
  0xe3   :  { %1467 = vmatprep.subr.bf16.mxu1 %v3127_v29  ;;  %v3173_v29 = vld [vmem:[#allocation6 + $0x580] ss:$24 sps:$4 sm:$0xff]  }
  0xe4   :  { %1386 = vmatpush1.bf16.msra.mxu0 %v3029_v58  ;;  %v3148_v58 = vld [vmem:[#allocation6 + $0x3d4] ss:$24 sps:$4 sm:$0xff]  }
  0xe5   :  { %1387 = vmatprep.subr.bf16.mxu0 %v3034_v59  ;;  %v3182_v59 = vld [vmem:[#allocation8] ss:$24 sps:$4 sm:$0xff]  }
  0xe6   :  { %1468 = vmatpush1.bf16.msra.mxu1 %v3125_v32  ;;  %v3181_v32 = vld [vmem:[#allocation6 + $0x5e4] ss:$24 sps:$4 sm:$0xff]  }
  0xe7   :  { %1469 = vmatprep.subr.bf16.mxu1 %v3130_v33  ;;  %v3179_v33 = vld [vmem:[#allocation6 + $0x5e0] ss:$24 sps:$4 sm:$0xff]  }
  0xe8   :  { %1388 = vmatpush1.bf16.msra.mxu0 %v3032_v63  ;;  %v3151_v63 = vld [vmem:[#allocation6 + $0x404] ss:$24 sps:$4 sm:$0xff]  }
  0xe9   :  { %1389 = vmatprep.subr.bf16.mxu0 %v3037_v0  ;;  %v3188_v0 = vld [vmem:[#allocation8 + $0x30] ss:$24 sps:$4 sm:$0xff]  }
  0xea   :  { %1470 = vmatpush1.bf16.msra.mxu1 %v3128_v36  ;;  %v3193_v36 = vld [vmem:[#allocation8 + $0x3c] ss:$24 sps:$4 sm:$0xff]  }
  0xeb   :  { %1471 = vmatprep.subr.bf16.mxu1 %v3133_v37  ;;  %v3191_v37 = vld [vmem:[#allocation8 + $0x38] ss:$24 sps:$4 sm:$0xff]  }
  0xec   :  { %1390 = vmatpush1.bf16.msra.mxu0 %v3035_v1  ;;  %v3149_v1 = vld [vmem:[#allocation6 + $0x400] ss:$24 sps:$4 sm:$0xff]  }
  0xed   :  { %1400 = vmatprep.subr.bf16.mxu0 %v3040_v2  ;;  %v3196_v2 = vld [vmem:[#allocation8 + $0x64] ss:$24 sps:$4 sm:$0xff]  }
  0xee   :  { %1472 = vmatpush1.bf16.msra.mxu1 %v3131_v40  ;;  %v3205_v40 = vld [vmem:[#allocation8 + $0x9c] ss:$24 sps:$4 sm:$0xff]  }
  0xef   :  { %1392 = vmatmul.mubr.bf16.vlgmr.msra.gmra.mrb[4].mxu0 %v3622_v54  ;;  %1482 = vmatprep.subr.bf16.mxu1 %v3136_v41  ;;  %v3203_v41 = vld [vmem:[#allocation8 + $0x98] ss:$24 sps:$4 sm:$0xff]  }
  0xf0   :  { %1401 = vmatpush1.bf16.msra.mxu0 %v3038_v3  ;;  %1432 = vmatprep.mubr.bf16.mxu0 %v3630_v62  ;;  %v3154_v3 = vld [vmem:[#allocation6 + $0x434] ss:$24 sps:$4 sm:$0xff]  }
  0xf1   :  { %1402 = vmatprep.subr.bf16.mxu0 %v3043_v4  ;;  %1474 = vmatmul.mubr.bf16.vlgmr.msra.gmra.mrb[4].mxu1 %v3622_v54  ;;  %v3143_v54 = vld [vmem:[#allocation6 + $0x3a0] ss:$24 sps:$4 sm:$0xff]  }
  0xf2   :  { %1483 = vmatpush1.bf16.msra.mxu1 %v3134_v45  ;;  %1514 = vmatprep.mubr.bf16.mxu1 %v3630_v62  ;;  %v3146_v62 = vld [vmem:[#allocation6 + $0x3d0] ss:$24 sps:$4 sm:$0xff]   ;;  %v3194_v4 = vld [vmem:[#allocation8 + $0x60] ss:$24 sps:$4 sm:$0xff]   ;;  %v3217_v45 = vld [vmem:[#allocation8 + $0xfc] ss:$24 sps:$4 sm:$0xff]  }
  0xf3   :  { %1484 = vmatprep.subr.bf16.mxu1 %v3139_v46  ;;  %v3215_v46 = vld [vmem:[#allocation8 + $0xf8] ss:$24 sps:$4 sm:$0xff]  }
  0xf4   :  { %1403 = vmatpush1.bf16.msra.mxu0 %v3041_v5  ;;  %v3152_v5 = vld [vmem:[#allocation6 + $0x430] ss:$24 sps:$4 sm:$0xff]  }
  0xf5   :  { %1404 = vmatprep.subr.bf16.mxu0 %v3046_v6  ;;  %v3202_v6 = vld [vmem:[#allocation8 + $0x94] ss:$24 sps:$4 sm:$0xff]  }
  0xf6   :  { %1485 = vmatpush1.bf16.msra.mxu1 %v3137_v49  ;;  %v3227_v49 = vld [vmem:[#allocation8 + $0x158] ss:$24 sps:$4 sm:$0xff]  }
  0xf7   :  { %1486 = vmatprep.subr.bf16.mxu1 %v3142_v50 }
  0xf8   :  { %1405 = vmatpush1.bf16.msra.mxu0 %v3044_v7  ;;  %v3157_v7 = vld [vmem:[#allocation6 + $0x464] ss:$24 sps:$4 sm:$0xff]  }
  0xf9   :  { %1406 = vmatprep.subr.bf16.mxu0 %v3049_v8  ;;  %v3200_v8 = vld [vmem:[#allocation8 + $0x90] ss:$24 sps:$4 sm:$0xff]  }
  0xfa   :  { %1487 = vmatpush1.bf16.msra.mxu1 %v3140_v53 }
  0xfb   :  { %1488 = vmatprep.subr.bf16.mxu1 %v3145_v55 }
  0xfc   :  { %1407 = vmatpush1.bf16.msra.mxu0 %v3047_v9  ;;  %v3155_v9 = vld [vmem:[#allocation6 + $0x460] ss:$24 sps:$4 sm:$0xff]  }
  0xfd   :  { %1408 = vmatprep.subr.bf16.mxu0 %v3052_v10  ;;  %v3208_v10 = vld [vmem:[#allocation8 + $0xc4] ss:$24 sps:$4 sm:$0xff]  }
  0xfe   :  { %1489 = vmatpush1.bf16.msra.mxu1 %v3143_v54  ;;  %v3230_v54 = vld [vmem:[#allocation8 + $0x180] ss:$24 sps:$4 sm:$0xff]  }
  0xff   :  { %1490 = vmatprep.subr.bf16.mxu1 %v3148_v58 }
 0x100   :  { %1409 = vmatpush1.bf16.msra.mxu0 %v3050_v11  ;;  %v3160_v11 = vld [vmem:[#allocation6 + $0x494] ss:$24 sps:$4 sm:$0xff]  }
 0x101   :  { %1410 = vmatprep.subr.bf16.mxu0 %v3055_v12  ;;  %v3206_v12 = vld [vmem:[#allocation8 + $0xc0] ss:$24 sps:$4 sm:$0xff]  }
 0x102   :  { %1491 = vmatpush1.bf16.msra.mxu1 %v3146_v62 }
 0x103   :  { %1492 = vmatprep.subr.bf16.mxu1 %v3151_v63  ;;  %v1553_v63 = vld [vmem:[#allocation2] sm:$0x11] }
 0x104   :  { %1411 = vmatpush1.bf16.msra.mxu0 %v3053_v13  ;;  %v3158_v13 = vld [vmem:[#allocation6 + $0x490] ss:$24 sps:$4 sm:$0xff]  }
 0x105   :  { %1412 = vmatprep.subr.bf16.mxu0 %v3058_v14  ;;  %v3214_v14 = vld [vmem:[#allocation8 + $0xf4] ss:$24 sps:$4 sm:$0xff]  }
 0x106   :  { %1493 = vmatpush1.bf16.msra.mxu1 %v3149_v1  ;;  %v3235_v1 = vld [vmem:[#allocation8 + $0x18c] ss:$24 sps:$4 sm:$0xff]  }
 0x107   :  { %1494 = vmatprep.subr.bf16.mxu1 %v3154_v3  ;;  %v1554_v3 = vsel %vm1552_vm6, 0, %v1553_v63  ;;  %vm1569_vm6 = vsmask.f32 7954 }
 0x108   :  { %1413 = vmatpush1.bf16.msra.mxu0 %v3056_v17  ;;  %v3161_v17 = vld [vmem:[#allocation6 + $0x4c0] ss:$24 sps:$4 sm:$0xff]   ;;  %1555 = vst [vmem:[#allocation2] sm:$0x11] %v1554_v3  ;;  %vm1570_vm12 = vmand %vm1549_vm3, %vm1569_vm6 }
 0x109   :  { %1414 = vmatprep.subr.bf16.mxu0 %v3061_v18  ;;  %v3220_v18 = vld [vmem:[#allocation8 + $0x124] ss:$24 sps:$4 sm:$0xff]   ;;  %vm1571_vm15 = vmor %vm1570_vm12, %vm3672_vm9 }
 0x10a   :  { %1495 = vmatpush1.bf16.msra.mxu1 %v3152_v5  ;;  %v3241_v5 = vld [vmem:[#allocation8 + $0x1bc] ss:$24 sps:$4 sm:$0xff]   ;;  %vm1606_vm3 = vmand %vm1595_vm7, %vm1605_vm2 }
 0x10b   :  { %1496 = vmatprep.subr.bf16.mxu1 %v3157_v7  ;;  %v3244_v7 = vld [vmem:[#allocation8 + $0x1e4] ss:$24 sps:$4 sm:$0xff]  }
 0x10c   :  { %1415 = vmatpush1.bf16.msra.mxu0 %v3059_v22  ;;  %v3226_v22 = vld [vmem:[#allocation8 + $0x154] ss:$24 sps:$4 sm:$0xff]  }
 0x10d   :  { %1416 = vmatprep.subr.bf16.mxu0 %v3064_v23  ;;  %v3169_v23 = vld [vmem:[#allocation6 + $0x524] ss:$24 sps:$4 sm:$0xff]  }
 0x10e   :  { %1497 = vmatpush1.bf16.msra.mxu1 %v3155_v9  ;;  %v3247_v9 = vld [vmem:[#allocation8 + $0x1ec] ss:$24 sps:$4 sm:$0xff]  }
 0x10f   :  { %1498 = vmatprep.subr.bf16.mxu1 %v3160_v11  ;;  %v3250_v11 = vld [vmem:[#allocation8 + $0x214] ss:$24 sps:$4 sm:$0xff]  }
 0x110   :  { %1417 = vmatpush1.bf16.msra.mxu0 %v3062_v26  ;;  %v3172_v26 = vld [vmem:[#allocation6 + $0x554] ss:$24 sps:$4 sm:$0xff]  }
 0x111   :  { %1418 = vmatprep.subr.bf16.mxu0 %v3067_v27  ;;  %v3170_v27 = vld [vmem:[#allocation6 + $0x550] ss:$24 sps:$4 sm:$0xff]  }
 0x112   :  { %1499 = vmatpush1.bf16.msra.mxu1 %v3158_v13  ;;  %v3253_v13 = vld [vmem:[#allocation8 + $0x21c] ss:$24 sps:$4 sm:$0xff]  }
 0x113   :  { %1500 = vmatprep.subr.bf16.mxu1 %v3163_v15  ;;  %v3256_v15 = vld [vmem:[#allocation8 + $0x244] ss:$24 sps:$4 sm:$0xff]  }
 0x114   :  { %1419 = vmatpush1.bf16.msra.mxu0 %v3065_v30  ;;  %v3178_v30 = vld [vmem:[#allocation6 + $0x5b4] ss:$24 sps:$4 sm:$0xff]  }
 0x115   :  { %1420 = vmatprep.subr.bf16.mxu0 %v3070_v31  ;;  %v3176_v31 = vld [vmem:[#allocation6 + $0x5b0] ss:$24 sps:$4 sm:$0xff]  }
 0x116   :  { %1501 = vmatpush1.bf16.msra.mxu1 %v3161_v17  ;;  %v3259_v17 = vld [vmem:[#allocation8 + $0x24c] ss:$24 sps:$4 sm:$0xff]  }
 0x117   :  { %1502 = vmatprep.subr.bf16.mxu1 %v3166_v19  ;;  %v3262_v19 = vld [vmem:[#allocation8 + $0x274] ss:$24 sps:$4 sm:$0xff]  }
 0x118   :  { %1421 = vmatpush1.bf16.msra.mxu0 %v3068_v34  ;;  %v3187_v34 = vld [vmem:[#allocation8 + $0xc] ss:$24 sps:$4 sm:$0xff]  }
 0x119   :  { %1422 = vmatprep.subr.bf16.mxu0 %v3073_v35  ;;  %v3185_v35 = vld [vmem:[#allocation8 + $0x8] ss:$24 sps:$4 sm:$0xff]  }
 0x11a   :  { %1503 = vmatpush1.bf16.msra.mxu1 %v3164_v21  ;;  %v3265_v21 = vld [vmem:[#allocation8 + $0x27c] ss:$24 sps:$4 sm:$0xff]  }
 0x11b   :  { %1504 = vmatprep.subr.bf16.mxu1 %v3169_v23  ;;  %v1582_v23 = vld [vmem:[#allocation2] sm:$0x22] }
 0x11c   :  { %1423 = vmatpush1.bf16.msra.mxu0 %v3071_v38  ;;  %v3199_v38 = vld [vmem:[#allocation8 + $0x6c] ss:$24 sps:$4 sm:$0xff]  }
 0x11d   :  { %1424 = vmatprep.subr.bf16.mxu0 %v3076_v39  ;;  %v3197_v39 = vld [vmem:[#allocation8 + $0x68] ss:$24 sps:$4 sm:$0xff]  }
 0x11e   :  { %1505 = vmatpush1.bf16.msra.mxu1 %v3167_v25  ;;  %v3268_v25 = vld [vmem:[#allocation8 + $0x2a4] ss:$24 sps:$4 sm:$0xff]  }
 0x11f   :  { %1506 = vmatprep.subr.bf16.mxu1 %v3172_v26  ;;  %v3266_v26 = vld [vmem:[#allocation8 + $0x2a0] ss:$24 sps:$4 sm:$0xff]  }
 0x120   :  { %1425 = vmatpush1.bf16.msra.mxu0 %v3074_v42  ;;  %v3211_v42 = vld [vmem:[#allocation8 + $0xcc] ss:$24 sps:$4 sm:$0xff]  }
 0x121   :  { %1426 = vmatprep.subr.bf16.mxu0 %v3079_v44  ;;  %v3209_v44 = vld [vmem:[#allocation8 + $0xc8] ss:$24 sps:$4 sm:$0xff]  }
 0x122   :  { %1507 = vmatpush1.bf16.msra.mxu1 %v3170_v27  ;;  %v3271_v27 = vld [vmem:[#allocation8 + $0x2ac] ss:$24 sps:$4 sm:$0xff]  }
 0x123   :  { %1508 = vmatprep.subr.bf16.mxu1 %v3175_v28  ;;  %v3274_v28 = vld [vmem:[#allocation8 + $0x2d4] ss:$24 sps:$4 sm:$0xff]  }
 0x124   :  { %1427 = vmatpush1.bf16.msra.mxu0 %v3077_v47  ;;  %v3221_v47 = vld [vmem:[#allocation8 + $0x128] ss:$24 sps:$4 sm:$0xff]  }
 0x125   :  { %1428 = vmatprep.subr.bf16.mxu0 %v3082_v48  ;;  %v3229_v48 = vld [vmem:[#allocation8 + $0x15c] ss:$24 sps:$4 sm:$0xff]  }
 0x126   :  { %1509 = vmatpush1.bf16.msra.mxu1 %v3173_v29  ;;  %v1583_v29 = vsel %vm1581_vm13, 0, %v1582_v23  ;;  %vm1597_vm13 = vmand %vm1595_vm7, %vm1596_vm8  ;;  %v3301_v23 = vld [vmem:[#allocation8 + $0x160] ss:$24 sps:$4 sm:$0xff]   ;;  %vm2487_vm7 = vcmask 1041408  }
 0x127   :  { %1510 = vmatprep.subr.bf16.mxu1 %v3178_v30  ;;  %1584 = vst [vmem:[#allocation2] sm:$0x22] %v1583_v29  ;;  %v3269_v30 = vld [vmem:[#allocation8 + $0x2a8] ss:$24 sps:$4 sm:$0xff]   ;;  %vm1601_vm1 = vmor %vm1600_vm14, %vm1597_vm13 }
 0x128   :  { %1429 = vmatpush1.bf16.msra.mxu0 %v3080_v51  ;;  %v3310_v29 = vld [vmem:[#allocation8 + $0x1f0] ss:$24 sps:$4 sm:$0xff]  }
 0x129   :  { %1430 = vmatprep.subr.bf16.mxu0 %v3085_v52  ;;  %v3232_v52 = vld [vmem:[#allocation8 + $0x184] ss:$24 sps:$4 sm:$0xff]  }
 0x12a   :  { %1511 = vmatpush1.bf16.msra.mxu1 %v3176_v31  ;;  %v3313_v31 = vld [vmem:[#allocation8 + $0x220] ss:$24 sps:$4 sm:$0xff]  }
 0x12b   :  { %1512 = vmatprep.subr.bf16.mxu1 %v3181_v32  ;;  %v3272_v32 = vld [vmem:[#allocation8 + $0x2d0] ss:$24 sps:$4 sm:$0xff]  }
 0x12c   :  { %1431 = vmatpush1.bf16.msra.mxu0 %v3083_v56 }
 0x12d   :  { %2197 = vmatprep.subr.bf16.mxu0 %v3184_v57 }
 0x12e   :  { %1513 = vmatpush1.bf16.msra.mxu1 %v3179_v33  ;;  %v3277_v33 = vld [vmem:[#allocation8 + $0x2dc] ss:$24 sps:$4 sm:$0xff]  }
 0x12f   :  { %1433 = vmatmul.mubr.bf16.vlgmr.msra.gmra.mrb[4].mxu0 %v3626_v60  ;;  %2238 = vmatprep.subr.bf16.mxu1 %v3187_v34  ;;  %v3275_v34 = vld [vmem:[#allocation8 + $0x2d8] ss:$24 sps:$4 sm:$0xff]  }
 0x130   :  { %2198 = vmatpush1.bf16.msra.mxu0 %v3182_v59 }
 0x131   :  { %2199 = vmatprep.subr.bf16.mxu0 %v3190_v61  ;;  %1515 = vmatmul.mubr.bf16.vlgmr.msra.gmra.mrb[4].mxu1 %v3626_v60  ;;  %v3223_v60 = vld [vmem:[#allocation8 + $0x12c] ss:$24 sps:$4 sm:$0xff]  }
 0x132   :  { %2239 = vmatpush1.bf16.msra.mxu1 %v3185_v35  ;;  %v3282_v35 = vld [vmem:[#allocation8 + $0x14] ss:$24 sps:$4 sm:$0xff]  }
 0x133   :  { %2240 = vmatprep.subr.bf16.mxu1 %v3193_v36  ;;  %v1590_v36 = vld [vmem:[#allocation2] sm:$0x22] }
 0x134   :  { %2200 = vmatpush1.bf16.msra.mxu0 %v3188_v0  ;;  %v3233_v0 = vld [vmem:[#allocation8 + $0x188] ss:$24 sps:$4 sm:$0xff]  }
 0x135   :  { %2201 = vmatprep.subr.bf16.mxu0 %v3196_v2  ;;  %v3236_v2 = vld [vmem:[#allocation8 + $0x1b0] ss:$24 sps:$4 sm:$0xff]  }
 0x136   :  { %2241 = vmatpush1.bf16.msra.mxu1 %v3191_v37  ;;  %v1591_v37 = vsel %vm1589_vm4, 0, %v1590_v36  ;;  %vm1607_vm4 = vsmask.f32 7962  ;;  %v3324_v36 = vld [vmem:[#allocation8 + $0x2b4] ss:$24 sps:$4 sm:$0xff]  }
 0x137   :  { %2242 = vmatprep.subr.bf16.mxu1 %v3199_v38  ;;  %1592 = vst [vmem:[#allocation2] sm:$0x22] %v1591_v37  ;;  %v1534_v38 = vsub.s32 0, %v3619_v43  ;;  %vm1608_vm5 = vmand %vm1598_vm10, %vm1607_vm4  ;;  %v3322_v37 = vld [vmem:[#allocation8 + $0x2b0] ss:$24 sps:$4 sm:$0xff]  }
 0x138   :  { %2202 = vmatpush1.bf16.msra.mxu0 %v3194_v4  ;;  %v3238_v4 = vld [vmem:[#allocation8 + $0x1b4] ss:$24 sps:$4 sm:$0xff]   ;;  %vm1609_vm6 = vmor %vm1608_vm5, %vm1606_vm3 }
 0x139   :  { %2203 = vmatprep.subr.bf16.mxu0 %v3202_v6  ;;  %v3239_v6 = vld [vmem:[#allocation8 + $0x1b8] ss:$24 sps:$4 sm:$0xff]  }
 0x13a   :  { %2243 = vmatpush1.bf16.msra.mxu1 %v3197_v39  ;;  %v3664_v39 = vld [vmem:[#allocation9] sm:$0xf] }
 0x13b   :  { %2244 = vmatprep.subr.bf16.mxu1 %v3205_v40  ;;  %v1538_v40 = vsub.s32 2, %v3619_v43 }
 0x13c   :  { %2204 = vmatpush1.bf16.msra.mxu0 %v3200_v8  ;;  %v3242_v8 = vld [vmem:[#allocation8 + $0x1e0] ss:$24 sps:$4 sm:$0xff]  }
 0x13d   :  { %2205 = vmatprep.subr.bf16.mxu0 %v3208_v10  ;;  %v3245_v10 = vld [vmem:[#allocation8 + $0x1e8] ss:$24 sps:$4 sm:$0xff]  }
 0x13e   :  { %2245 = vmatpush1.bf16.msra.mxu1 %v3203_v41 }
 0x13f   :  { %2246 = vmatprep.subr.bf16.mxu1 %v3211_v42 }
 0x140   :  { %2206 = vmatpush1.bf16.msra.mxu0 %v3206_v12  ;;  %v3248_v12 = vld [vmem:[#allocation8 + $0x210] ss:$24 sps:$4 sm:$0xff]  }
 0x141   :  { %2207 = vmatprep.subr.bf16.mxu0 %v3214_v14  ;;  %v3251_v14 = vld [vmem:[#allocation8 + $0x218] ss:$24 sps:$4 sm:$0xff]  }
 0x142   :  { %2247 = vmatpush1.bf16.msra.mxu1 %v3209_v44  ;;  %v1535_v44 = vrot.slane %v3664_v39, %v1534_v38  ;;  %v3327_v38 = vld [vmem:[#allocation8 + $0x2e4] ss:$24 sps:$4 sm:$0xff]  }
 0x143   :  { %2248 = vmatprep.subr.bf16.mxu1 %v3217_v45 }
 0x144   :  { %2208 = vmatpush1.bf16.msra.mxu0 %v3212_v16  ;;  %v3254_v16 = vld [vmem:[#allocation8 + $0x240] ss:$24 sps:$4 sm:$0xff]  }
 0x145   :  { %2209 = vmatprep.subr.bf16.mxu0 %v3220_v18  ;;  %v3257_v18 = vld [vmem:[#allocation8 + $0x248] ss:$24 sps:$4 sm:$0xff]  }
 0x146   :  { %2249 = vmatpush1.bf16.msra.mxu1 %v3215_v46 }
 0x147   :  { %2250 = vmatprep.subr.bf16.mxu1 %v3223_v60  ;;  %v1539_v60 = vrot.slane %v3664_v39, %v1538_v40  ;;  %v3325_v40 = vld [vmem:[#allocation8 + $0x2e0] ss:$24 sps:$4 sm:$0xff]  }
 0x148   :  { %2210 = vmatpush1.bf16.msra.mxu0 %v3218_v20  ;;  %v3260_v20 = vld [vmem:[#allocation8 + $0x270] ss:$24 sps:$4 sm:$0xff]  }
 0x149   :  { %2211 = vmatprep.subr.bf16.mxu0 %v3226_v22  ;;  %v3303_v22 = vld [vmem:[#allocation8 + $0x164] ss:$24 sps:$4 sm:$0xff]  }
 0x14a   :  { %2251 = vmatpush1.bf16.msra.mxu1 %v3221_v47 }
 0x14b   :  { %2252 = vmatprep.subr.bf16.mxu1 %v3229_v48 }
 0x14c   :  { %2212 = vmatpush1.bf16.msra.mxu0 %v3224_v24  ;;  %v3263_v24 = vld [vmem:[#allocation8 + $0x278] ss:$24 sps:$4 sm:$0xff]  }
 0x14d   :  { %2213 = vmatprep.subr.bf16.mxu0 %v3232_v52  ;;  %v2397_v52 = vld [vmem:[#allocation11 + $0xa0] sm:$0xff] }
 0x14e   :  { %2253 = vmatpush1.bf16.msra.mxu1 %v3227_v49 }
 0x14f   :  { %2254 = vmatprep.subr.bf16.mxu1 %v3235_v1 }
 0x150   :  { %2214 = vmatpush1.bf16.msra.mxu0 %v3230_v54 }
 0x151   :  { %2215 = vmatprep.subr.bf16.mxu0 %v3238_v4 }
 0x152   :  { %2255 = vmatpush1.bf16.msra.mxu1 %v3233_v0 }
 0x153   :  { %2256 = vmatprep.subr.bf16.mxu1 %v3241_v5  ;;  %v3280_v5 = vld [vmem:[#allocation8 + $0x10] ss:$24 sps:$4 sm:$0xff]  }
 0x154   :  { %2216 = vmatpush1.bf16.msra.mxu0 %v3236_v2 }
 0x155   :  { %2217 = vmatprep.subr.bf16.mxu0 %v3244_v7  ;;  %v3283_v7 = vld [vmem:[#allocation8 + $0x40] ss:$24 sps:$4 sm:$0xff]  }
 0x156   :  { %2257 = vmatpush1.bf16.msra.mxu1 %v3239_v6  ;;  %v3285_v6 = vld [vmem:[#allocation8 + $0x44] ss:$24 sps:$4 sm:$0xff]  }
 0x157   :  { %2258 = vmatprep.subr.bf16.mxu1 %v3247_v9  ;;  %v3286_v9 = vld [vmem:[#allocation8 + $0x70] ss:$24 sps:$4 sm:$0xff]  }
 0x158   :  { %2218 = vmatpush1.bf16.msra.mxu0 %v3242_v8  ;;  %v3288_v8 = vld [vmem:[#allocation8 + $0x74] ss:$24 sps:$4 sm:$0xff]  }
 0x159   :  { %2219 = vmatprep.subr.bf16.mxu0 %v3250_v11  ;;  %v3289_v11 = vld [vmem:[#allocation8 + $0xa0] ss:$24 sps:$4 sm:$0xff]  }
 0x15a   :  { %2259 = vmatpush1.bf16.msra.mxu1 %v3245_v10  ;;  %v3291_v10 = vld [vmem:[#allocation8 + $0xa4] ss:$24 sps:$4 sm:$0xff]  }
 0x15b   :  { %2260 = vmatprep.subr.bf16.mxu1 %v3253_v13  ;;  %v3292_v13 = vld [vmem:[#allocation8 + $0xd0] ss:$24 sps:$4 sm:$0xff]  }
 0x15c   :  { %2220 = vmatpush1.bf16.msra.mxu0 %v3248_v12  ;;  %v3294_v12 = vld [vmem:[#allocation8 + $0xd4] ss:$24 sps:$4 sm:$0xff]  }
 0x15d   :  { %2221 = vmatprep.subr.bf16.mxu0 %v3256_v15 }
 0x15e   :  { %2261 = vmatpush1.bf16.msra.mxu1 %v3251_v14  ;;  %v3297_v14 = vld [vmem:[#allocation8 + $0x104] ss:$24 sps:$4 sm:$0xff]  }
 0x15f   :  { %2262 = vmatprep.subr.bf16.mxu1 %v3259_v17 }
 0x160   :  { %2222 = vmatpush1.bf16.msra.mxu0 %v3254_v16 }
 0x161   :  { %2223 = vmatprep.subr.bf16.mxu0 %v3262_v19 }
 0x162   :  { %2263 = vmatpush1.bf16.msra.mxu1 %v3257_v18  ;;  %v3295_v18 = vld [vmem:[#allocation8 + $0x100] ss:$24 sps:$4 sm:$0xff]  }
 0x163   :  { %2264 = vmatprep.subr.bf16.mxu1 %v3265_v21  ;;  %v3298_v21 = vld [vmem:[#allocation8 + $0x130] ss:$24 sps:$4 sm:$0xff]  }
 0x164   :  { %2224 = vmatpush1.bf16.msra.mxu0 %v3260_v20  ;;  %v3300_v20 = vld [vmem:[#allocation8 + $0x134] ss:$24 sps:$4 sm:$0xff]  }
 0x165   :  { %2225 = vmatprep.subr.bf16.mxu0 %v3268_v25  ;;  %v3304_v25 = vld [vmem:[#allocation8 + $0x190] ss:$24 sps:$4 sm:$0xff]  }
 0x166   :  { %2265 = vmatpush1.bf16.msra.mxu1 %v3263_v24  ;;  %v3306_v24 = vld [vmem:[#allocation8 + $0x194] ss:$24 sps:$4 sm:$0xff]  }
 0x167   :  { %2266 = vmatprep.subr.bf16.mxu1 %v3271_v27  ;;  %v3307_v27 = vld [vmem:[#allocation8 + $0x1c0] ss:$24 sps:$4 sm:$0xff]  }
 0x168   :  { %2226 = vmatpush1.bf16.msra.mxu0 %v3266_v26  ;;  %v3309_v26 = vld [vmem:[#allocation8 + $0x1c4] ss:$24 sps:$4 sm:$0xff]  }
 0x169   :  { %2227 = vmatprep.subr.bf16.mxu0 %v3274_v28  ;;  %v3312_v28 = vld [vmem:[#allocation8 + $0x1f4] ss:$24 sps:$4 sm:$0xff]  }
 0x16a   :  { %2267 = vmatpush1.bf16.msra.mxu1 %v3269_v30  ;;  %v3315_v30 = vld [vmem:[#allocation8 + $0x224] ss:$24 sps:$4 sm:$0xff]  }
 0x16b   :  { %2268 = vmatprep.subr.bf16.mxu1 %v3277_v33  ;;  %v3316_v33 = vld [vmem:[#allocation8 + $0x250] ss:$24 sps:$4 sm:$0xff]  }
 0x16c   :  { %2228 = vmatpush1.bf16.msra.mxu0 %v3272_v32  ;;  %v3318_v32 = vld [vmem:[#allocation8 + $0x254] ss:$24 sps:$4 sm:$0xff]  }
 0x16d   :  { %2279 = vmatprep.subr.bf16.mxu0 %v3282_v35  ;;  %v3319_v35 = vld [vmem:[#allocation8 + $0x280] ss:$24 sps:$4 sm:$0xff]  }
 0x16e   :  { %2269 = vmatpush1.bf16.msra.mxu1 %v3275_v34  ;;  %v3321_v34 = vld [vmem:[#allocation8 + $0x284] ss:$24 sps:$4 sm:$0xff]  }
 0x182   :  { %v1311_v50 = vpop.f32.mrb[0].mxu0 }
 0x183   :  { %v1352_v51 = vpop.f32.mrb[0].mxu1  ;;  %v1313_v55 = vpop.f32.mrb[1].mxu0 }
 0x184   :  { %v3641_v53 = vadd.f32 %v1352_v51, %v1311_v50  ;;  %v1354_v56 = vpop.f32.mrb[1].mxu1  ;;  %v1315_v58 = vpop.f32.mrb[2].mxu0 }
 0x185   :  { %v3643_v57 = vadd.f32 %v1354_v56, %v1313_v55  ;;  %v1356_v59 = vpop.f32.mrb[2].mxu1  ;;  %v1316_v62 = vpop.f32.mrb[3].mxu0  ;;  %v1602_v58 = vld [vmem:[#allocation2] sm:$0x44] }
 0x186   :  { %v1357_v61 = vpop.f32.mrb[3].mxu1 }
 0x202   :  { %v1434_v41 = vpop.f32.mrb[4].mxu0 }
 0x203   :  { %v1525_v42 = vrot.slane %v1434_v41, 1  ;;  %v1436_v45 = vpop.f32.mrb[5].mxu0  ;;  %v2393_v41 = vld [vmem:[#allocation11 + $0x80] sm:$0xff] }
 0x204   :  { %v1526_v46 = vrot.slane %v1436_v45, 1  ;;  %v1438_v47 = vpop.f32.mrb[6].mxu0  ;;  %v3687_v15 = vpop.f32.mrb[4].mxu1 }
 0x205   :  { %v1529_v48 = vadd.f32 %v1525_v42, %v3641_v53  ;;  %v1439_v49 = vpop.f32.mrb[7].mxu0  ;;  %v3689_v16 = vpop.f32.mrb[5].mxu1  ;;  %v2394_v42 = vld [vmem:[#allocation11 + $0x88] sm:$0xff]  ;;  %v2396_v47 = vld [vmem:[#allocation11 + $0x98] sm:$0xff] }
 0x206   :  { %v1530_v50 = vadd.f32 %v1526_v46, %v3643_v57  ;;  %v1572_v57 = vld [vmem:[#allocation2] sm:$0x11]  ;;  %v1520_v17 = vpop.f32.mrb[6].mxu1  ;;  %v2841_v45 = vpack.c.bf16 %v2394_v42, %v2393_v41  ;;  %v2340_v41 = vsub.s32 1, %v3619_v43 }
 0x207   :  { %v1542_v51 = vadd.f32 %v1535_v44, %v1529_v48  ;;  %v1521_v19 = vpop.f32.mrb[7].mxu1  ;;  %v2377_v44 = vld [vmem:[#allocation11] sm:$0xff]  ;;  %v2378_v46 = vld [vmem:[#allocation11 + $0x8] sm:$0xff] }
 0x208   :  { %v1543_v55 = vadd.f32 %v1539_v60, %v1530_v50  ;;  %v2395_v60 = vld [vmem:[#allocation11 + $0x90] sm:$0xff]  ;;  %v2843_v48 = vpack.c.bf16 %v2378_v46, %v2377_v44  ;;  %2842 = vmatprep.subr.bf16.mxu1 %v2841_v45  ;;  %v2406_v17 = vld [vmem:[#allocation11 + $0xe8] sm:$0xff]  ;;  %v2389_v19 = vld [vmem:[#allocation11 + $0x60] sm:$0xff]  ;;  %v2344_v44 = vsub.s32 3, %v3619_v43 }
 0x209   :  { %v1544_v56 = vmax.f32 %v1542_v51, 0.0  ;;  %v2845_v49 = vpack.c.bf16 %v2396_v47, %v2395_v60  ;;  %v2379_v50 = vld [vmem:[#allocation11 + $0x10] sm:$0xff]  ;;  %v2380_v51 = vld [vmem:[#allocation11 + $0x18] sm:$0xff] }
 0x20a   :  { %v1545_v53 = vmax.f32 %v1543_v55, 0.0  ;;  %v2398_v55 = vld [vmem:[#allocation11 + $0xa8] sm:$0xff] }
 0x20c   :  { %v2805_v54 = vpack.c.bf16 %v1545_v53, %v1544_v56  ;;  %v2847_v56 = vpack.c.bf16 %v2380_v51, %v2379_v50  ;;  %v2849_v53 = vpack.c.bf16 %v2398_v55, %v2397_v52  ;;  %v2341_v50 = vrot.slane %v3664_v39, %v2340_v41 }
 0x20d   :  { %v2357_v52 = vrot.slane %v3689_v16, 7 }
 0x20e   :  { %v1564_v59 = vshll.u32 %v2805_v54, 16  ;;  %v1593_v62 = vrot.slane %v2805_v54, 7  ;;  %v2381_v54 = vld [vmem:[#allocation11 + $0x20] sm:$0xff] }
 0x210   :  { %v1573_v61 = vsel %vm1571_vm15, %v1564_v59, %v1572_v57  ;;  %v1603_v63 = vsel %vm1601_vm1, %v1593_v62, %v1602_v58  ;;  %v2382_v57 = vld [vmem:[#allocation11 + $0x28] sm:$0xff]  ;;  %v2399_v58 = vld [vmem:[#allocation11 + $0xb0] sm:$0xff]  ;;  %v2400_v59 = vld [vmem:[#allocation11 + $0xb8] sm:$0xff] }
 0x211   :  { %1574 = vst [vmem:[#allocation2] sm:$0x11] %v1573_v61  ;;  %1604 = vst [vmem:[#allocation2] sm:$0x44] %v1603_v63  ;;  %v2851_v62 = vpack.c.bf16 %v2382_v57, %v2381_v54  ;;  %v2853_v61 = vpack.c.bf16 %v2400_v59, %v2399_v58  ;;  %v2383_v63 = vld [vmem:[#allocation11 + $0x30] sm:$0xff] }
 0x218   :  { %v1610_v0 = vld [vmem:[#allocation2] sm:$0x44] }
 0x219   :  { %v1611_v1 = vsel %vm1609_vm6, 0, %v1610_v0  ;;  %v2384_v0 = vld [vmem:[#allocation11 + $0x38] sm:$0xff] }
 0x21a   :  { %1612 = vst [vmem:[#allocation2] sm:$0x44] %v1611_v1  ;;  %v2855_v1 = vpack.c.bf16 %v2384_v0, %v2383_v63 }
 0x221   :  { %v1613_v2 = vld [vmem:[#allocation2] sm:$0x77] }
 0x222   :  { %v3683_v3 = vcombine.low %v1613_v2, %v1613_v2  ;;  %v2707_v4 = vcombine.high %v1613_v2, %v1613_v2  ;;  %v2401_v2 = vld [vmem:[#allocation11 + $0xc0] sm:$0xff] }
 0x224   :  { %2229 = vmatprep.mubr.bf16.mxu0 %v2707_v4  ;;  %2270 = vmatprep.mubr.bf16.mxu1 %v2707_v4 }
 0x225   :  { %2230 = vmatmul.mubr.bf16.vlgmr.msra.gmra.mrb[8].mxu0 %v3683_v3  ;;  %2271 = vmatmul.mubr.bf16.vlgmr.msra.gmra.mrb[8].mxu1 %v3683_v3 }
 0x226   :  { %2280 = vmatpush1.bf16.msra.mxu0 %v3280_v5  ;;  %2311 = vmatprep.mubr.bf16.mxu0 %v2707_v4  ;;  %v2385_v5 = vld [vmem:[#allocation11 + $0x40] sm:$0xff] }
 0x227   :  { %2281 = vmatprep.subr.bf16.mxu0 %v3285_v6  ;;  %2844 = vmatpush3.bf16.msra.mxu1 %v2843_v48  ;;  %v2386_v6 = vld [vmem:[#allocation11 + $0x48] sm:$0xff]  ;;  %v2356_v48 = vrot.slane %v3687_v15, 7 }
 0x228   :  { %2846 = vmatprep.subr.bf16.mxu1 %v2845_v49 }
 0x22a   :  { %2282 = vmatpush1.bf16.msra.mxu0 %v3283_v7  ;;  %v2859_v7 = vpack.c.bf16 %v2386_v6, %v2385_v5  ;;  %v2804_v6 = vld [vmem:[#allocation12] ss:$0 sm:$0xff] }
 0x22b   :  { %2283 = vmatprep.subr.bf16.mxu0 %v3288_v8  ;;  %2848 = vmatpush3.bf16.msra.mxu1 %v2847_v56  ;;  %v2403_v8 = vld [vmem:[#allocation11 + $0xd0] sm:$0xff]  ;;  %v2345_v56 = vrot.slane %v3664_v39, %v2344_v44 }
 0x22c   :  { %2850 = vmatprep.subr.bf16.mxu1 %v2849_v53 }
 0x22e   :  { %2284 = vmatpush1.bf16.msra.mxu0 %v3286_v9  ;;  %v2404_v9 = vld [vmem:[#allocation11 + $0xd8] sm:$0xff] }
 0x22f   :  { %2285 = vmatprep.subr.bf16.mxu0 %v3291_v10  ;;  %2852 = vmatpush3.bf16.msra.mxu1 %v2851_v62  ;;  %v2861_v10 = vpack.c.bf16 %v2404_v9, %v2403_v8 }
 0x230   :  { %2854 = vmatprep.subr.bf16.mxu1 %v2853_v61 }
 0x232   :  { %2286 = vmatpush1.bf16.msra.mxu0 %v3289_v11  ;;  %v2387_v11 = vld [vmem:[#allocation11 + $0x50] sm:$0xff] }
 0x233   :  { %2287 = vmatprep.subr.bf16.mxu0 %v3294_v12  ;;  %2856 = vmatpush3.bf16.msra.mxu1 %v2855_v1  ;;  %v2388_v12 = vld [vmem:[#allocation11 + $0x58] sm:$0xff] }
 0x236   :  { %2288 = vmatpush1.bf16.msra.mxu0 %v3292_v13  ;;  %v2863_v13 = vpack.c.bf16 %v2388_v12, %v2387_v11 }
 0x237   :  { %2289 = vmatprep.subr.bf16.mxu0 %v3297_v14  ;;  %v2405_v14 = vld [vmem:[#allocation11 + $0xe0] sm:$0xff] }
 0x23a   :  { %2290 = vmatpush1.bf16.msra.mxu0 %v3295_v18  ;;  %v2865_v18 = vpack.c.bf16 %v2406_v17, %v2405_v14 }
 0x23b   :  { %2291 = vmatprep.subr.bf16.mxu0 %v3300_v20  ;;  %v2390_v20 = vld [vmem:[#allocation11 + $0x68] sm:$0xff] }
 0x23e   :  { %2292 = vmatpush1.bf16.msra.mxu0 %v3298_v21  ;;  %v2867_v21 = vpack.c.bf16 %v2390_v20, %v2389_v19 }
 0x23f   :  { %2293 = vmatprep.subr.bf16.mxu0 %v3303_v22  ;;  %v2407_v22 = vld [vmem:[#allocation11 + $0xf0] sm:$0xff] }
 0x242   :  { %2294 = vmatpush1.bf16.msra.mxu0 %v3301_v23  ;;  %v2408_v23 = vld [vmem:[#allocation11 + $0xf8] sm:$0xff] }
 0x243   :  { %2295 = vmatprep.subr.bf16.mxu0 %v3306_v24  ;;  %v2869_v24 = vpack.c.bf16 %v2408_v23, %v2407_v22 }
 0x246   :  { %2296 = vmatpush1.bf16.msra.mxu0 %v3304_v25  ;;  %v2391_v25 = vld [vmem:[#allocation11 + $0x70] sm:$0xff] }
 0x247   :  { %2297 = vmatprep.subr.bf16.mxu0 %v3309_v26  ;;  %v2392_v26 = vld [vmem:[#allocation11 + $0x78] sm:$0xff] }
 0x24a   :  { %2298 = vmatpush1.bf16.msra.mxu0 %v3307_v27  ;;  %v2871_v27 = vpack.c.bf16 %v2392_v26, %v2391_v25 }
 0x24b   :  { %2299 = vmatprep.subr.bf16.mxu0 %v3312_v28 }
 0x24e   :  { %2300 = vmatpush1.bf16.msra.mxu0 %v3310_v29 }
 0x24f   :  { %2301 = vmatprep.subr.bf16.mxu0 %v3315_v30 }
 0x252   :  { %2302 = vmatpush1.bf16.msra.mxu0 %v3313_v31 }
 0x253   :  { %2303 = vmatprep.subr.bf16.mxu0 %v3318_v32 }
 0x256   :  { %2304 = vmatpush1.bf16.msra.mxu0 %v3316_v33 }
 0x257   :  { %2305 = vmatprep.subr.bf16.mxu0 %v3321_v34 }
 0x25a   :  { %2306 = vmatpush1.bf16.msra.mxu0 %v3319_v35 }
 0x25b   :  { %2307 = vmatprep.subr.bf16.mxu0 %v3324_v36 }
 0x25e   :  { %2308 = vmatpush1.bf16.msra.mxu0 %v3322_v37 }
 0x25f   :  { %2309 = vmatprep.subr.bf16.mxu0 %v3327_v38 }
 0x262   :  { %2310 = vmatpush1.bf16.msra.mxu0 %v3325_v40 }
 0x265   :  { %2312 = vmatmul.mubr.bf16.vlgmr.msra.gmra.mrb[12].mxu0 %v3683_v3  ;;  %v2402_v3 = vld [vmem:[#allocation11 + $0xc8] sm:$0xff] }
 0x266   :  { %v2857_v4 = vpack.c.bf16 %v2402_v3, %v2401_v2 }
 0x268   :  { %2858 = vmatprep.subr.bf16.mxu1 %v2857_v4 }
 0x269   :  { %2860 = vmatpush3.bf16.msra.mxu1 %v2859_v7 }
 0x26a   :  { %2862 = vmatprep.subr.bf16.mxu1 %v2861_v10 }
 0x26d   :  { %2864 = vmatpush3.bf16.msra.mxu1 %v2863_v13 }
 0x26e   :  { %2866 = vmatprep.subr.bf16.mxu1 %v2865_v18 }
 0x271   :  { %2868 = vmatpush3.bf16.msra.mxu1 %v2867_v21 }
 0x272   :  { %2870 = vmatprep.subr.bf16.mxu1 %v2869_v24 }
 0x275   :  { %2872 = vmatpush3.bf16.msra.mxu1 %v2871_v27 }
 0x2f8   :  { %v2231_v28 = vpop.f32.mrb[8].mxu0  ;;  %v2272_v29 = vpop.f32.mrb[8].mxu1 }
 0x2f9   :  { %v2322_v30 = vrot.slane %v2272_v29, 1  ;;  %v2233_v31 = vpop.f32.mrb[9].mxu0  ;;  %v2274_v32 = vpop.f32.mrb[9].mxu1 }
 0x2fa   :  { %v2323_v33 = vrot.slane %v2274_v32, 1  ;;  %v2235_v34 = vpop.f32.mrb[10].mxu0  ;;  %v2276_v35 = vpop.f32.mrb[10].mxu1 }
 0x2fb   :  { %v2326_v36 = vadd.f32 %v2322_v30, %v2231_v28  ;;  %v2236_v37 = vpop.f32.mrb[11].mxu0  ;;  %v2277_v38 = vpop.f32.mrb[11].mxu1 }
 0x2fc   :  { %v2327_v40 = vadd.f32 %v2323_v33, %v2233_v31 }
 0x338   :  { %v2313_v42 = vpop.f32.mrb[12].mxu0 }
 0x339   :  { %v2330_v45 = vrot.slane %v2313_v42, 2  ;;  %v2315_v46 = vpop.f32.mrb[13].mxu0 }
 0x33a   :  { %v2331_v60 = vrot.slane %v2315_v46, 2  ;;  %v2317_v47 = vpop.f32.mrb[14].mxu0 }
 0x33b   :  { %v2334_v49 = vadd.f32 %v2330_v45, %v2326_v36  ;;  %v2318_v51 = vpop.f32.mrb[15].mxu0 }
 0x33c   :  { %v2335_v55 = vadd.f32 %v2331_v60, %v2327_v40 }
 0x33d   :  { %v2336_v53 = vadd.f32 %v2334_v49, %v3687_v15  ;;  %v2360_v54 = vadd.f32 %v2356_v48, %v2334_v49 }
 0x33e   :  { %v2337_v43 = vadd.f32 %v2335_v55, %v3689_v16  ;;  %v2361_v57 = vadd.f32 %v2357_v52, %v2335_v55 }
 0x33f   :  { %v2348_v58 = vadd.f32 %v2341_v50, %v2336_v53  ;;  %v2362_v59 = vadd.f32 %v2360_v54, %v2341_v50 }
 0x340   :  { %v2349_v62 = vadd.f32 %v2345_v56, %v2337_v43  ;;  %v2363_v61 = vadd.f32 %v2361_v57, %v2345_v56 }
 0x341   :  { %v2364_v63 = vmax.f32 %v2362_v59, 0.0  ;;  %v2350_v1 = vmax.f32 %v2348_v58, 0.0 }
 0x342   :  { %v2365_v0 = vmax.f32 %v2363_v61, 0.0  ;;  %v2351_v3 = vmax.f32 %v2349_v62, 0.0 }
 0x343   :  { %v2370_v2 = vrot.slane %v2364_v63, 2 }
 0x344   :  { %v2371_v4 = vrot.slane %v2365_v0, 2 }
 0x345   :  { %v2375_v5 = vsel %vm1546_vm0, %v2350_v1, %v2370_v2 }
 0x346   :  { %v2376_v39 = vsel %vm1546_vm0, %v2351_v3, %v2371_v4 }
 0x347   :  { %2480 = vmatprep.mubr.f32.mxu1 %v2376_v39 }
 0x348   :  { %2481 = vmatmul.mubr.f32.vlgmr.msra.gmra.mrb[12].mxu1 %v2375_v5 }
 0x41b   :  { %v2838_v15 = vpop.f32.mrb[12].mxu1 }
 0x41c   :  { %v2839_v16 = vpop.f32.mrb[13].mxu1 }
 0x41d   :  { %v2840_v7 = vadd.f32 %v2839_v16, %v2838_v15 }
 0x41f   :  { %v2483_v8 = vadd.f32 %v2840_v7, %v2804_v6 }
 0x421   :  { %v2486_v9 = vmul.f32 %v2483_v8, %v2483_v8 }
 0x423   :  { %v2488_v10 = vsel %vm2487_vm7, %v2486_v9, 0.0 }
 0x424   :  { %2489 = vadd.xlane.f32.xlu0 %v2488_v10 }
 0x4b1   :  { %v2490_v11 = vpop.xlane.xlu0 %2489 }
 0x4b2   :  { %v2491_v12 = vmax.f32 %v2490_v11, 1e-24 }
 0x4b4   :  { %3328 = vrsqrt.f32 %v2491_v12 }
 0x4be   :  { %v3329_v13 = vpop.eup %3328 }
 0x4bf   :  { %v2493_v14 = vmul.f32 %v3329_v13, %v2483_v8 }
 0x4c1   :  { %2494 = vst [vmem:[#allocation14] sm:$0x3] %v2493_v14 }
 0x4c2   :  { %3473 = shalt.err (!%p3470_p10)
}
 0x4c3   :  { %s3474_s23 = scalar_lea.hbm %s3720_s6, 32 }
 0x4c4   :  { %p3475_p11 = scmp.ne.s32.totalorder %s3720_s6, %s3474_s23  ;;  %p3478_p12 = scmp.lt.u32.totalorder %s3474_s23, %s3720_s6 }
 0x4c6   :  { %p3480_p13 = pnand %p3478_p12, %p3475_p11 }
 0x4c8   :  { %3483 = shalt.err (!%p3480_p13)
}
 0x4c9   :  { %2504 = dma.vmem_to_hbm [thread:$0]  %s2502_s1, 32, %s3720_s6, [#allocation5]  }
 0x4ca   :  { %3492 = dma.done.wait [#allocation5], 32  }
 0x4cb   :  { %3493 = vsyncadd [#allocation5], 4294967264 }
 0x4cc   :  { %2508 = vsyncpa [#allocation4], 1 }
 0x4cd   :  { %2509 = vsyncpa [#allocation7], 1 }
 0x4ce   :  { %2510 = vsyncpa [#allocation10], 1 }
 0x4cf   :  { %2511 = vsyncpa [#allocation13], 1 }
 0x4d0   :  { %2512 = vsyncpa [#allocation5], 1 }

</bundles_post_ra>
